<compile_context>
chip_gen: v6e
topology: v6e:2x2x1
jax: 0.10.0
libtpu: 0.0.40
codegen_flags: <defaults>
</compile_context>

<pallas_src>
import numpy as np
import jax
import jax.numpy as jnp
from jax import lax
from jax.experimental import pallas as pl
from jax.experimental.pallas import tpu as pltpu

NB_ACTIONS = 7          # engine.nb_actions for the standard TetrisEngine
BN_EPS = 1e-5


# ----------------------------------------------------------------------------
# The fused kernel: NB boards per grid step, everything in VMEM.
#   x      : (NB, 200)   f32   board pixels, flattened row-major (20x10)
#   w1     : (200, 2304) bf16  conv1 unrolled;  lanes = i*128 + j*16 + ch
#   w2     : (2304, 768) bf16  conv2 unrolled;  lanes = co*24 + h*3 + w (NCHW flatten)
#   w3     : (768, 256)  bf16  lin1 (pre-transposed)
#   w4     : (256, 128)  bf16  head, zero-padded 7 -> 128 output lanes
# ----------------------------------------------------------------------------
def _dqn_kernel(x_ref, w1_ref, s1_ref, t1_ref, w2_ref, s2_ref, t2_ref,
                w3_ref, b3_ref, w4_ref, b4_ref, o_ref):
    f32 = jnp.float32
    bf16 = jnp.bfloat16

    # conv1 (3x3, s=1) + bn1 + relu  ==  one (NB,200)x(200,2304) matmul.
    x = x_ref[...].astype(bf16)
    a1 = jnp.dot(x, w1_ref[...], preferred_element_type=f32)
    a1 = jnp.maximum(a1 * s1_ref[...] + t1_ref[...], 0.0)

    # conv2 (4x4, s=2) + bn2 + relu  ==  one (NB,2304)x(2304,768) matmul.
    a2 = jnp.dot(a1.astype(bf16), w2_ref[...], preferred_element_type=f32)
    a2 = jnp.maximum(a2 * s2_ref[...] + t2_ref[...], 0.0)

    # lin1 + relu : (NB,768)x(768,256).
    a3 = jnp.dot(a2.astype(bf16), w3_ref[...], preferred_element_type=f32) + b3_ref[...]
    a3 = jnp.maximum(a3, 0.0)

    # head : (NB,256)x(256,128), lane-dense padded output.
    q = jnp.dot(a3.astype(bf16), w4_ref[...], preferred_element_type=f32) + b4_ref[...]
    o_ref[...] = q.astype(o_ref.dtype)


# ----------------------------------------------------------------------------
# Offline parameter packing (one-time, host-side numpy; not in the hot path).
# ----------------------------------------------------------------------------
def _fold_bn(gamma, beta, mean, var, conv_bias):
    scale = gamma / np.sqrt(var + BN_EPS)
    bias = beta + (conv_bias - mean) * scale
    return scale, bias


def pack_params(p):
    f32 = np.float32
    g = {k: np.asarray(v, f32) for k, v in p.items()}

    # Shape guards (review correctness concern #3).
    assert g["conv1_w"].shape == (16, 1, 3, 3)
    assert g["conv2_w"].shape == (32, 16, 4, 4)
    assert g["lin1_w"].shape == (256, 768)
    assert g["head_w"].shape == (NB_ACTIONS, 256)

    s1, t1 = _fold_bn(g["bn1_g"], g["bn1_b"], g["bn1_m"], g["bn1_v"], g["conv1_b"])
    s2, t2 = _fold_bn(g["bn2_g"], g["bn2_b"], g["bn2_m"], g["bn2_v"], g["conv2_b"])

    # conv1 -> dense unrolled W1: (20*10=200, 18*8*16=2304)
    #   input lane  : r*10 + c
    #   output lane : i*128 + j*16 + ch
    w1 = g["conv1_w"]
    W1 = np.zeros((200, 2304), f32)
    for i in range(18):
        for j in range(8):
            o = i * 128 + j * 16
            for ki in range(3):
                for kj in range(3):
                    W1[(i + ki) * 10 + (j + kj), o:o + 16] = w1[:, 0, ki, kj]
    s1lane = np.tile(s1, 18 * 8).reshape(1, 2304)
    t1lane = np.tile(t1, 18 * 8).reshape(1, 2304)

    # conv2 -> dense unrolled W2: (2304, 32*8*3=768)
    #   input lane  : i*128 + j*16 + ci   (conv1 layout above)
    #   output lane : co*24 + h*3 + w     == PyTorch NCHW flatten of (32, 8, 3)
    w2 = g["conv2_w"]
    W2 = np.zeros((2304, 768), f32)
    ci_idx = np.arange(16)
    co_cols = np.arange(32) * 24
    for h in range(8):
        for w in range(3):
            cols = co_cols + h * 3 + w
            for ki in range(4):
                for kj in range(4):
                    rows = (2 * h + ki) * 128 + (2 * w + kj) * 16 + ci_idx
                    W2[np.ix_(rows, cols)] = w2[:, :, ki, kj].T   # (ci, co)
    s2lane = np.repeat(s2, 24).reshape(1, 768)
    t2lane = np.repeat(t2, 24).reshape(1, 768)

    # lin1 consumes the PyTorch NCHW flatten order directly.
    W3 = g["lin1_w"].T.copy()                          # (768, 256)
    b3 = g["lin1_b"].reshape(1, 256)

    # head padded to 128 lane-dense output columns (cols 7..127 are zero).
    W4 = np.zeros((256, 128), f32)
    W4[:, :NB_ACTIONS] = g["head_w"].T
    b4 = np.zeros((1, 128), f32)
    b4[0, :NB_ACTIONS] = g["head_b"]

    bf16 = jnp.bfloat16
    return dict(
        w1=jnp.asarray(W1, bf16), s1=jnp.asarray(s1lane), t1=jnp.asarray(t1lane),
        w2=jnp.asarray(W2, bf16), s2=jnp.asarray(s2lane), t2=jnp.asarray(t2lane),
        w3=jnp.asarray(W3, bf16), b3=jnp.asarray(b3),
        w4=jnp.asarray(W4, bf16), b4=jnp.asarray(b4),
    )


# ----------------------------------------------------------------------------
# Forward pass: single fused pallas_call, grid over batch blocks ("parallel").
# ----------------------------------------------------------------------------
def _round_up(n, m):
    return ((n + m - 1) // m) * m


def dqn_forward(packed, x_nchw, block_b=128):
    B = x_nchw.shape[0]
    assert x_nchw.shape[1:] == (1, 20, 10), x_nchw.shape
    # (B,1,20,10) -> (B,200): merges minor-most contiguous dims (free bitcast).
    x2d = x_nchw.reshape(B, 200).astype(jnp.float32)

    nb = min(block_b, _round_up(B, 8))     # boards per grid step (multiple of 8)
    b_pad = _round_up(B, nb)
    if b_pad != B:
        x2d = jnp.pad(x2d, ((0, b_pad - B), (0, 0)))

    grid_spec = pltpu.PrefetchScalarGridSpec(
        num_scalar_prefetch=0,
        grid=(b_pad // nb,),
        in_specs=[
            pl.BlockSpec((nb, 200), lambda i: (i, 0)),        # boards
            pl.BlockSpec((200, 2304), lambda i: (0, 0)),      # conv1 (unrolled, bf16)
            pl.BlockSpec((1, 2304), lambda i: (0, 0)),        # bn1 scale
            pl.BlockSpec((1, 2304), lambda i: (0, 0)),        # bn1 bias
            pl.BlockSpec((2304, 768), lambda i: (0, 0)),      # conv2 (unrolled, bf16)
            pl.BlockSpec((1, 768), lambda i: (0, 0)),         # bn2 scale
            pl.BlockSpec((1, 768), lambda i: (0, 0)),         # bn2 bias
            pl.BlockSpec((768, 256), lambda i: (0, 0)),       # lin1 (bf16)
            pl.BlockSpec((1, 256), lambda i: (0, 0)),         # lin1 bias
            pl.BlockSpec((256, 128), lambda i: (0, 0)),       # head (lane-padded, bf16)
            pl.BlockSpec((1, 128), lambda i: (0, 0)),         # head bias
        ],
        out_specs=pl.BlockSpec((nb, 128), lambda i: (i, 0)),
    )
    out = pl.pallas_call(
        _dqn_kernel,
        out_shape=jax.ShapeDtypeStruct((b_pad, 128), jnp.float32),
        grid_spec=grid_spec,
        compiler_params=pltpu.CompilerParams(
            dimension_semantics=("parallel",),
            vmem_limit_bytes=48 * 1024 * 1024),
    )(x2d, packed["w1"], packed["s1"], packed["t1"],
      packed["w2"], packed["s2"], packed["t2"],
      packed["w3"], packed["b3"], packed["w4"], packed["b4"])
    return out[:B, :NB_ACTIONS]


# ----------------------------------------------------------------------------
# Raw (PyTorch-layout) parameters and a pure-JAX reference for validation.
# ----------------------------------------------------------------------------
def init_params(key):
    ks = jax.random.split(key, 16)
    n = lambda k, shape, s=0.1: s * jax.random.normal(k, shape, jnp.float32)
    return {
        "conv1_w": n(ks[0], (16, 1, 3, 3)), "conv1_b": n(ks[1], (16,)),
        "bn1_g": 1.0 + n(ks[2], (16,)), "bn1_b": n(ks[3], (16,)),
        "bn1_m": n(ks[4], (16,)),
        "bn1_v": jax.random.uniform(ks[5], (16,), jnp.float32, 0.5, 1.5),
        "conv2_w": n(ks[6], (32, 16, 4, 4)), "conv2_b": n(ks[7], (32,)),
        "bn2_g": 1.0 + n(ks[8], (32,)), "bn2_b": n(ks[9], (32,)),
        "bn2_m": n(ks[10], (32,)),
        "bn2_v": jax.random.uniform(ks[11], (32,), jnp.float32, 0.5, 1.5),
        "lin1_w": n(ks[12], (256, 768)), "lin1_b": n(ks[13], (256,)),
        "head_w": n(ks[14], (NB_ACTIONS, 256)), "head_b": n(ks[15], (NB_ACTIONS,)),
    }


def dqn_reference(p, x):
    def bn(y, g, b, m, v):
        return ((y - m[None, :, None, None]) /
                jnp.sqrt(v[None, :, None, None] + BN_EPS)
                * g[None, :, None, None] + b[None, :, None, None])
    y = lax.conv_general_dilated(x, p["conv1_w"], (1, 1), "VALID",
                                 dimension_numbers=("NCHW", "OIHW", "NCHW"))
    y = y + p["conv1_b"][None, :, None, None]
    y = jnp.maximum(bn(y, p["bn1_g"], p["bn1_b"], p["bn1_m"], p["bn1_v"]), 0.0)
    y = lax.conv_general_dilated(y, p["conv2_w"], (2, 2), "VALID",
                                 dimension_numbers=("NCHW", "OIHW", "NCHW"))
    y = y + p["conv2_b"][None, :, None, None]
    y = jnp.maximum(bn(y, p["bn2_g"], p["bn2_b"], p["bn2_m"], p["bn2_v"]), 0.0)
    flat = y.reshape(y.shape[0], -1)                    # PyTorch NCHW flatten
    y = jnp.maximum(flat @ p["lin1_w"].T + p["lin1_b"], 0.0)
    return y @ p["head_w"].T + p["head_b"]


if __name__ == "__main__":
    key = jax.random.PRNGKey(0)
    k_param, k_x = jax.random.split(key)
    params = init_params(k_param)

    # Tetris board: width=10, height=20 -> input (B, 1, 20, 10), batch=2, 0/1 cells.
    B = 2
    x = (jax.random.uniform(k_x, (B, 1, 20, 10)) < 0.35).astype(jnp.float32)

    packed = pack_params(params)                        # one-time weight packing
    fwd = jax.jit(dqn_forward)
    q_values = fwd(packed, x)
    jax.block_until_ready(q_values)

    ref = dqn_reference(params, x)
    err = float(jnp.max(jnp.abs(q_values - ref)))
    assert q_values.shape == (B, NB_ACTIONS)
    assert bool(jnp.all(jnp.isfinite(q_values)))
    assert err < 5e-2, f"mismatch vs pure-JAX reference: max abs err {err}"
    print("KERNEL_OK")
</pallas_src>

<mosaic_0001>
module attributes {stable_mosaic.version = 11 : i64} {
  func.func @_dqn_kernel(%arg0: i32, %arg1: memref<8x200xf32, #tpu.memory_space<vmem>>, %arg2: memref<200x2304xbf16, #tpu.memory_space<vmem>>, %arg3: memref<1x2304xf32, #tpu.memory_space<vmem>>, %arg4: memref<1x2304xf32, #tpu.memory_space<vmem>>, %arg5: memref<2304x768xbf16, #tpu.memory_space<vmem>>, %arg6: memref<1x768xf32, #tpu.memory_space<vmem>>, %arg7: memref<1x768xf32, #tpu.memory_space<vmem>>, %arg8: memref<768x256xbf16, #tpu.memory_space<vmem>>, %arg9: memref<1x256xf32, #tpu.memory_space<vmem>>, %arg10: memref<256x128xbf16, #tpu.memory_space<vmem>>, %arg11: memref<1x128xf32, #tpu.memory_space<vmem>>, %arg12: memref<8x128xf32, #tpu.memory_space<vmem>>) attributes {dimension_semantics = [#tpu.dimension_semantics<parallel>], iteration_bounds = array<i64: 1>, scalar_prefetch = 0 : i64, scratch_operands = 0 : i64, tpu.core_type = #tpu.core_type<tc>, window_params = [{transform_indices = @transform_0, window_bounds = array<i64: 8, 200>}, {pipeline_mode = #tpu.pipeline_mode<synchronous>, transform_indices = @transform_1, window_bounds = array<i64: 200, 2304>}, {pipeline_mode = #tpu.pipeline_mode<synchronous>, transform_indices = @transform_2, window_bounds = array<i64: 1, 2304>}, {pipeline_mode = #tpu.pipeline_mode<synchronous>, transform_indices = @transform_3, window_bounds = array<i64: 1, 2304>}, {pipeline_mode = #tpu.pipeline_mode<synchronous>, transform_indices = @transform_4, window_bounds = array<i64: 2304, 768>}, {pipeline_mode = #tpu.pipeline_mode<synchronous>, transform_indices = @transform_5, window_bounds = array<i64: 1, 768>}, {pipeline_mode = #tpu.pipeline_mode<synchronous>, transform_indices = @transform_6, window_bounds = array<i64: 1, 768>}, {pipeline_mode = #tpu.pipeline_mode<synchronous>, transform_indices = @transform_7, window_bounds = array<i64: 768, 256>}, {pipeline_mode = #tpu.pipeline_mode<synchronous>, transform_indices = @transform_8, window_bounds = array<i64: 1, 256>}, {pipeline_mode = #tpu.pipeline_mode<synchronous>, transform_indices = @transform_9, window_bounds = array<i64: 256, 128>}, {pipeline_mode = #tpu.pipeline_mode<synchronous>, transform_indices = @transform_10, window_bounds = array<i64: 1, 128>}, {transform_indices = @transform_11, window_bounds = array<i64: 8, 128>}]} {
    %c0 = arith.constant 0 : index
    %c0_0 = arith.constant 0 : index
    %0 = vector.load %arg1[%c0, %c0_0] : memref<8x200xf32, #tpu.memory_space<vmem>>, vector<8x200xf32>
    %1 = arith.truncf %0 : vector<8x200xf32> to vector<8x200xbf16>
    %c0_1 = arith.constant 0 : index
    %c0_2 = arith.constant 0 : index
    %2 = vector.load %arg2[%c0_1, %c0_2] : memref<200x2304xbf16, #tpu.memory_space<vmem>>, vector<200x2304xbf16>
    %cst = arith.constant dense<0.000000e+00> : vector<8x2304xf32>
    %3 = tpu.matmul %1, %2, %cst {dimension_numbers = #tpu.dot_dimension_numbers<[1], [0], [0], [1], [0, 0, 1, 1], [], []>} : vector<8x200xbf16>, vector<200x2304xbf16>, vector<8x2304xf32> -> vector<8x2304xf32>
    %c0_3 = arith.constant 0 : index
    %c0_4 = arith.constant 0 : index
    %4 = vector.load %arg3[%c0_3, %c0_4] : memref<1x2304xf32, #tpu.memory_space<vmem>>, vector<1x2304xf32>
    %5 = vector.broadcast %4 : vector<1x2304xf32> to vector<8x2304xf32>
    %6 = arith.mulf %3, %5 : vector<8x2304xf32>
    %c0_5 = arith.constant 0 : index
    %c0_6 = arith.constant 0 : index
    %7 = vector.load %arg4[%c0_5, %c0_6] : memref<1x2304xf32, #tpu.memory_space<vmem>>, vector<1x2304xf32>
    %8 = vector.broadcast %7 : vector<1x2304xf32> to vector<8x2304xf32>
    %9 = arith.addf %6, %8 : vector<8x2304xf32>
    %cst_7 = arith.constant 0.000000e+00 : f32
    %10 = vector.broadcast %cst_7 : f32 to vector<8x2304xf32>
    %11 = arith.maximumf %9, %10 : vector<8x2304xf32>
    %12 = arith.truncf %11 : vector<8x2304xf32> to vector<8x2304xbf16>
    %c0_8 = arith.constant 0 : index
    %c0_9 = arith.constant 0 : index
    %13 = vector.load %arg5[%c0_8, %c0_9] : memref<2304x768xbf16, #tpu.memory_space<vmem>>, vector<2304x768xbf16>
    %cst_10 = arith.constant dense<0.000000e+00> : vector<8x768xf32>
    %14 = tpu.matmul %12, %13, %cst_10 {dimension_numbers = #tpu.dot_dimension_numbers<[1], [0], [0], [1], [0, 0, 1, 1], [], []>} : vector<8x2304xbf16>, vector<2304x768xbf16>, vector<8x768xf32> -> vector<8x768xf32>
    %c0_11 = arith.constant 0 : index
    %c0_12 = arith.constant 0 : index
    %15 = vector.load %arg6[%c0_11, %c0_12] : memref<1x768xf32, #tpu.memory_space<vmem>>, vector<1x768xf32>
    %16 = vector.broadcast %15 : vector<1x768xf32> to vector<8x768xf32>
    %17 = arith.mulf %14, %16 : vector<8x768xf32>
    %c0_13 = arith.constant 0 : index
    %c0_14 = arith.constant 0 : index
    %18 = vector.load %arg7[%c0_13, %c0_14] : memref<1x768xf32, #tpu.memory_space<vmem>>, vector<1x768xf32>
    %19 = vector.broadcast %18 : vector<1x768xf32> to vector<8x768xf32>
    %20 = arith.addf %17, %19 : vector<8x768xf32>
    %cst_15 = arith.constant 0.000000e+00 : f32
    %21 = vector.broadcast %cst_15 : f32 to vector<8x768xf32>
    %22 = arith.maximumf %20, %21 : vector<8x768xf32>
    %23 = arith.truncf %22 : vector<8x768xf32> to vector<8x768xbf16>
    %c0_16 = arith.constant 0 : index
    %c0_17 = arith.constant 0 : index
    %24 = vector.load %arg8[%c0_16, %c0_17] : memref<768x256xbf16, #tpu.memory_space<vmem>>, vector<768x256xbf16>
    %cst_18 = arith.constant dense<0.000000e+00> : vector<8x256xf32>
    %25 = tpu.matmul %23, %24, %cst_18 {dimension_numbers = #tpu.dot_dimension_numbers<[1], [0], [0], [1], [0, 0, 1, 1], [], []>} : vector<8x768xbf16>, vector<768x256xbf16>, vector<8x256xf32> -> vector<8x256xf32>
    %c0_19 = arith.constant 0 : index
    %c0_20 = arith.constant 0 : index
    %26 = vector.load %arg9[%c0_19, %c0_20] : memref<1x256xf32, #tpu.memory_space<vmem>>, vector<1x256xf32>
    %27 = vector.broadcast %26 : vector<1x256xf32> to vector<8x256xf32>
    %28 = arith.addf %25, %27 : vector<8x256xf32>
    %cst_21 = arith.constant 0.000000e+00 : f32
    %29 = vector.broadcast %cst_21 : f32 to vector<8x256xf32>
    %30 = arith.maximumf %28, %29 : vector<8x256xf32>
    %31 = arith.truncf %30 : vector<8x256xf32> to vector<8x256xbf16>
    %c0_22 = arith.constant 0 : index
    %c0_23 = arith.constant 0 : index
    %32 = vector.load %arg10[%c0_22, %c0_23] : memref<256x128xbf16, #tpu.memory_space<vmem>>, vector<256x128xbf16>
    %cst_24 = arith.constant dense<0.000000e+00> : vector<8x128xf32>
    %33 = tpu.matmul %31, %32, %cst_24 {dimension_numbers = #tpu.dot_dimension_numbers<[1], [0], [0], [1], [0, 0, 1, 1], [], []>} : vector<8x256xbf16>, vector<256x128xbf16>, vector<8x128xf32> -> vector<8x128xf32>
    %c0_25 = arith.constant 0 : index
    %c0_26 = arith.constant 0 : index
    %34 = vector.load %arg11[%c0_25, %c0_26] : memref<1x128xf32, #tpu.memory_space<vmem>>, vector<1x128xf32>
    %35 = vector.broadcast %34 : vector<1x128xf32> to vector<8x128xf32>
    %36 = arith.addf %33, %35 : vector<8x128xf32>
    %c0_27 = arith.constant 0 : index
    %c0_28 = arith.constant 0 : index
    %37 = vector.load %arg12[%c0_27, %c0_28] : memref<8x128xf32, #tpu.memory_space<vmem>>, vector<8x128xf32>
    tpu.vector_store %arg12[%c0_27, %c0_28], %36 {strides = array<i32>} : memref<8x128xf32, #tpu.memory_space<vmem>>, vector<8x128xf32>,
    return
  }
  func.func @transform_0(%arg0: i32) -> (i32, i32) {
    %c0_i32 = arith.constant 0 : i32
    %c0_i32_0 = arith.constant 0 : i32
    return %arg0, %c0_i32 : i32, i32
  }
  func.func @transform_1(%arg0: i32) -> (i32, i32) {
    %c0_i32 = arith.constant 0 : i32
    %c0_i32_0 = arith.constant 0 : i32
    %c0_i32_1 = arith.constant 0 : i32
    return %c0_i32, %c0_i32_0 : i32, i32
  }
  func.func @transform_2(%arg0: i32) -> (i32, i32) {
    %c0_i32 = arith.constant 0 : i32
    %c0_i32_0 = arith.constant 0 : i32
    %c0_i32_1 = arith.constant 0 : i32
    return %c0_i32, %c0_i32_0 : i32, i32
  }
  func.func @transform_3(%arg0: i32) -> (i32, i32) {
    %c0_i32 = arith.constant 0 : i32
    %c0_i32_0 = arith.constant 0 : i32
    %c0_i32_1 = arith.constant 0 : i32
    return %c0_i32, %c0_i32_0 : i32, i32
  }
  func.func @transform_4(%arg0: i32) -> (i32, i32) {
    %c0_i32 = arith.constant 0 : i32
    %c0_i32_0 = arith.constant 0 : i32
    %c0_i32_1 = arith.constant 0 : i32
    return %c0_i32, %c0_i32_0 : i32, i32
  }
  func.func @transform_5(%arg0: i32) -> (i32, i32) {
    %c0_i32 = arith.constant 0 : i32
    %c0_i32_0 = arith.constant 0 : i32
    %c0_i32_1 = arith.constant 0 : i32
    return %c0_i32, %c0_i32_0 : i32, i32
  }
  func.func @transform_6(%arg0: i32) -> (i32, i32) {
    %c0_i32 = arith.constant 0 : i32
    %c0_i32_0 = arith.constant 0 : i32
    %c0_i32_1 = arith.constant 0 : i32
    return %c0_i32, %c0_i32_0 : i32, i32
  }
  func.func @transform_7(%arg0: i32) -> (i32, i32) {
    %c0_i32 = arith.constant 0 : i32
    %c0_i32_0 = arith.constant 0 : i32
    %c0_i32_1 = arith.constant 0 : i32
    return %c0_i32, %c0_i32_0 : i32, i32
  }
  func.func @transform_8(%arg0: i32) -> (i32, i32) {
    %c0_i32 = arith.constant 0 : i32
    %c0_i32_0 = arith.constant 0 : i32
    %c0_i32_1 = arith.constant 0 : i32
    return %c0_i32, %c0_i32_0 : i32, i32
  }
  func.func @transform_9(%arg0: i32) -> (i32, i32) {
    %c0_i32 = arith.constant 0 : i32
    %c0_i32_0 = arith.constant 0 : i32
    %c0_i32_1 = arith.constant 0 : i32
    return %c0_i32, %c0_i32_0 : i32, i32
  }
  func.func @transform_10(%arg0: i32) -> (i32, i32) {
    %c0_i32 = arith.constant 0 : i32
    %c0_i32_0 = arith.constant 0 : i32
    %c0_i32_1 = arith.constant 0 : i32
    return %c0_i32, %c0_i32_0 : i32, i32
  }
  func.func @transform_11(%arg0: i32) -> (i32, i32) {
    %c0_i32 = arith.constant 0 : i32
    %c0_i32_0 = arith.constant 0 : i32
    return %arg0, %c0_i32 : i32, i32
  }
}

</mosaic_0001>

<bundles_post_ra>
// kernel: dqn_forward.1
= control target key start
LH: loop header
LB: loop body
LE: loop exit
PB: predicated region body
PF: predicated region fallthrough
CT: control target
= control target key end

     0   :  { %16 = vsyncpa [#allocation3], 0  ;;  %s13266_s0 = inlined_call_operand.vmem [shape: f32[8,200], index: 0, kind: input, shape index: {}]   ;;  %s13267_s1 = inlined_call_operand.hbm [shape: bf16[200,2304], index: 1, kind: input, shape index: {}]   ;;  %s13268_s2 = inlined_call_operand.hbm [shape: f32[1,2304], index: 2, kind: input, shape index: {}]   ;;  %s13269_s3 = inlined_call_operand.hbm [shape: f32[1,2304], index: 3, kind: input, shape index: {}]   ;;  %s13270_s4 = inlined_call_operand.hbm [shape: bf16[2304,768], index: 4, kind: input, shape index: {}]   ;;  %s13271_s5 = inlined_call_operand.hbm [shape: f32[1,768], index: 5, kind: input, shape index: {}]   ;;  %s13272_s6 = inlined_call_operand.hbm [shape: f32[1,768], index: 6, kind: input, shape index: {}]   ;;  %s13273_s7 = inlined_call_operand.hbm [shape: bf16[768,256], index: 7, kind: input, shape index: {}]   ;;  %s13274_s8 = inlined_call_operand.hbm [shape: f32[1,256], index: 8, kind: input, shape index: {}]   ;;  %s13275_s9 = inlined_call_operand.hbm [shape: bf16[256,128], index: 9, kind: input, shape index: {}]   ;;  %s13276_s10 = inlined_call_operand.hbm [shape: f32[1,128], index: 10, kind: input, shape index: {}]   ;;  %s13277_s11 = inlined_call_operand.vmem [shape: f32[8,128], index: 11, kind: output, shape index: {}]  }
   0x1   :  { %17 = vsyncpa [#allocation5], 0 }
   0x2   :  { %18 = vsyncpa [#allocation8], 0 }
   0x3   :  { %19 = vsyncpa [#allocation11], 0 }
   0x4   :  { %20 = vsyncpa [#allocation14], 0 }
   0x5   :  { %21 = vsyncpa [#allocation17], 0  ;;  %s12768_s17 = smov [#allocation4]   ;;  %s12769_s19 = smov [#allocation7]  }
   0x6   :  { %s42_s18 = sshll.u32 %s12768_s17, 4  ;;  %s61_s20 = sshll.u32 %s12769_s19, 4  ;;  %s43_s18 = int_to_ptr.vmem [resolvable:$true] %s42_s18  ;;  %s62_s20 = int_to_ptr.vmem [resolvable:$true] %s61_s20 }
   0x7   :  { %s12564_s21 = scalar_lea.vmem %s43_s18, 288  ;;  %p12569_p1 = scmp.lt.s32.totalorder %s43_s18, %s43_s18 }
   0x8   :  { %p12565_p0 = scmp.ne.s32.totalorder %s43_s18, %s12564_s21  ;;  %p12570_p2 = scmp.lt.s32.totalorder %s12564_s21, %s12564_s21 }
   0xa   :  { %p12571_p3 = por %p12570_p2, %p12569_p1 }
   0xc   :  { %p12572_p4 = pnand %p12571_p3, %p12565_p0 }
   0xe   :  { %12575 = shalt.err (!%p12572_p4)
}
   0xf   :  { %45 = dma.hbm_to_vmem [thread:$0]  %s13268_s2, 288, %s43_s18, [#allocation5]  }
  0x10   :  { %s12584_s24 = scalar_lea.vmem %s62_s20, 110592  ;;  %p12589_p6 = scmp.lt.s32.totalorder %s62_s20, %s62_s20 }
  0x11   :  { %p12585_p5 = scmp.ne.s32.totalorder %s62_s20, %s12584_s24  ;;  %p12590_p7 = scmp.lt.s32.totalorder %s12584_s24, %s12584_s24 }
  0x13   :  { %p12591_p8 = por %p12590_p7, %p12589_p6 }
  0x15   :  { %p12592_p9 = pnand %p12591_p8, %p12585_p5 }
  0x17   :  { %12595 = shalt.err (!%p12592_p9)
}
  0x18   :  { %s12770_s25 = smov 384   ;;  %s12771_s26 = smov 24  }
  0x19   :  { %67 = dma.hbm_to_vmem [thread:$0]  %s13270_s4, 110592, %s62_s20, [#allocation8], %s12770_s25, %s12770_s25, %s12771_s26  }
  0x1a   :  { %s12772_s29 = smov [#allocation10]   ;;  %s12773_s12 = smov [#allocation13]  }
  0x1b   :  { %s84_s30 = sshll.u32 %s12772_s29, 4  ;;  %s106_s13 = sshll.u32 %s12773_s12, 4  ;;  %s85_s30 = int_to_ptr.vmem [resolvable:$true] %s84_s30  ;;  %s107_s13 = int_to_ptr.vmem [resolvable:$true] %s106_s13 }
  0x1c   :  { %s12604_s2 = scalar_lea.vmem %s85_s30, 96  ;;  %p12609_p11 = scmp.lt.s32.totalorder %s85_s30, %s85_s30 }
  0x1d   :  { %p12605_p10 = scmp.ne.s32.totalorder %s85_s30, %s12604_s2  ;;  %p12610_p12 = scmp.lt.s32.totalorder %s12604_s2, %s12604_s2 }
  0x1f   :  { %p12611_p13 = por %p12610_p12, %p12609_p11 }
  0x21   :  { %p12612_p0 = pnand %p12611_p13, %p12605_p10 }
  0x23   :  { %12615 = shalt.err (!%p12612_p0)
}
  0x24   :  { %87 = dma.hbm_to_vmem [thread:$0]  %s13272_s6, 96, %s85_s30, [#allocation11]  }
  0x25   :  { %s12624_s16 = scalar_lea.vmem %s107_s13, 32  ;;  %p12629_p2 = scmp.lt.s32.totalorder %s107_s13, %s107_s13 }
  0x26   :  { %p12625_p1 = scmp.ne.s32.totalorder %s107_s13, %s12624_s16  ;;  %p12630_p3 = scmp.lt.s32.totalorder %s12624_s16, %s12624_s16 }
  0x28   :  { %p12631_p4 = por %p12630_p3, %p12629_p2 }
  0x2a   :  { %p12632_p5 = pnand %p12631_p4, %p12625_p1 }
  0x2c   :  { %12635 = shalt.err (!%p12632_p5)
}
  0x2d   :  { %109 = dma.hbm_to_vmem [thread:$0]  %s13274_s8, 32, %s107_s13, [#allocation14]  }
  0x2e   :  { %s12774_s18 = smov [#allocation2]  }
  0x2f   :  { %s29_s19 = sshll.u32 %s12774_s18, 4  ;;  %s30_s19 = int_to_ptr.vmem [resolvable:$true] %s29_s19 }
  0x30   :  { %s12644_s20 = scalar_lea.vmem %s30_s19, 28800  ;;  %p12649_p7 = scmp.lt.s32.totalorder %s30_s19, %s30_s19 }
  0x31   :  { %p12645_p6 = scmp.ne.s32.totalorder %s30_s19, %s12644_s20  ;;  %p12650_p8 = scmp.lt.s32.totalorder %s12644_s20, %s12644_s20 }
  0x33   :  { %p12651_p9 = por %p12650_p8, %p12649_p7 }
  0x35   :  { %p12652_p10 = pnand %p12651_p9, %p12645_p6 }
  0x37   :  { %12655 = shalt.err (!%p12652_p10)
}
  0x38   :  { %s12775_s6 = smov 1152   ;;  %s12776_s21 = smov 72  }
  0x39   :  { %35 = dma.hbm_to_vmem [thread:$0]  %s13267_s1, 28800, %s30_s19, [#allocation3], %s12775_s6, %s12775_s6, %s12776_s21  }
  0x3a   :  { %s12777_s24 = smov [#allocation6]   ;;  %s12778_s8 = smov [#allocation9]  }
  0x3b   :  { %s52_s25 = sshll.u32 %s12777_s24, 4  ;;  %s74_s26 = sshll.u32 %s12778_s8, 4  ;;  %s53_s25 = int_to_ptr.vmem [resolvable:$true] %s52_s25  ;;  %s75_s26 = int_to_ptr.vmem [resolvable:$true] %s74_s26 }
  0x3c   :  { %s12664_s27 = scalar_lea.vmem %s53_s25, 288  ;;  %p12669_p12 = scmp.lt.s32.totalorder %s53_s25, %s53_s25 }
  0x3d   :  { %p12665_p11 = scmp.ne.s32.totalorder %s53_s25, %s12664_s27  ;;  %p12670_p13 = scmp.lt.s32.totalorder %s12664_s27, %s12664_s27 }
  0x3f   :  { %p12671_p0 = por %p12670_p13, %p12669_p12 }
  0x41   :  { %p12672_p1 = pnand %p12671_p0, %p12665_p11 }
  0x43   :  { %12675 = shalt.err (!%p12672_p1)
}
  0x44   :  { %55 = dma.hbm_to_vmem [thread:$0]  %s13269_s3, 288, %s53_s25, [#allocation5]  }
  0x45   :  { %s12684_s30 = scalar_lea.vmem %s75_s26, 96  ;;  %p12689_p3 = scmp.lt.s32.totalorder %s75_s26, %s75_s26 }
  0x46   :  { %p12685_p2 = scmp.ne.s32.totalorder %s75_s26, %s12684_s30  ;;  %p12690_p4 = scmp.lt.s32.totalorder %s12684_s30, %s12684_s30 }
  0x48   :  { %p12691_p5 = por %p12690_p4, %p12689_p3 }
  0x4a   :  { %p12692_p6 = pnand %p12691_p5, %p12685_p2 }
  0x4c   :  { %12695 = shalt.err (!%p12692_p6)
}
  0x4d   :  { %77 = dma.hbm_to_vmem [thread:$0]  %s13271_s5, 96, %s75_s26, [#allocation8]  }
  0x4e   :  { %s12779_s13 = smov [#allocation12]  }
  0x4f   :  { %s93_s2 = sshll.u32 %s12779_s13, 4  ;;  %s94_s2 = int_to_ptr.vmem [resolvable:$true] %s93_s2 }
  0x50   :  { %s12704_s14 = scalar_lea.vmem %s94_s2, 12288  ;;  %p12709_p8 = scmp.lt.s32.totalorder %s94_s2, %s94_s2 }
  0x51   :  { %p12705_p7 = scmp.ne.s32.totalorder %s94_s2, %s12704_s14  ;;  %p12710_p9 = scmp.lt.s32.totalorder %s12704_s14, %s12704_s14 }
  0x53   :  { %p12711_p10 = por %p12710_p9, %p12709_p8 }
  0x55   :  { %p12712_p11 = pnand %p12711_p10, %p12705_p7 }
  0x57   :  { %12715 = shalt.err (!%p12712_p11)
}
  0x58   :  { %s12780_s3 = smov 128   ;;  %s12781_s15 = smov 8  }
  0x59   :  { %99 = dma.hbm_to_vmem [thread:$0]  %s13273_s7, 12288, %s94_s2, [#allocation11], %s12780_s3, %s12780_s3, %s12781_s15  }
  0x5a   :  { %s12782_s17 = smov [#allocation15]  }
  0x5b   :  { %s115_s18 = sshll.u32 %s12782_s17, 4  ;;  %s116_s18 = int_to_ptr.vmem [resolvable:$true] %s115_s18 }
  0x5c   :  { %s12724_s5 = scalar_lea.vmem %s116_s18, 2048  ;;  %p12729_p13 = scmp.lt.s32.totalorder %s116_s18, %s116_s18 }
  0x5d   :  { %p12725_p12 = scmp.ne.s32.totalorder %s116_s18, %s12724_s5  ;;  %p12730_p0 = scmp.lt.s32.totalorder %s12724_s5, %s12724_s5 }
  0x5f   :  { %p12731_p1 = por %p12730_p0, %p12729_p13 }
  0x61   :  { %p12732_p2 = pnand %p12731_p1, %p12725_p12 }
  0x63   :  { %12735 = shalt.err (!%p12732_p2)
}
  0x64   :  { %s12783_s19 = smov 64   ;;  %s12784_s20 = smov 4  }
  0x65   :  { %121 = dma.hbm_to_vmem [thread:$0]  %s13275_s9, 2048, %s116_s18, [#allocation14], %s12783_s19, %s12783_s19, %s12784_s20  }
  0x66   :  { %s12785_s22 = smov [#allocation16]  }
  0x67   :  { %s128_s23 = sshll.u32 %s12785_s22, 4  ;;  %s129_s23 = int_to_ptr.vmem [resolvable:$true] %s128_s23 }
  0x68   :  { %s12744_s7 = scalar_lea.vmem %s129_s23, 16  ;;  %s12748_s24 = scalar_lea.vmem %s129_s23, 32 }
  0x69   :  { %p12745_p3 = scmp.ne.s32.totalorder %s129_s23, %s12744_s7  ;;  %p12749_p4 = scmp.lt.s32.totalorder %s129_s23, %s129_s23 }
  0x6a   :  { %p12750_p5 = scmp.lt.s32.totalorder %s12748_s24, %s12744_s7 }
  0x6c   :  { %p12751_p6 = por %p12750_p5, %p12749_p4 }
  0x6e   :  { %p12752_p7 = pnand %p12751_p6, %p12745_p3 }
  0x70   :  { %12755 = shalt.err (!%p12752_p7)
}
  0x71   :  { %131 = dma.hbm_to_vmem [thread:$0]  %s13276_s10, 16, %s129_s23, [#allocation17]  }
  0x72   :  { %12756 = dma.done.wait [#allocation3], 28800  }
  0x73   :  { %12757 = vsyncadd [#allocation3], 4294938496 }
  0x74   :  { %12758 = dma.done.wait [#allocation5], 576  }
  0x75   :  { %12759 = vsyncadd [#allocation5], 4294966720 }
  0x76   :  { %12760 = dma.done.wait [#allocation8], 110688  }
  0x77   :  { %12761 = vsyncadd [#allocation8], 4294856608 }
  0x78   :  { %12762 = dma.done.wait [#allocation11], 12384  }
  0x79   :  { %12763 = vsyncadd [#allocation11], 4294954912 }
  0x7a   :  { %12764 = dma.done.wait [#allocation14], 2080  }
  0x7b   :  { %12765 = vsyncadd [#allocation14], 4294965216 }
  0x7c   :  { %12766 = dma.done.wait [#allocation17], 16  }
  0x7d   :  { %12767 = vsyncadd [#allocation17], 4294967280  ;;  %v10758_v0 = vld [vmem:[#allocation2 + $0x3f4] ss:$72 sps:$4 sm:$0xff]   ;;  %v10762_v2 = vld [vmem:[#allocation2 + $0x3f0] ss:$72 sps:$4 sm:$0xff]  }
  0x7e   :  { %v10760_v1 = vld [vmem:[#allocation2 + $0x3fc] ss:$72 sps:$4 sm:$0xff]   ;;  %1576 = vmatprep.subr.bf16.mxu0 %v10758_v0  ;;  %v10763_v3 = vld [vmem:[#allocation2 + $0x3f8] ss:$72 sps:$4 sm:$0xff]   ;;  %v10766_v5 = vld [vmem:[#allocation2 + $0x36c] ss:$72 sps:$4 sm:$0xff]  }
  0x7f   :  { %1617 = vmatprep.subr.bf16.mxu1 %v10760_v1  ;;  %v10764_v4 = vld [vmem:[#allocation2 + $0x364] ss:$72 sps:$4 sm:$0xff]   ;;  %1577 = vmatpush1.bf16.msra.mxu0 %v10762_v2  ;;  %v10768_v6 = vld [vmem:[#allocation2 + $0x360] ss:$72 sps:$4 sm:$0xff]   ;;  %v10770_v8 = vld [vmem:[#allocation2 + $0x2d4] ss:$72 sps:$4 sm:$0xff]  }
  0x80   :  { %1618 = vmatpush1.bf16.msra.mxu1 %v10763_v3  ;;  %1578 = vmatprep.subr.bf16.mxu0 %v10764_v4  ;;  %v10769_v7 = vld [vmem:[#allocation2 + $0x368] ss:$72 sps:$4 sm:$0xff]   ;;  %v10772_v9 = vld [vmem:[#allocation2 + $0x2dc] ss:$72 sps:$4 sm:$0xff]   ;;  %v10775_v11 = vld [vmem:[#allocation2 + $0x2d8] ss:$72 sps:$4 sm:$0xff]  }
  0x81   :  { %1619 = vmatprep.subr.bf16.mxu1 %v10766_v5  ;;  %v10774_v10 = vld [vmem:[#allocation2 + $0x2d0] ss:$72 sps:$4 sm:$0xff]   ;;  %v10776_v12 = vld [vmem:[#allocation2 + $0x244] ss:$72 sps:$4 sm:$0xff]   ;;  %v10780_v14 = vld [vmem:[#allocation2 + $0x240] ss:$72 sps:$4 sm:$0xff]  }
  0x82   :  { %v10778_v13 = vld [vmem:[#allocation2 + $0x24c] ss:$72 sps:$4 sm:$0xff]   ;;  %v10781_v15 = vld [vmem:[#allocation2 + $0x248] ss:$72 sps:$4 sm:$0xff]   ;;  %v10784_v17 = vld [vmem:[#allocation2 + $0x1bc] ss:$72 sps:$4 sm:$0xff]  }
  0x83   :  { %1579 = vmatpush1.bf16.msra.mxu0 %v10768_v6  ;;  %v10782_v16 = vld [vmem:[#allocation2 + $0x1b4] ss:$72 sps:$4 sm:$0xff]   ;;  %v10786_v18 = vld [vmem:[#allocation2 + $0x1b0] ss:$72 sps:$4 sm:$0xff]   ;;  %v10788_v20 = vld [vmem:[#allocation2 + $0x124] ss:$72 sps:$4 sm:$0xff]  }
  0x84   :  { %1620 = vmatpush1.bf16.msra.mxu1 %v10769_v7  ;;  %1580 = vmatprep.subr.bf16.mxu0 %v10770_v8  ;;  %v10787_v19 = vld [vmem:[#allocation2 + $0x1b8] ss:$72 sps:$4 sm:$0xff]   ;;  %v10790_v21 = vld [vmem:[#allocation2 + $0x12c] ss:$72 sps:$4 sm:$0xff]   ;;  %v10793_v23 = vld [vmem:[#allocation2 + $0x128] ss:$72 sps:$4 sm:$0xff]  }
  0x85   :  { %1621 = vmatprep.subr.bf16.mxu1 %v10772_v9  ;;  %v10792_v22 = vld [vmem:[#allocation2 + $0x120] ss:$72 sps:$4 sm:$0xff]   ;;  %v10794_v24 = vld [vmem:[#allocation2 + $0x94] ss:$72 sps:$4 sm:$0xff]   ;;  %v10798_v26 = vld [vmem:[#allocation2 + $0x90] ss:$72 sps:$4 sm:$0xff]  }
  0x86   :  { %v10796_v25 = vld [vmem:[#allocation2 + $0x9c] ss:$72 sps:$4 sm:$0xff]   ;;  %v10799_v27 = vld [vmem:[#allocation2 + $0x98] ss:$72 sps:$4 sm:$0xff]   ;;  %v10802_v29 = vld [vmem:[#allocation2 + $0xc] ss:$72 sps:$4 sm:$0xff]  }
  0x87   :  { %1581 = vmatpush1.bf16.msra.mxu0 %v10774_v10  ;;  %v10800_v28 = vld [vmem:[#allocation2 + $0x4] ss:$72 sps:$4 sm:$0xff]   ;;  %v10804_v32 = vld [vmem:[#allocation2] ss:$72 sps:$4 sm:$0xff]   ;;  %vm1521_vm0 = vcmask 1043456   ;;  %vm1517_vm1 = vcmask 588800  }
  0x88   :  { %1622 = vmatpush1.bf16.msra.mxu1 %v10775_v11  ;;  %1582 = vmatprep.subr.bf16.mxu0 %v10776_v12  ;;  %v383_v30 = vld [vmem:[#allocation2 + $0x6c0] sm:$0xff]  ;;  %v384_v31 = vld [vmem:[#allocation2 + $0x6c8] sm:$0xff]  ;;  %v10810_v38 = vld [vmem:[#allocation2 + $0x634] ss:$72 sps:$4 sm:$0xff]  }
  0x89   :  { %1623 = vmatprep.subr.bf16.mxu1 %v10778_v13  ;;  %v10805_v33 = vld [vmem:[#allocation2 + $0x8] ss:$72 sps:$4 sm:$0xff]   ;;  %v9706_v34 = vcombine.high %v383_v30, %v383_v30  ;;  %v9708_v35 = vcombine.high %v384_v31, %v384_v31  ;;  %v9705_v36 = vcombine.low %v383_v30, %v383_v30  ;;  %v9707_v37 = vcombine.low %v384_v31, %v384_v31  ;;  %v10812_v41 = vld [vmem:[#allocation2 + $0x63c] ss:$72 sps:$4 sm:$0xff]   ;;  %v10815_v45 = vld [vmem:[#allocation2 + $0x638] ss:$72 sps:$4 sm:$0xff]  }
  0x8a   :  { %v164_v42 = vld [vmem:[%s13266_s0 + $0x8] sm:$0xff]  ;;  %v10814_v44 = vld [vmem:[#allocation2 + $0x630] ss:$72 sps:$4 sm:$0xff]   ;;  %v10822_v50 = vld [vmem:[#allocation2 + $0x514] ss:$72 sps:$4 sm:$0xff]  }
  0x8b   :  { %1583 = vmatpush1.bf16.msra.mxu0 %v10780_v14  ;;  %v1523_v39 = vsel %vm1521_vm0, %v9705_v36, 0  ;;  %v1529_v40 = vsel %vm1521_vm0, %v9707_v37, 0  ;;  %v12883_v43 = vpack.c.bf16 %v164_v42, %v164_v42  ;;  %v10816_v46 = vld [vmem:[#allocation2 + $0x5a4] ss:$72 sps:$4 sm:$0xff]   ;;  %v10820_v48 = vld [vmem:[#allocation2 + $0x5a0] ss:$72 sps:$4 sm:$0xff]  }
  0x8c   :  { %1624 = vmatpush1.bf16.msra.mxu1 %v10781_v15  ;;  %1584 = vmatprep.subr.bf16.mxu0 %v10782_v16  ;;  %v10818_v47 = vld [vmem:[#allocation2 + $0x5ac] ss:$72 sps:$4 sm:$0xff]   ;;  %v10821_v49 = vld [vmem:[#allocation2 + $0x5a8] ss:$72 sps:$4 sm:$0xff]   ;;  %v10824_v51 = vld [vmem:[#allocation2 + $0x51c] ss:$72 sps:$4 sm:$0xff]  }
  0x8d   :  { %1625 = vmatprep.subr.bf16.mxu1 %v10784_v17  ;;  %9726 = vmatprep.mubr.msk.bf16.mxu1 %vm1517_vm1, %v12883_v43  ;;  %v10826_v52 = vld [vmem:[#allocation2 + $0x510] ss:$72 sps:$4 sm:$0xff]   ;;  %v10828_v54 = vld [vmem:[#allocation2 + $0x484] ss:$72 sps:$4 sm:$0xff]   ;;  %v10832_v56 = vld [vmem:[#allocation2 + $0x480] ss:$72 sps:$4 sm:$0xff]  }
  0x8e   :  { %9724 = vmatprep.mubr.msk.bf16.mxu0 %vm1517_vm1, %v12883_v43  ;;  %v10827_v53 = vld [vmem:[#allocation2 + $0x518] ss:$72 sps:$4 sm:$0xff]   ;;  %v10830_v55 = vld [vmem:[#allocation2 + $0x48c] ss:$72 sps:$4 sm:$0xff]   ;;  %v10833_v57 = vld [vmem:[#allocation2 + $0x488] ss:$72 sps:$4 sm:$0xff]  }
  0x8f   :  { %1585 = vmatpush1.bf16.msra.mxu0 %v10786_v18  ;;  %v163_v58 = vld [vmem:[%s13266_s0] sm:$0xff]  ;;  %v10839_v60 = vld [vmem:[#allocation2 + $0x40c] ss:$72 sps:$4 sm:$0xff]   ;;  %v10837_v63 = vld [vmem:[#allocation2 + $0x408] ss:$72 sps:$4 sm:$0xff]  }
  0x90   :  { %1626 = vmatpush1.bf16.msra.mxu1 %v10787_v19  ;;  %1586 = vmatprep.subr.bf16.mxu0 %v10788_v20  ;;  %v10836_v59 = vld [vmem:[#allocation2 + $0x404] ss:$72 sps:$4 sm:$0xff]   ;;  %v12892_v61 = vpack.c.bf16 %v163_v58, %v163_v58  ;;  %v10834_v62 = vld [vmem:[#allocation2 + $0x400] ss:$72 sps:$4 sm:$0xff]   ;;  %v10842_v0 = vld [vmem:[#allocation2 + $0x374] ss:$72 sps:$4 sm:$0xff]  }
  0x91   :  { %1627 = vmatprep.subr.bf16.mxu1 %v10790_v21  ;;  %v10845_v1 = vld [vmem:[#allocation2 + $0x37c] ss:$72 sps:$4 sm:$0xff]   ;;  %v10840_v2 = vld [vmem:[#allocation2 + $0x370] ss:$72 sps:$4 sm:$0xff]   ;;  %v10851_v5 = vld [vmem:[#allocation2 + $0x2ec] ss:$72 sps:$4 sm:$0xff]  }
  0x92   :  { %v10843_v3 = vld [vmem:[#allocation2 + $0x378] ss:$72 sps:$4 sm:$0xff]   ;;  %v10848_v4 = vld [vmem:[#allocation2 + $0x2e4] ss:$72 sps:$4 sm:$0xff]   ;;  %v10849_v7 = vld [vmem:[#allocation2 + $0x2e8] ss:$72 sps:$4 sm:$0xff]  }
  0x93   :  { %1587 = vmatpush1.bf16.msra.mxu0 %v10792_v22  ;;  %v10846_v6 = vld [vmem:[#allocation2 + $0x2e0] ss:$72 sps:$4 sm:$0xff]   ;;  %v10854_v8 = vld [vmem:[#allocation2 + $0x254] ss:$72 sps:$4 sm:$0xff]   ;;  %v10852_v10 = vld [vmem:[#allocation2 + $0x250] ss:$72 sps:$4 sm:$0xff]  }
  0x94   :  { %1628 = vmatpush1.bf16.msra.mxu1 %v10793_v23  ;;  %1588 = vmatprep.subr.bf16.mxu0 %v10794_v24  ;;  %v10857_v9 = vld [vmem:[#allocation2 + $0x25c] ss:$72 sps:$4 sm:$0xff]   ;;  %v10855_v11 = vld [vmem:[#allocation2 + $0x258] ss:$72 sps:$4 sm:$0xff]   ;;  %v10863_v13 = vld [vmem:[#allocation2 + $0x1cc] ss:$72 sps:$4 sm:$0xff]  }
  0x95   :  { %1629 = vmatprep.subr.bf16.mxu1 %v10796_v25  ;;  %v10860_v12 = vld [vmem:[#allocation2 + $0x1c4] ss:$72 sps:$4 sm:$0xff]   ;;  %v10858_v14 = vld [vmem:[#allocation2 + $0x1c0] ss:$72 sps:$4 sm:$0xff]   ;;  %v10866_v16 = vld [vmem:[#allocation2 + $0x134] ss:$72 sps:$4 sm:$0xff]  }
  0x96   :  { %v10861_v15 = vld [vmem:[#allocation2 + $0x1c8] ss:$72 sps:$4 sm:$0xff]   ;;  %v10869_v17 = vld [vmem:[#allocation2 + $0x13c] ss:$72 sps:$4 sm:$0xff]   ;;  %v10867_v19 = vld [vmem:[#allocation2 + $0x138] ss:$72 sps:$4 sm:$0xff]  }
  0x97   :  { %1589 = vmatpush1.bf16.msra.mxu0 %v10798_v26  ;;  %v10864_v18 = vld [vmem:[#allocation2 + $0x130] ss:$72 sps:$4 sm:$0xff]   ;;  %v10872_v20 = vld [vmem:[#allocation2 + $0xa4] ss:$72 sps:$4 sm:$0xff]   ;;  %v10870_v22 = vld [vmem:[#allocation2 + $0xa0] ss:$72 sps:$4 sm:$0xff]  }
  0x98   :  { %1630 = vmatpush1.bf16.msra.mxu1 %v10799_v27  ;;  %1590 = vmatprep.subr.bf16.mxu0 %v10800_v28  ;;  %v10875_v21 = vld [vmem:[#allocation2 + $0xac] ss:$72 sps:$4 sm:$0xff]   ;;  %v10873_v23 = vld [vmem:[#allocation2 + $0xa8] ss:$72 sps:$4 sm:$0xff]   ;;  %v10881_v25 = vld [vmem:[#allocation2 + $0x1c] ss:$72 sps:$4 sm:$0xff]  }
  0x99   :  { %1631 = vmatprep.subr.bf16.mxu1 %v10802_v29  ;;  %v10878_v24 = vld [vmem:[#allocation2 + $0x14] ss:$72 sps:$4 sm:$0xff]   ;;  %v10876_v28 = vld [vmem:[#allocation2 + $0x10] ss:$72 sps:$4 sm:$0xff]  }
  0x9a   :  { %v385_v26 = vld [vmem:[#allocation2 + $0x6d0] sm:$0xff]  ;;  %v386_v27 = vld [vmem:[#allocation2 + $0x6d8] sm:$0xff] }
  0x9b   :  { %1591 = vmatpush1.bf16.msra.mxu0 %v10804_v32  ;;  %v10879_v29 = vld [vmem:[#allocation2 + $0x18] ss:$72 sps:$4 sm:$0xff]   ;;  %v9710_v30 = vcombine.high %v385_v26, %v385_v26  ;;  %v9712_v31 = vcombine.high %v386_v27, %v386_v27  ;;  %v9709_v32 = vcombine.low %v385_v26, %v385_v26  ;;  %v10891_v37 = vld [vmem:[#allocation2 + $0x64c] ss:$72 sps:$4 sm:$0xff]  }
  0x9c   :  { %1632 = vmatpush1.bf16.msra.mxu1 %v10805_v33  ;;  %9723 = vmatprep.subr.msk.bf16.mxu0 %vm1521_vm0, %v9706_v34  ;;  %v9711_v33 = vcombine.low %v386_v27, %v386_v27  ;;  %v10888_v34 = vld [vmem:[#allocation2 + $0x644] ss:$72 sps:$4 sm:$0xff]   ;;  %v10892_v42 = vld [vmem:[#allocation2 + $0x5b0] ss:$72 sps:$4 sm:$0xff]  }
  0x9d   :  { %9725 = vmatprep.subr.msk.bf16.mxu1 %vm1521_vm0, %v9708_v35  ;;  %v1535_v35 = vsel %vm1521_vm0, %v9709_v32, 0  ;;  %v10921_v58 = vld [vmem:[#allocation2 + $0x38c] ss:$72 sps:$4 sm:$0xff]   ;;  %v10962_v32 = vld [vmem:[#allocation2 + $0x650] ss:$72 sps:$4 sm:$0xff]  }
  0x9e   :  { %v1541_v36 = vsel %vm1521_vm0, %v9711_v33, 0  ;;  %v10965_v33 = vld [vmem:[#allocation2 + $0x658] ss:$72 sps:$4 sm:$0xff]  }
  0x9f   :  { %1599 = vmatpush2.bf16.msra.mxu0 %v1523_v39  ;;  %v10889_v39 = vld [vmem:[#allocation2 + $0x648] ss:$72 sps:$4 sm:$0xff]  }
  0xa0   :  { %1640 = vmatpush2.bf16.msra.mxu1 %v1529_v40  ;;  %1600 = vmatprep.subr.bf16.mxu0 %v10810_v38  ;;  %v10886_v38 = vld [vmem:[#allocation2 + $0x640] ss:$72 sps:$4 sm:$0xff]   ;;  %v10894_v40 = vld [vmem:[#allocation2 + $0x5b4] ss:$72 sps:$4 sm:$0xff]  }
  0xa1   :  { %1641 = vmatprep.subr.bf16.mxu1 %v10812_v41  ;;  %v10897_v41 = vld [vmem:[#allocation2 + $0x5bc] ss:$72 sps:$4 sm:$0xff]  }
  0xa3   :  { %1601 = vmatpush2.bf16.msra.mxu0 %v10814_v44  ;;  %v10895_v44 = vld [vmem:[#allocation2 + $0x5b8] ss:$72 sps:$4 sm:$0xff]  }
  0xa4   :  { %1642 = vmatpush2.bf16.msra.mxu1 %v10815_v45  ;;  %1602 = vmatprep.subr.bf16.mxu0 %v10816_v46  ;;  %v10900_v45 = vld [vmem:[#allocation2 + $0x524] ss:$72 sps:$4 sm:$0xff]  }
  0xa5   :  { %1643 = vmatprep.subr.bf16.mxu1 %v10818_v47  ;;  %v10903_v46 = vld [vmem:[#allocation2 + $0x52c] ss:$72 sps:$4 sm:$0xff]   ;;  %v10898_v47 = vld [vmem:[#allocation2 + $0x520] ss:$72 sps:$4 sm:$0xff]  }
  0xa7   :  { %1603 = vmatpush2.bf16.msra.mxu0 %v10820_v48  ;;  %v10901_v48 = vld [vmem:[#allocation2 + $0x528] ss:$72 sps:$4 sm:$0xff]  }
  0xa8   :  { %1644 = vmatpush2.bf16.msra.mxu1 %v10821_v49  ;;  %1604 = vmatprep.subr.bf16.mxu0 %v10822_v50  ;;  %v10906_v49 = vld [vmem:[#allocation2 + $0x494] ss:$72 sps:$4 sm:$0xff]  }
  0xa9   :  { %1645 = vmatprep.subr.bf16.mxu1 %v10824_v51  ;;  %v10909_v50 = vld [vmem:[#allocation2 + $0x49c] ss:$72 sps:$4 sm:$0xff]   ;;  %v10904_v51 = vld [vmem:[#allocation2 + $0x490] ss:$72 sps:$4 sm:$0xff]  }
  0xab   :  { %1605 = vmatpush2.bf16.msra.mxu0 %v10826_v52  ;;  %v10907_v52 = vld [vmem:[#allocation2 + $0x498] ss:$72 sps:$4 sm:$0xff]  }
  0xac   :  { %1646 = vmatpush2.bf16.msra.mxu1 %v10827_v53  ;;  %1606 = vmatprep.subr.bf16.mxu0 %v10828_v54  ;;  %v10912_v53 = vld [vmem:[#allocation2 + $0x414] ss:$72 sps:$4 sm:$0xff]  }
  0xad   :  { %1647 = vmatprep.subr.bf16.mxu1 %v10830_v55  ;;  %v10915_v54 = vld [vmem:[#allocation2 + $0x41c] ss:$72 sps:$4 sm:$0xff]   ;;  %v10910_v55 = vld [vmem:[#allocation2 + $0x410] ss:$72 sps:$4 sm:$0xff]  }
  0xaf   :  { %1607 = vmatpush2.bf16.msra.mxu0 %v10832_v56  ;;  %v10913_v56 = vld [vmem:[#allocation2 + $0x418] ss:$72 sps:$4 sm:$0xff]  }
  0xb0   :  { %1648 = vmatpush2.bf16.msra.mxu1 %v10833_v57  ;;  %1658 = vmatprep.subr.bf16.mxu0 %v10836_v59  ;;  %v10918_v57 = vld [vmem:[#allocation2 + $0x384] ss:$72 sps:$4 sm:$0xff]   ;;  %v10916_v59 = vld [vmem:[#allocation2 + $0x380] ss:$72 sps:$4 sm:$0xff]  }
  0xb1   :  { %1699 = vmatprep.subr.bf16.mxu1 %v10839_v60  ;;  %v10919_v60 = vld [vmem:[#allocation2 + $0x388] ss:$72 sps:$4 sm:$0xff]  }
  0xb2   :  { %1609 = vmatmul.mubr.bf16.vlgmr.msra.gmra.mxu0 %v12892_v61 }
  0xb3   :  { %1650 = vmatmul.mubr.bf16.vlgmr.msra.gmra.mxu1 %v12892_v61  ;;  %1659 = vmatpush1.bf16.msra.mxu0 %v10834_v62  ;;  %v10924_v62 = vld [vmem:[#allocation2 + $0x2f4] ss:$72 sps:$4 sm:$0xff]  }
  0xb4   :  { %1700 = vmatpush1.bf16.msra.mxu1 %v10837_v63  ;;  %1660 = vmatprep.subr.bf16.mxu0 %v10842_v0  ;;  %v10927_v63 = vld [vmem:[#allocation2 + $0x2fc] ss:$72 sps:$4 sm:$0xff]   ;;  %v10922_v0 = vld [vmem:[#allocation2 + $0x2f0] ss:$72 sps:$4 sm:$0xff]  }
  0xb5   :  { %1701 = vmatprep.subr.bf16.mxu1 %v10845_v1  ;;  %9730 = vmatprep.mubr.msk.bf16.mxu1 %vm1517_vm1, %v12883_v43  ;;  %v10925_v1 = vld [vmem:[#allocation2 + $0x2f8] ss:$72 sps:$4 sm:$0xff]  }
  0xb6   :  { %9728 = vmatprep.mubr.msk.bf16.mxu0 %vm1517_vm1, %v12883_v43 }
  0xb7   :  { %1661 = vmatpush1.bf16.msra.mxu0 %v10840_v2  ;;  %v10930_v2 = vld [vmem:[#allocation2 + $0x264] ss:$72 sps:$4 sm:$0xff]  }
  0xb8   :  { %1702 = vmatpush1.bf16.msra.mxu1 %v10843_v3  ;;  %1662 = vmatprep.subr.bf16.mxu0 %v10848_v4  ;;  %v10933_v3 = vld [vmem:[#allocation2 + $0x26c] ss:$72 sps:$4 sm:$0xff]   ;;  %v10928_v4 = vld [vmem:[#allocation2 + $0x260] ss:$72 sps:$4 sm:$0xff]  }
  0xb9   :  { %1703 = vmatprep.subr.bf16.mxu1 %v10851_v5  ;;  %v10931_v5 = vld [vmem:[#allocation2 + $0x268] ss:$72 sps:$4 sm:$0xff]  }
  0xbb   :  { %1663 = vmatpush1.bf16.msra.mxu0 %v10846_v6  ;;  %v10936_v6 = vld [vmem:[#allocation2 + $0x1d4] ss:$72 sps:$4 sm:$0xff]  }
  0xbc   :  { %1704 = vmatpush1.bf16.msra.mxu1 %v10849_v7  ;;  %1664 = vmatprep.subr.bf16.mxu0 %v10854_v8  ;;  %v10939_v7 = vld [vmem:[#allocation2 + $0x1dc] ss:$72 sps:$4 sm:$0xff]   ;;  %v10934_v8 = vld [vmem:[#allocation2 + $0x1d0] ss:$72 sps:$4 sm:$0xff]  }
  0xbd   :  { %1705 = vmatprep.subr.bf16.mxu1 %v10857_v9  ;;  %v10937_v9 = vld [vmem:[#allocation2 + $0x1d8] ss:$72 sps:$4 sm:$0xff]  }
  0xbf   :  { %1665 = vmatpush1.bf16.msra.mxu0 %v10852_v10  ;;  %v10942_v10 = vld [vmem:[#allocation2 + $0x144] ss:$72 sps:$4 sm:$0xff]  }
  0xc0   :  { %1706 = vmatpush1.bf16.msra.mxu1 %v10855_v11  ;;  %1666 = vmatprep.subr.bf16.mxu0 %v10860_v12  ;;  %v10945_v11 = vld [vmem:[#allocation2 + $0x14c] ss:$72 sps:$4 sm:$0xff]   ;;  %v10940_v12 = vld [vmem:[#allocation2 + $0x140] ss:$72 sps:$4 sm:$0xff]  }
  0xc1   :  { %1707 = vmatprep.subr.bf16.mxu1 %v10863_v13  ;;  %v10943_v13 = vld [vmem:[#allocation2 + $0x148] ss:$72 sps:$4 sm:$0xff]  }
  0xc3   :  { %1667 = vmatpush1.bf16.msra.mxu0 %v10858_v14  ;;  %v10948_v14 = vld [vmem:[#allocation2 + $0xb4] ss:$72 sps:$4 sm:$0xff]  }
  0xc4   :  { %1708 = vmatpush1.bf16.msra.mxu1 %v10861_v15  ;;  %1668 = vmatprep.subr.bf16.mxu0 %v10866_v16  ;;  %v10951_v15 = vld [vmem:[#allocation2 + $0xbc] ss:$72 sps:$4 sm:$0xff]   ;;  %v10946_v16 = vld [vmem:[#allocation2 + $0xb0] ss:$72 sps:$4 sm:$0xff]  }
  0xc5   :  { %1709 = vmatprep.subr.bf16.mxu1 %v10869_v17  ;;  %v10949_v17 = vld [vmem:[#allocation2 + $0xb8] ss:$72 sps:$4 sm:$0xff]  }
  0xc7   :  { %1669 = vmatpush1.bf16.msra.mxu0 %v10864_v18  ;;  %v10954_v18 = vld [vmem:[#allocation2 + $0x24] ss:$72 sps:$4 sm:$0xff]  }
  0xc8   :  { %1710 = vmatpush1.bf16.msra.mxu1 %v10867_v19  ;;  %1670 = vmatprep.subr.bf16.mxu0 %v10872_v20  ;;  %v10957_v19 = vld [vmem:[#allocation2 + $0x2c] ss:$72 sps:$4 sm:$0xff]   ;;  %v387_v20 = vld [vmem:[#allocation2 + $0x6e0] sm:$0xff] }
  0xc9   :  { %1711 = vmatprep.subr.bf16.mxu1 %v10875_v21  ;;  %v388_v21 = vld [vmem:[#allocation2 + $0x6e8] sm:$0xff]  ;;  %v9713_v26 = vcombine.low %v387_v20, %v387_v20 }
  0xca   :  { %v9715_v27 = vcombine.low %v388_v21, %v388_v21 }
  0xcb   :  { %1671 = vmatpush1.bf16.msra.mxu0 %v10870_v22  ;;  %v10952_v22 = vld [vmem:[#allocation2 + $0x20] ss:$72 sps:$4 sm:$0xff]  }
  0xcc   :  { %1712 = vmatpush1.bf16.msra.mxu1 %v10873_v23  ;;  %1672 = vmatprep.subr.bf16.mxu0 %v10878_v24  ;;  %v10955_v23 = vld [vmem:[#allocation2 + $0x28] ss:$72 sps:$4 sm:$0xff]   ;;  %v9714_v24 = vcombine.high %v387_v20, %v387_v20 }
  0xcd   :  { %1713 = vmatprep.subr.bf16.mxu1 %v10881_v25  ;;  %v9716_v25 = vcombine.high %v388_v21, %v388_v21 }
  0xcf   :  { %1673 = vmatpush1.bf16.msra.mxu0 %v10876_v28  ;;  %v10964_v28 = vld [vmem:[#allocation2 + $0x654] ss:$72 sps:$4 sm:$0xff]  }
  0xd0   :  { %1714 = vmatpush1.bf16.msra.mxu1 %v10879_v29  ;;  %9727 = vmatprep.subr.msk.bf16.mxu0 %vm1521_vm0, %v9710_v30  ;;  %v1547_v29 = vsel %vm1521_vm0, %v9713_v26, 0  ;;  %v1553_v30 = vsel %vm1521_vm0, %v9715_v27, 0  ;;  %v11038_v26 = vld [vmem:[#allocation2 + $0x660] ss:$72 sps:$4 sm:$0xff]  }
  0xd1   :  { %9729 = vmatprep.subr.msk.bf16.mxu1 %vm1521_vm0, %v9712_v31  ;;  %v10967_v31 = vld [vmem:[#allocation2 + $0x65c] ss:$72 sps:$4 sm:$0xff]   ;;  %v11041_v27 = vld [vmem:[#allocation2 + $0x668] ss:$72 sps:$4 sm:$0xff]  }
  0xd3   :  { %1681 = vmatpush2.bf16.msra.mxu0 %v1535_v35  ;;  %v10973_v35 = vld [vmem:[#allocation2 + $0x5cc] ss:$72 sps:$4 sm:$0xff]  }
  0xd4   :  { %1722 = vmatpush2.bf16.msra.mxu1 %v1541_v36  ;;  %1682 = vmatprep.subr.bf16.mxu0 %v10888_v34  ;;  %v10970_v34 = vld [vmem:[#allocation2 + $0x5c4] ss:$72 sps:$4 sm:$0xff]   ;;  %v10968_v36 = vld [vmem:[#allocation2 + $0x5c0] ss:$72 sps:$4 sm:$0xff]  }
  0xd5   :  { %1723 = vmatprep.subr.bf16.mxu1 %v10891_v37  ;;  %v10971_v37 = vld [vmem:[#allocation2 + $0x5c8] ss:$72 sps:$4 sm:$0xff]  }
  0xd7   :  { %1683 = vmatpush2.bf16.msra.mxu0 %v10886_v38  ;;  %v10976_v38 = vld [vmem:[#allocation2 + $0x534] ss:$72 sps:$4 sm:$0xff]  }
  0xd8   :  { %1724 = vmatpush2.bf16.msra.mxu1 %v10889_v39  ;;  %1684 = vmatprep.subr.bf16.mxu0 %v10894_v40  ;;  %v10979_v39 = vld [vmem:[#allocation2 + $0x53c] ss:$72 sps:$4 sm:$0xff]   ;;  %v10974_v40 = vld [vmem:[#allocation2 + $0x530] ss:$72 sps:$4 sm:$0xff]  }
  0xd9   :  { %1725 = vmatprep.subr.bf16.mxu1 %v10897_v41  ;;  %v10977_v41 = vld [vmem:[#allocation2 + $0x538] ss:$72 sps:$4 sm:$0xff]  }
  0xdb   :  { %1685 = vmatpush2.bf16.msra.mxu0 %v10892_v42  ;;  %v10982_v42 = vld [vmem:[#allocation2 + $0x4a4] ss:$72 sps:$4 sm:$0xff]  }
  0xdc   :  { %1726 = vmatpush2.bf16.msra.mxu1 %v10895_v44  ;;  %1686 = vmatprep.subr.bf16.mxu0 %v10900_v45  ;;  %v10985_v44 = vld [vmem:[#allocation2 + $0x4ac] ss:$72 sps:$4 sm:$0xff]   ;;  %v10980_v45 = vld [vmem:[#allocation2 + $0x4a0] ss:$72 sps:$4 sm:$0xff]  }
  0xdd   :  { %1727 = vmatprep.subr.bf16.mxu1 %v10903_v46  ;;  %v10983_v46 = vld [vmem:[#allocation2 + $0x4a8] ss:$72 sps:$4 sm:$0xff]  }
  0xdf   :  { %1687 = vmatpush2.bf16.msra.mxu0 %v10898_v47  ;;  %v10988_v47 = vld [vmem:[#allocation2 + $0x424] ss:$72 sps:$4 sm:$0xff]  }
  0xe0   :  { %1728 = vmatpush2.bf16.msra.mxu1 %v10901_v48  ;;  %1688 = vmatprep.subr.bf16.mxu0 %v10906_v49  ;;  %v10991_v48 = vld [vmem:[#allocation2 + $0x42c] ss:$72 sps:$4 sm:$0xff]   ;;  %v10986_v49 = vld [vmem:[#allocation2 + $0x420] ss:$72 sps:$4 sm:$0xff]  }
  0xe1   :  { %1729 = vmatprep.subr.bf16.mxu1 %v10909_v50  ;;  %v10989_v50 = vld [vmem:[#allocation2 + $0x428] ss:$72 sps:$4 sm:$0xff]  }
  0xe3   :  { %1689 = vmatpush2.bf16.msra.mxu0 %v10904_v51  ;;  %v10994_v51 = vld [vmem:[#allocation2 + $0x394] ss:$72 sps:$4 sm:$0xff]  }
  0xe4   :  { %1730 = vmatpush2.bf16.msra.mxu1 %v10907_v52  ;;  %1740 = vmatprep.subr.bf16.mxu0 %v10912_v53  ;;  %v10997_v52 = vld [vmem:[#allocation2 + $0x39c] ss:$72 sps:$4 sm:$0xff]   ;;  %v10992_v53 = vld [vmem:[#allocation2 + $0x390] ss:$72 sps:$4 sm:$0xff]  }
  0xe5   :  { %1781 = vmatprep.subr.bf16.mxu1 %v10915_v54  ;;  %v10995_v54 = vld [vmem:[#allocation2 + $0x398] ss:$72 sps:$4 sm:$0xff]  }
  0xe6   :  { %1691 = vmatmul.mubr.bf16.vlgmr.msra.gmra.mxu0 %v12892_v61 }
  0xe7   :  { %1732 = vmatmul.mubr.bf16.vlgmr.msra.gmra.mxu1 %v12892_v61  ;;  %1741 = vmatpush1.bf16.msra.mxu0 %v10910_v55  ;;  %v11000_v55 = vld [vmem:[#allocation2 + $0x304] ss:$72 sps:$4 sm:$0xff]  }
  0xe8   :  { %1782 = vmatpush1.bf16.msra.mxu1 %v10913_v56  ;;  %1742 = vmatprep.subr.bf16.mxu0 %v10918_v57  ;;  %v11003_v56 = vld [vmem:[#allocation2 + $0x30c] ss:$72 sps:$4 sm:$0xff]   ;;  %v10998_v57 = vld [vmem:[#allocation2 + $0x300] ss:$72 sps:$4 sm:$0xff]  }
  0xe9   :  { %1783 = vmatprep.subr.bf16.mxu1 %v10921_v58  ;;  %9734 = vmatprep.mubr.msk.bf16.mxu1 %vm1517_vm1, %v12883_v43  ;;  %v11001_v58 = vld [vmem:[#allocation2 + $0x308] ss:$72 sps:$4 sm:$0xff]  }
  0xea   :  { %9732 = vmatprep.mubr.msk.bf16.mxu0 %vm1517_vm1, %v12883_v43 }
  0xeb   :  { %1743 = vmatpush1.bf16.msra.mxu0 %v10916_v59  ;;  %v11006_v59 = vld [vmem:[#allocation2 + $0x274] ss:$72 sps:$4 sm:$0xff]  }
  0xec   :  { %1784 = vmatpush1.bf16.msra.mxu1 %v10919_v60  ;;  %1744 = vmatprep.subr.bf16.mxu0 %v10924_v62  ;;  %v11009_v60 = vld [vmem:[#allocation2 + $0x27c] ss:$72 sps:$4 sm:$0xff]   ;;  %v11004_v62 = vld [vmem:[#allocation2 + $0x270] ss:$72 sps:$4 sm:$0xff]  }
  0xed   :  { %1785 = vmatprep.subr.bf16.mxu1 %v10927_v63  ;;  %v11007_v63 = vld [vmem:[#allocation2 + $0x278] ss:$72 sps:$4 sm:$0xff]  }
  0xef   :  { %1745 = vmatpush1.bf16.msra.mxu0 %v10922_v0  ;;  %v11012_v0 = vld [vmem:[#allocation2 + $0x1e4] ss:$72 sps:$4 sm:$0xff]  }
  0xf0   :  { %1786 = vmatpush1.bf16.msra.mxu1 %v10925_v1  ;;  %1746 = vmatprep.subr.bf16.mxu0 %v10930_v2  ;;  %v11015_v1 = vld [vmem:[#allocation2 + $0x1ec] ss:$72 sps:$4 sm:$0xff]   ;;  %v11010_v2 = vld [vmem:[#allocation2 + $0x1e0] ss:$72 sps:$4 sm:$0xff]  }
  0xf1   :  { %1787 = vmatprep.subr.bf16.mxu1 %v10933_v3  ;;  %v11013_v3 = vld [vmem:[#allocation2 + $0x1e8] ss:$72 sps:$4 sm:$0xff]  }
  0xf3   :  { %1747 = vmatpush1.bf16.msra.mxu0 %v10928_v4  ;;  %v11018_v4 = vld [vmem:[#allocation2 + $0x154] ss:$72 sps:$4 sm:$0xff]  }
  0xf4   :  { %1788 = vmatpush1.bf16.msra.mxu1 %v10931_v5  ;;  %1748 = vmatprep.subr.bf16.mxu0 %v10936_v6  ;;  %v11021_v5 = vld [vmem:[#allocation2 + $0x15c] ss:$72 sps:$4 sm:$0xff]   ;;  %v11016_v6 = vld [vmem:[#allocation2 + $0x150] ss:$72 sps:$4 sm:$0xff]  }
  0xf5   :  { %1789 = vmatprep.subr.bf16.mxu1 %v10939_v7  ;;  %v11019_v7 = vld [vmem:[#allocation2 + $0x158] ss:$72 sps:$4 sm:$0xff]  }
  0xf7   :  { %1749 = vmatpush1.bf16.msra.mxu0 %v10934_v8  ;;  %v11024_v8 = vld [vmem:[#allocation2 + $0xc4] ss:$72 sps:$4 sm:$0xff]  }
  0xf8   :  { %1790 = vmatpush1.bf16.msra.mxu1 %v10937_v9  ;;  %1750 = vmatprep.subr.bf16.mxu0 %v10942_v10  ;;  %v11027_v9 = vld [vmem:[#allocation2 + $0xcc] ss:$72 sps:$4 sm:$0xff]   ;;  %v11022_v10 = vld [vmem:[#allocation2 + $0xc0] ss:$72 sps:$4 sm:$0xff]  }
  0xf9   :  { %1791 = vmatprep.subr.bf16.mxu1 %v10945_v11  ;;  %v11025_v11 = vld [vmem:[#allocation2 + $0xc8] ss:$72 sps:$4 sm:$0xff]  }
  0xfb   :  { %1751 = vmatpush1.bf16.msra.mxu0 %v10940_v12  ;;  %v11030_v12 = vld [vmem:[#allocation2 + $0x34] ss:$72 sps:$4 sm:$0xff]  }
  0xfc   :  { %1792 = vmatpush1.bf16.msra.mxu1 %v10943_v13  ;;  %1752 = vmatprep.subr.bf16.mxu0 %v10948_v14  ;;  %v11033_v13 = vld [vmem:[#allocation2 + $0x3c] ss:$72 sps:$4 sm:$0xff]   ;;  %v389_v14 = vld [vmem:[#allocation2 + $0x6f0] sm:$0xff] }
  0xfd   :  { %1793 = vmatprep.subr.bf16.mxu1 %v10951_v15  ;;  %v390_v15 = vld [vmem:[#allocation2 + $0x6f8] sm:$0xff]  ;;  %v9717_v20 = vcombine.low %v389_v14, %v389_v14 }
  0xfe   :  { %v9719_v21 = vcombine.low %v390_v15, %v390_v15 }
  0xff   :  { %1753 = vmatpush1.bf16.msra.mxu0 %v10946_v16  ;;  %v11028_v16 = vld [vmem:[#allocation2 + $0x30] ss:$72 sps:$4 sm:$0xff]  }
 0x100   :  { %1794 = vmatpush1.bf16.msra.mxu1 %v10949_v17  ;;  %1754 = vmatprep.subr.bf16.mxu0 %v10954_v18  ;;  %v11031_v17 = vld [vmem:[#allocation2 + $0x38] ss:$72 sps:$4 sm:$0xff]   ;;  %v9718_v18 = vcombine.high %v389_v14, %v389_v14 }
 0x101   :  { %1795 = vmatprep.subr.bf16.mxu1 %v10957_v19  ;;  %v9720_v19 = vcombine.high %v390_v15, %v390_v15  ;;  %v11111_v15 = vld [vmem:[#allocation7 + $0x2d0] ss:$24 sps:$4 sm:$0xff]  }
 0x103   :  { %1755 = vmatpush1.bf16.msra.mxu0 %v10952_v22  ;;  %v11040_v22 = vld [vmem:[#allocation2 + $0x664] ss:$72 sps:$4 sm:$0xff]  }
 0x104   :  { %1796 = vmatpush1.bf16.msra.mxu1 %v10955_v23  ;;  %9731 = vmatprep.subr.msk.bf16.mxu0 %vm1521_vm0, %v9714_v24  ;;  %v1559_v23 = vsel %vm1521_vm0, %v9717_v20, 0  ;;  %v1565_v24 = vsel %vm1521_vm0, %v9719_v21, 0  ;;  %v11117_v20 = vld [vmem:[#allocation2 + $0x674] ss:$72 sps:$4 sm:$0xff]   ;;  %v11120_v21 = vld [vmem:[#allocation7 + $0x2a4] ss:$24 sps:$4 sm:$0xff]  }
 0x105   :  { %9733 = vmatprep.subr.msk.bf16.mxu1 %vm1521_vm0, %v9716_v25  ;;  %v11043_v25 = vld [vmem:[#allocation2 + $0x66c] ss:$72 sps:$4 sm:$0xff]  }
 0x107   :  { %1763 = vmatpush2.bf16.msra.mxu0 %v1547_v29  ;;  %v11049_v29 = vld [vmem:[#allocation2 + $0x5dc] ss:$72 sps:$4 sm:$0xff]  }
 0x108   :  { %1804 = vmatpush2.bf16.msra.mxu1 %v1553_v30  ;;  %1764 = vmatprep.subr.bf16.mxu0 %v10964_v28  ;;  %v11046_v28 = vld [vmem:[#allocation2 + $0x5d4] ss:$72 sps:$4 sm:$0xff]   ;;  %v11044_v30 = vld [vmem:[#allocation2 + $0x5d0] ss:$72 sps:$4 sm:$0xff]  }
 0x109   :  { %1805 = vmatprep.subr.bf16.mxu1 %v10967_v31  ;;  %v11047_v31 = vld [vmem:[#allocation2 + $0x5d8] ss:$72 sps:$4 sm:$0xff]  }
 0x10b   :  { %1765 = vmatpush2.bf16.msra.mxu0 %v10962_v32  ;;  %v11052_v32 = vld [vmem:[#allocation2 + $0x544] ss:$72 sps:$4 sm:$0xff]  }
 0x10c   :  { %1806 = vmatpush2.bf16.msra.mxu1 %v10965_v33  ;;  %1766 = vmatprep.subr.bf16.mxu0 %v10970_v34  ;;  %v11055_v33 = vld [vmem:[#allocation2 + $0x54c] ss:$72 sps:$4 sm:$0xff]   ;;  %v11050_v34 = vld [vmem:[#allocation2 + $0x540] ss:$72 sps:$4 sm:$0xff]  }
 0x10d   :  { %1807 = vmatprep.subr.bf16.mxu1 %v10973_v35  ;;  %v11053_v35 = vld [vmem:[#allocation2 + $0x548] ss:$72 sps:$4 sm:$0xff]  }
 0x10f   :  { %1767 = vmatpush2.bf16.msra.mxu0 %v10968_v36  ;;  %v11058_v36 = vld [vmem:[#allocation2 + $0x4b4] ss:$72 sps:$4 sm:$0xff]  }
 0x110   :  { %1808 = vmatpush2.bf16.msra.mxu1 %v10971_v37  ;;  %1768 = vmatprep.subr.bf16.mxu0 %v10976_v38  ;;  %v11061_v37 = vld [vmem:[#allocation2 + $0x4bc] ss:$72 sps:$4 sm:$0xff]   ;;  %v11056_v38 = vld [vmem:[#allocation2 + $0x4b0] ss:$72 sps:$4 sm:$0xff]  }
 0x111   :  { %1809 = vmatprep.subr.bf16.mxu1 %v10979_v39  ;;  %v11059_v39 = vld [vmem:[#allocation2 + $0x4b8] ss:$72 sps:$4 sm:$0xff]  }
 0x113   :  { %1769 = vmatpush2.bf16.msra.mxu0 %v10974_v40  ;;  %v11064_v40 = vld [vmem:[#allocation2 + $0x434] ss:$72 sps:$4 sm:$0xff]  }
 0x114   :  { %1810 = vmatpush2.bf16.msra.mxu1 %v10977_v41  ;;  %1770 = vmatprep.subr.bf16.mxu0 %v10982_v42  ;;  %v11067_v41 = vld [vmem:[#allocation7 + $0x154] ss:$24 sps:$4 sm:$0xff]  }
 0x115   :  { %1811 = vmatprep.subr.bf16.mxu1 %v10985_v44  ;;  %v11062_v42 = vld [vmem:[#allocation2 + $0x430] ss:$72 sps:$4 sm:$0xff]   ;;  %v11065_v44 = vld [vmem:[#allocation7 + $0x150] ss:$24 sps:$4 sm:$0xff]  }
 0x117   :  { %1771 = vmatpush2.bf16.msra.mxu0 %v10980_v45  ;;  %v11070_v45 = vld [vmem:[#allocation2 + $0x3a4] ss:$72 sps:$4 sm:$0xff]  }
 0x118   :  { %1812 = vmatpush2.bf16.msra.mxu1 %v10983_v46  ;;  %1822 = vmatprep.subr.bf16.mxu0 %v10988_v47  ;;  %v11073_v46 = vld [vmem:[#allocation7 + $0x124] ss:$24 sps:$4 sm:$0xff]  }
 0x119   :  { %1863 = vmatprep.subr.bf16.mxu1 %v10991_v48  ;;  %v11068_v47 = vld [vmem:[#allocation2 + $0x3a0] ss:$72 sps:$4 sm:$0xff]   ;;  %v11071_v48 = vld [vmem:[#allocation7 + $0x120] ss:$24 sps:$4 sm:$0xff]  }
 0x11a   :  { %1773 = vmatmul.mubr.bf16.vlgmr.msra.gmra.mxu0 %v12892_v61 }
 0x11b   :  { %1814 = vmatmul.mubr.bf16.vlgmr.msra.gmra.mxu1 %v12892_v61  ;;  %1823 = vmatpush1.bf16.msra.mxu0 %v10986_v49  ;;  %v11076_v49 = vld [vmem:[#allocation2 + $0x314] ss:$72 sps:$4 sm:$0xff]  }
 0x11c   :  { %1864 = vmatpush1.bf16.msra.mxu1 %v10989_v50  ;;  %1824 = vmatprep.subr.bf16.mxu0 %v10994_v51  ;;  %v11079_v50 = vld [vmem:[#allocation7 + $0xf4] ss:$24 sps:$4 sm:$0xff]  }
 0x11d   :  { %1865 = vmatprep.subr.bf16.mxu1 %v10997_v52  ;;  %9738 = vmatprep.mubr.msk.bf16.mxu1 %vm1517_vm1, %v12883_v43  ;;  %v11074_v51 = vld [vmem:[#allocation2 + $0x310] ss:$72 sps:$4 sm:$0xff]   ;;  %v11077_v52 = vld [vmem:[#allocation7 + $0xf0] ss:$24 sps:$4 sm:$0xff]  }
 0x11e   :  { %9736 = vmatprep.mubr.msk.bf16.mxu0 %vm1517_vm1, %v12883_v43 }
 0x11f   :  { %1825 = vmatpush1.bf16.msra.mxu0 %v10992_v53  ;;  %v11082_v53 = vld [vmem:[#allocation2 + $0x284] ss:$72 sps:$4 sm:$0xff]  }
 0x120   :  { %1866 = vmatpush1.bf16.msra.mxu1 %v10995_v54  ;;  %1826 = vmatprep.subr.bf16.mxu0 %v11000_v55  ;;  %v11085_v54 = vld [vmem:[#allocation7 + $0xc4] ss:$24 sps:$4 sm:$0xff]  }
 0x121   :  { %1867 = vmatprep.subr.bf16.mxu1 %v11003_v56  ;;  %v11080_v55 = vld [vmem:[#allocation2 + $0x280] ss:$72 sps:$4 sm:$0xff]   ;;  %v11083_v56 = vld [vmem:[#allocation7 + $0xc0] ss:$24 sps:$4 sm:$0xff]  }
 0x123   :  { %1827 = vmatpush1.bf16.msra.mxu0 %v10998_v57  ;;  %v11088_v57 = vld [vmem:[#allocation2 + $0x1f4] ss:$72 sps:$4 sm:$0xff]  }
 0x124   :  { %1868 = vmatpush1.bf16.msra.mxu1 %v11001_v58  ;;  %1828 = vmatprep.subr.bf16.mxu0 %v11006_v59  ;;  %v11091_v58 = vld [vmem:[#allocation7 + $0x94] ss:$24 sps:$4 sm:$0xff]  }
 0x125   :  { %1869 = vmatprep.subr.bf16.mxu1 %v11009_v60  ;;  %v11086_v59 = vld [vmem:[#allocation2 + $0x1f0] ss:$72 sps:$4 sm:$0xff]   ;;  %v11094_v60 = vld [vmem:[#allocation2 + $0x164] ss:$72 sps:$4 sm:$0xff]  }
 0x127   :  { %1829 = vmatpush1.bf16.msra.mxu0 %v11004_v62  ;;  %v11097_v62 = vld [vmem:[#allocation7 + $0x64] ss:$24 sps:$4 sm:$0xff]  }
 0x128   :  { %1870 = vmatpush1.bf16.msra.mxu1 %v11007_v63  ;;  %1830 = vmatprep.subr.bf16.mxu0 %v11012_v0  ;;  %v11092_v63 = vld [vmem:[#allocation2 + $0x160] ss:$72 sps:$4 sm:$0xff]   ;;  %v11095_v0 = vld [vmem:[#allocation7 + $0x60] ss:$24 sps:$4 sm:$0xff]  }
 0x129   :  { %1871 = vmatprep.subr.bf16.mxu1 %v11015_v1  ;;  %v11100_v1 = vld [vmem:[#allocation2 + $0xd4] ss:$72 sps:$4 sm:$0xff]  }
 0x12b   :  { %1831 = vmatpush1.bf16.msra.mxu0 %v11010_v2  ;;  %v11103_v2 = vld [vmem:[#allocation7 + $0x34] ss:$24 sps:$4 sm:$0xff]  }
 0x12c   :  { %1872 = vmatpush1.bf16.msra.mxu1 %v11013_v3  ;;  %1832 = vmatprep.subr.bf16.mxu0 %v11018_v4  ;;  %v11098_v3 = vld [vmem:[#allocation2 + $0xd0] ss:$72 sps:$4 sm:$0xff]   ;;  %v11101_v4 = vld [vmem:[#allocation7 + $0x30] ss:$24 sps:$4 sm:$0xff]  }
 0x12d   :  { %1873 = vmatprep.subr.bf16.mxu1 %v11021_v5  ;;  %v11106_v5 = vld [vmem:[#allocation2 + $0x44] ss:$72 sps:$4 sm:$0xff]  }
 0x12f   :  { %1833 = vmatpush1.bf16.msra.mxu0 %v11016_v6  ;;  %v1951_v6 = vlaneseq }
 0x130   :  { %1874 = vmatpush1.bf16.msra.mxu1 %v11019_v7  ;;  %1834 = vmatprep.subr.bf16.mxu0 %v11024_v8  ;;  %v11109_v7 = vld [vmem:[#allocation7 + $0x4] ss:$24 sps:$4 sm:$0xff]   ;;  %v391_v8 = vld [vmem:[#allocation2 + $0x700] sm:$0xff] }
 0x131   :  { %1875 = vmatprep.subr.bf16.mxu1 %v11027_v9  ;;  %v11104_v9 = vld [vmem:[#allocation2 + $0x40] ss:$72 sps:$4 sm:$0xff]   ;;  %v9721_v14 = vcombine.low %v391_v8, %v391_v8 }
 0x133   :  { %1835 = vmatpush1.bf16.msra.mxu0 %v11022_v10  ;;  %v11107_v10 = vld [vmem:[#allocation7] ss:$24 sps:$4 sm:$0xff]  }
 0x134   :  { %1876 = vmatpush1.bf16.msra.mxu1 %v11025_v11  ;;  %1836 = vmatprep.subr.bf16.mxu0 %v11030_v12  ;;  %v12928_v11 = vshrl.u32 %v1951_v6, 7  ;;  %v9722_v12 = vcombine.high %v391_v8, %v391_v8 }
 0x135   :  { %1877 = vmatprep.subr.bf16.mxu1 %v11033_v13  ;;  %v11113_v13 = vld [vmem:[#allocation7 + $0x2d4] ss:$24 sps:$4 sm:$0xff]  }
 0x137   :  { %1837 = vmatpush1.bf16.msra.mxu0 %v11028_v16  ;;  %v12930_v16 = vld [vmem:[#allocation4] sm:$0xff] }
 0x138   :  { %1878 = vmatpush1.bf16.msra.mxu1 %v11031_v17  ;;  %9735 = vmatprep.subr.msk.bf16.mxu0 %vm1521_vm0, %v9718_v18  ;;  %v12933_v17 = vsub.s32 2, %v12928_v11  ;;  %v1571_v18 = vsel %vm1521_vm0, %v9721_v14, 0  ;;  %v11156_v14 = vld [vmem:[#allocation7 + $0x3f4] ss:$24 sps:$4 sm:$0xff]  }
 0x139   :  { %9737 = vmatprep.subr.msk.bf16.mxu1 %vm1521_vm0, %v9720_v19  ;;  %v12937_v19 = vld [vmem:[#allocation6] sm:$0xff] }
 0x13b   :  { %1845 = vmatpush2.bf16.msra.mxu0 %v1559_v23  ;;  %v12943_v23 = vsub.s32 3, %v12928_v11 }
 0x13c   :  { %1886 = vmatpush2.bf16.msra.mxu1 %v1565_v24  ;;  %1846 = vmatprep.subr.bf16.mxu0 %v11040_v22  ;;  %v12940_v22 = vsub.s32 1, %v12928_v11  ;;  %v1962_v24 = vrot.slane %v12930_v16, %v12933_v17 }
 0x13d   :  { %1887 = vmatprep.subr.bf16.mxu1 %v11043_v25  ;;  %v11115_v25 = vld [vmem:[#allocation2 + $0x670] ss:$72 sps:$4 sm:$0xff]  }
 0x13f   :  { %1847 = vmatpush2.bf16.msra.mxu0 %v11038_v26  ;;  %v11118_v26 = vld [vmem:[#allocation7 + $0x2a0] ss:$24 sps:$4 sm:$0xff]  }
 0x140   :  { %1888 = vmatpush2.bf16.msra.mxu1 %v11041_v27  ;;  %1848 = vmatprep.subr.bf16.mxu0 %v11046_v28  ;;  %v11123_v27 = vld [vmem:[#allocation2 + $0x5e4] ss:$72 sps:$4 sm:$0xff]   ;;  %v11126_v28 = vld [vmem:[#allocation7 + $0x274] ss:$24 sps:$4 sm:$0xff]  }
 0x141   :  { %1889 = vmatprep.subr.bf16.mxu1 %v11049_v29  ;;  %v2076_v29 = vrot.slane %v12937_v19, %v12933_v17 }
 0x143   :  { %1849 = vmatpush2.bf16.msra.mxu0 %v11044_v30  ;;  %v1958_v30 = vrot.slane %v12930_v16, %v12940_v22 }
 0x144   :  { %1890 = vmatpush2.bf16.msra.mxu1 %v11047_v31  ;;  %1850 = vmatprep.subr.bf16.mxu0 %v11052_v32  ;;  %v1966_v32 = vrot.slane %v12930_v16, %v12943_v23 }
 0x145   :  { %1891 = vmatprep.subr.bf16.mxu1 %v11055_v33 }
 0x147   :  { %1851 = vmatpush2.bf16.msra.mxu0 %v11050_v34 }
 0x148   :  { %1892 = vmatpush2.bf16.msra.mxu1 %v11053_v35  ;;  %1852 = vmatprep.subr.bf16.mxu0 %v11058_v36  ;;  %v11121_v35 = vld [vmem:[#allocation2 + $0x5e0] ss:$72 sps:$4 sm:$0xff]   ;;  %v11124_v36 = vld [vmem:[#allocation7 + $0x270] ss:$24 sps:$4 sm:$0xff]  }
 0x149   :  { %1893 = vmatprep.subr.bf16.mxu1 %v11061_v37  ;;  %v2072_v37 = vrot.slane %v12937_v19, %v12940_v22 }
 0x14b   :  { %1853 = vmatpush2.bf16.msra.mxu0 %v11056_v38 }
 0x14c   :  { %1894 = vmatpush2.bf16.msra.mxu1 %v11059_v39  ;;  %1904 = vmatprep.subr.bf16.mxu0 %v11064_v40  ;;  %v11129_v40 = vld [vmem:[#allocation2 + $0x554] ss:$72 sps:$4 sm:$0xff]  }
 0x14d   :  { %7393 = vmatprep.subr.bf16.mxu1 %v11067_v41  ;;  %v11132_v41 = vld [vmem:[#allocation7 + $0x244] ss:$24 sps:$4 sm:$0xff]  }
 0x14e   :  { %1855 = vmatmul.mubr.bf16.vlgmr.msra.gmra.mxu0 %v12892_v61 }
 0x14f   :  { %1896 = vmatmul.mubr.bf16.vlgmr.msra.gmra.mxu1 %v12892_v61  ;;  %1905 = vmatpush1.bf16.msra.mxu0 %v11062_v42 }
 0x150   :  { %7394 = vmatpush1.bf16.msra.mxu1 %v11065_v44  ;;  %1906 = vmatprep.subr.bf16.mxu0 %v11070_v45 }
 0x151   :  { %7395 = vmatprep.subr.bf16.mxu1 %v11073_v46  ;;  %9740 = vmatprep.mubr.msk.bf16.mxu0 %vm1517_vm1, %v12883_v43  ;;  %v11089_v43 = vld [vmem:[#allocation7 + $0x90] ss:$24 sps:$4 sm:$0xff]   ;;  %v2080_v46 = vrot.slane %v12937_v19, %v12943_v23 }
 0x153   :  { %1907 = vmatpush1.bf16.msra.mxu0 %v11068_v47 }
 0x154   :  { %7396 = vmatpush1.bf16.msra.mxu1 %v11071_v48  ;;  %1908 = vmatprep.subr.bf16.mxu0 %v11076_v49 }
 0x155   :  { %7397 = vmatprep.subr.bf16.mxu1 %v11079_v50  ;;  %v11127_v50 = vld [vmem:[#allocation2 + $0x550] ss:$72 sps:$4 sm:$0xff]  }
 0x157   :  { %1909 = vmatpush1.bf16.msra.mxu0 %v11074_v51  ;;  %v11130_v51 = vld [vmem:[#allocation7 + $0x240] ss:$24 sps:$4 sm:$0xff]  }
 0x158   :  { %7398 = vmatpush1.bf16.msra.mxu1 %v11077_v52  ;;  %1910 = vmatprep.subr.bf16.mxu0 %v11082_v53  ;;  %v12960_v52 = vsub.s32 0, %v12928_v11 }
 0x159   :  { %7399 = vmatprep.subr.bf16.mxu1 %v11085_v54 }
 0x15a   :  { %v2068_v6 = vrot.slane %v12937_v19, %v12960_v52 }
 0x15b   :  { %1911 = vmatpush1.bf16.msra.mxu0 %v11080_v55  ;;  %v11135_v55 = vld [vmem:[#allocation2 + $0x4c4] ss:$72 sps:$4 sm:$0xff]  }
 0x15c   :  { %7400 = vmatpush1.bf16.msra.mxu1 %v11083_v56  ;;  %1912 = vmatprep.subr.bf16.mxu0 %v11088_v57  ;;  %v11138_v56 = vld [vmem:[#allocation7 + $0x214] ss:$24 sps:$4 sm:$0xff]  }
 0x15d   :  { %7401 = vmatprep.subr.bf16.mxu1 %v11091_v58 }
 0x15f   :  { %1913 = vmatpush1.bf16.msra.mxu0 %v11086_v59 }
 0x160   :  { %7402 = vmatpush1.bf16.msra.mxu1 %v11089_v43  ;;  %1914 = vmatprep.subr.bf16.mxu0 %v11094_v60  ;;  %v11133_v43 = vld [vmem:[#allocation2 + $0x4c0] ss:$72 sps:$4 sm:$0xff]   ;;  %v11136_v60 = vld [vmem:[#allocation7 + $0x210] ss:$24 sps:$4 sm:$0xff]  }
 0x161   :  { %7403 = vmatprep.subr.bf16.mxu1 %v11097_v62  ;;  %v1954_v62 = vrot.slane %v12930_v16, %v12960_v52 }
 0x163   :  { %1915 = vmatpush1.bf16.msra.mxu0 %v11092_v63  ;;  %v11141_v63 = vld [vmem:[#allocation7 + $0x1e4] ss:$24 sps:$4 sm:$0xff]  }
 0x164   :  { %7404 = vmatpush1.bf16.msra.mxu1 %v11095_v0  ;;  %1916 = vmatprep.subr.bf16.mxu0 %v11100_v1  ;;  %v11144_v0 = vld [vmem:[#allocation7 + $0x454] ss:$24 sps:$4 sm:$0xff]   ;;  %v11139_v1 = vld [vmem:[#allocation7 + $0x1e0] ss:$24 sps:$4 sm:$0xff]  }
 0x165   :  { %7405 = vmatprep.subr.bf16.mxu1 %v11103_v2  ;;  %v11142_v2 = vld [vmem:[#allocation7 + $0x450] ss:$24 sps:$4 sm:$0xff]  }
 0x167   :  { %1917 = vmatpush1.bf16.msra.mxu0 %v11098_v3 }
 0x168   :  { %7406 = vmatpush1.bf16.msra.mxu1 %v11101_v4  ;;  %1918 = vmatprep.subr.bf16.mxu0 %v11106_v5  ;;  %v11147_v4 = vld [vmem:[#allocation7 + $0x1b4] ss:$24 sps:$4 sm:$0xff]  }
 0x169   :  { %7407 = vmatprep.subr.bf16.mxu1 %v11109_v7  ;;  %v11150_v7 = vld [vmem:[#allocation7 + $0x424] ss:$24 sps:$4 sm:$0xff]  }
 0x16b   :  { %1919 = vmatpush1.bf16.msra.mxu0 %v11104_v9  ;;  %v11145_v9 = vld [vmem:[#allocation7 + $0x1b0] ss:$24 sps:$4 sm:$0xff]  }
 0x16c   :  { %7408 = vmatpush1.bf16.msra.mxu1 %v11107_v10  ;;  %9739 = vmatprep.subr.msk.bf16.mxu0 %vm1521_vm0, %v9722_v12  ;;  %v11148_v10 = vld [vmem:[#allocation7 + $0x420] ss:$24 sps:$4 sm:$0xff]  }
 0x16d   :  { %7409 = vmatprep.subr.bf16.mxu1 %v11113_v13  ;;  %v11153_v13 = vld [vmem:[#allocation7 + $0x184] ss:$24 sps:$4 sm:$0xff]  }
 0x16f   :  { %1927 = vmatpush2.bf16.msra.mxu0 %v1571_v18  ;;  %v11154_v18 = vld [vmem:[#allocation7 + $0x3f0] ss:$24 sps:$4 sm:$0xff]  }
 0x170   :  { %7410 = vmatpush2.bf16.msra.mxu1 %v11111_v15  ;;  %1928 = vmatprep.subr.bf16.mxu0 %v11117_v20  ;;  %v11151_v15 = vld [vmem:[#allocation7 + $0x180] ss:$24 sps:$4 sm:$0xff]  }
 0x171   :  { %7411 = vmatprep.subr.bf16.mxu1 %v11120_v21  ;;  %v11159_v21 = vld [vmem:[#allocation7 + $0x3c4] ss:$24 sps:$4 sm:$0xff]  }
 0x172   :  { %v1610_v33 = vpop.f32.mrf.mxu0 }
 0x173   :  { %v1651_v31 = vpop.f32.mrf.mxu1  ;;  %1929 = vmatpush2.bf16.msra.mxu0 %v11115_v25  ;;  %v2041_v5 = vmul.f32 %v1954_v62, %v1610_v33  ;;  %v11160_v25 = vld [vmem:[#allocation7 + $0x750] ss:$24 sps:$4 sm:$0xff]   ;;  %v11169_v33 = vld [vmem:[#allocation7 + $0x360] ss:$24 sps:$4 sm:$0xff]   ;;  %v11204_v62 = vld [vmem:[#allocation7 + $0x604] ss:$24 sps:$4 sm:$0xff]  }
 0x174   :  { %v2043_v34 = vmul.f32 %v1962_v24, %v1651_v31  ;;  %7412 = vmatpush2.bf16.msra.mxu1 %v11118_v26  ;;  %1930 = vmatprep.subr.bf16.mxu0 %v11123_v27  ;;  %v1612_v39 = vpop.f32.mrf.mxu0  ;;  %v11157_v24 = vld [vmem:[#allocation7 + $0x3c0] ss:$24 sps:$4 sm:$0xff]   ;;  %v11165_v26 = vld [vmem:[#allocation7 + $0x394] ss:$24 sps:$4 sm:$0xff]   ;;  %v11168_v27 = vld [vmem:[#allocation7 + $0x724] ss:$24 sps:$4 sm:$0xff]  }
 0x175   :  { %v1653_v38 = vpop.f32.mrf.mxu1  ;;  %7413 = vmatprep.subr.bf16.mxu1 %v11126_v28  ;;  %v2042_v44 = vmul.f32 %v1958_v30, %v1612_v39  ;;  %v2155_v12 = vadd.f32 %v2068_v6, %v2041_v5  ;;  %v11166_v30 = vld [vmem:[#allocation7 + $0x720] ss:$24 sps:$4 sm:$0xff]   ;;  %v11171_v31 = vld [vmem:[#allocation7 + $0x364] ss:$24 sps:$4 sm:$0xff]   ;;  %v11199_v6 = vld [vmem:[#allocation7 + $0x570] ss:$24 sps:$4 sm:$0xff]  }
 0x176   :  { %v12955_v42 = vadd.f32 %v2076_v29, %v2043_v34  ;;  %v2044_v45 = vmul.f32 %v1966_v32, %v1653_v38  ;;  %v1614_v48 = vpop.f32.mrf.mxu0  ;;  %v11163_v29 = vld [vmem:[#allocation7 + $0x390] ss:$24 sps:$4 sm:$0xff]   ;;  %v11174_v32 = vld [vmem:[#allocation7 + $0x6f4] ss:$24 sps:$4 sm:$0xff]   ;;  %v11178_v38 = vld [vmem:[#allocation7 + $0x6c0] ss:$24 sps:$4 sm:$0xff]  }
 0x177   :  { %v1655_v47 = vpop.f32.mrf.mxu1  ;;  %1931 = vmatpush2.bf16.msra.mxu0 %v11121_v35  ;;  %v2156_v49 = vadd.f32 %v2072_v37, %v2042_v44  ;;  %v2173_v20 = vmax.f32 %v2155_v12, 0.0  ;;  %v11172_v34 = vld [vmem:[#allocation7 + $0x6f0] ss:$24 sps:$4 sm:$0xff]   ;;  %v11177_v35 = vld [vmem:[#allocation7 + $0x334] ss:$24 sps:$4 sm:$0xff]  }
 0x178   :  { %7414 = vmatpush2.bf16.msra.mxu1 %v11124_v36  ;;  %1932 = vmatprep.subr.bf16.mxu0 %v11129_v40  ;;  %v1615_v54 = vpop.f32.mrf.mxu0  ;;  %v2158_v58 = vadd.f32 %v2080_v46, %v2044_v45  ;;  %v11180_v36 = vld [vmem:[#allocation7 + $0x6c4] ss:$24 sps:$4 sm:$0xff]   ;;  %v11175_v37 = vld [vmem:[#allocation7 + $0x330] ss:$24 sps:$4 sm:$0xff]   ;;  %v11186_v40 = vld [vmem:[#allocation7 + $0x694] ss:$24 sps:$4 sm:$0xff]  }
 0x179   :  { %v1656_v53 = vpop.f32.mrf.mxu1  ;;  %7415 = vmatprep.subr.bf16.mxu1 %v11132_v41  ;;  %v2174_v57 = vmax.f32 %v2156_v49, 0.0  ;;  %v12973_v28 = vpack.c.bf16 %v2173_v20, %v2173_v20  ;;  %v11183_v39 = vld [vmem:[#allocation7 + $0x304] ss:$24 sps:$4 sm:$0xff]   ;;  %v11181_v41 = vld [vmem:[#allocation7 + $0x300] ss:$24 sps:$4 sm:$0xff]   ;;  %v12977_v47 = vsub.s32 6, %v12928_v11 }
 0x17a   :  { %v2176_v3 = vmax.f32 %v2158_v58, 0.0  ;;  %v11184_v44 = vld [vmem:[#allocation7 + $0x690] ss:$24 sps:$4 sm:$0xff]   ;;  %v11189_v45 = vld [vmem:[#allocation7 + $0x5d4] ss:$24 sps:$4 sm:$0xff]   ;;  %v12983_v54 = vsub.s32 7, %v12928_v11 }
 0x17b   :  { %v12962_v59 = vpack.c.bf16 %v2174_v57, %v2174_v57  ;;  %1933 = vmatpush2.bf16.msra.mxu0 %v11127_v50  ;;  %v11192_v46 = vld [vmem:[#allocation7 + $0x664] ss:$24 sps:$4 sm:$0xff]   ;;  %v11187_v48 = vld [vmem:[#allocation7 + $0x5d0] ss:$24 sps:$4 sm:$0xff]   ;;  %v11190_v49 = vld [vmem:[#allocation7 + $0x660] ss:$24 sps:$4 sm:$0xff]  }
 0x17c   :  { %7416 = vmatpush2.bf16.msra.mxu1 %v11130_v51  ;;  %1934 = vmatprep.subr.bf16.mxu0 %v11135_v55  ;;  %v12969_v8 = vpack.c.bf16 %v2176_v3, %v2176_v3  ;;  %v12980_v50 = vsub.s32 4, %v12928_v11  ;;  %v11195_v51 = vld [vmem:[#allocation7 + $0x5a4] ss:$24 sps:$4 sm:$0xff]   ;;  %v11198_v53 = vld [vmem:[#allocation7 + $0x634] ss:$24 sps:$4 sm:$0xff]   ;;  %v12986_v55 = vsub.s32 5, %v12928_v11  ;;  %v1982_v11 = vrot.slane %v12930_v16, %v12983_v54 }
 0x17d   :  { %7417 = vmatprep.subr.bf16.mxu1 %v11138_v56  ;;  %7425 = vmatprep.mubr.bf16.mxu1 %v12962_v59  ;;  %v1978_v56 = vrot.slane %v12930_v16, %v12977_v47  ;;  %v11193_v57 = vld [vmem:[#allocation7 + $0x5a0] ss:$24 sps:$4 sm:$0xff]   ;;  %v11196_v58 = vld [vmem:[#allocation7 + $0x630] ss:$24 sps:$4 sm:$0xff]   ;;  %v2096_v3 = vrot.slane %v12937_v19, %v12983_v54 }
 0x17f   :  { %1935 = vmatpush2.bf16.msra.mxu0 %v11133_v43  ;;  %v1970_v43 = vrot.slane %v12930_v16, %v12980_v50 }
 0x180   :  { %7418 = vmatpush2.bf16.msra.mxu1 %v11136_v60  ;;  %7434 = vmatprep.subr.bf16.mxu0 %v11144_v0  ;;  %v11201_v60 = vld [vmem:[#allocation7 + $0x574] ss:$24 sps:$4 sm:$0xff]   ;;  %v2084_v0 = vrot.slane %v12937_v19, %v12980_v50 }
 0x181   :  { %7419 = vmatprep.subr.bf16.mxu1 %v11141_v63  ;;  %v2092_v63 = vrot.slane %v12937_v19, %v12977_v47 }
 0x182   :  { %1937 = vmatmul.mubr.bf16.vlgmr.msra.gmra.mxu0 %v12892_v61  ;;  %v11162_v61 = vld [vmem:[#allocation7 + $0x754] ss:$24 sps:$4 sm:$0xff]  }
 0x183   :  { %7435 = vmatpush1.bf16.msra.mxu0 %v11142_v2  ;;  %7466 = vmatprep.mubr.bf16.mxu0 %v12969_v8 }
 0x184   :  { %7420 = vmatpush2.bf16.msra.mxu1 %v11139_v1  ;;  %7436 = vmatprep.subr.bf16.mxu0 %v11150_v7  ;;  %v1974_v1 = vrot.slane %v12930_v16, %v12986_v55  ;;  %v11202_v7 = vld [vmem:[#allocation7 + $0x600] ss:$24 sps:$4 sm:$0xff]   ;;  %v11210_v16 = vld [vmem:[#allocation7 + $0x8d4] ss:$24 sps:$4 sm:$0xff]  }
 0x185   :  { %7421 = vmatprep.subr.bf16.mxu1 %v11147_v4 }
 0x187   :  { %7437 = vmatpush1.bf16.msra.mxu0 %v11148_v10  ;;  %v2088_v10 = vrot.slane %v12937_v19, %v12986_v55  ;;  %v11208_v19 = vld [vmem:[#allocation7 + $0x8d0] ss:$24 sps:$4 sm:$0xff]  }
 0x188   :  { %7422 = vmatpush2.bf16.msra.mxu1 %v11145_v9  ;;  %7438 = vmatprep.subr.bf16.mxu0 %v11156_v14  ;;  %v11207_v14 = vld [vmem:[#allocation7 + $0x544] ss:$24 sps:$4 sm:$0xff]  }
 0x189   :  { %7423 = vmatprep.subr.bf16.mxu1 %v11153_v13 }
 0x18b   :  { %7439 = vmatpush1.bf16.msra.mxu0 %v11154_v18 }
 0x18c   :  { %7424 = vmatpush2.bf16.msra.mxu1 %v11151_v15  ;;  %7440 = vmatprep.subr.bf16.mxu0 %v11159_v21 }
 0x18d   :  { %7475 = vmatprep.subr.bf16.mxu1 %v11162_v61 }
 0x18f   :  { %7426 = vmatmul.mubr.bf16.vlgmr.msra.gmra.mxu1 %v12973_v28  ;;  %7441 = vmatpush1.bf16.msra.mxu0 %v11157_v24 }
 0x190   :  { %7476 = vmatpush1.bf16.msra.mxu1 %v11160_v25  ;;  %7442 = vmatprep.subr.bf16.mxu0 %v11165_v26 }
 0x191   :  { %7477 = vmatprep.subr.bf16.mxu1 %v11168_v27  ;;  %v11205_v27 = vld [vmem:[#allocation7 + $0x540] ss:$24 sps:$4 sm:$0xff]  }
 0x193   :  { %7443 = vmatpush1.bf16.msra.mxu0 %v11163_v29 }
 0x194   :  { %7478 = vmatpush1.bf16.msra.mxu1 %v11166_v30  ;;  %7444 = vmatprep.subr.bf16.mxu0 %v11171_v31  ;;  %v11213_v31 = vld [vmem:[#allocation7 + $0x514] ss:$24 sps:$4 sm:$0xff]  }
 0x195   :  { %7479 = vmatprep.subr.bf16.mxu1 %v11174_v32  ;;  %v11216_v32 = vld [vmem:[#allocation7 + $0x8a4] ss:$24 sps:$4 sm:$0xff]  }
 0x197   :  { %7445 = vmatpush1.bf16.msra.mxu0 %v11169_v33 }
 0x198   :  { %7480 = vmatpush1.bf16.msra.mxu1 %v11172_v34  ;;  %7446 = vmatprep.subr.bf16.mxu0 %v11177_v35  ;;  %v11211_v35 = vld [vmem:[#allocation7 + $0x510] ss:$24 sps:$4 sm:$0xff]  }
 0x199   :  { %7481 = vmatprep.subr.bf16.mxu1 %v11180_v36  ;;  %v11214_v36 = vld [vmem:[#allocation7 + $0x8a0] ss:$24 sps:$4 sm:$0xff]  }
 0x19b   :  { %7447 = vmatpush1.bf16.msra.mxu0 %v11175_v37  ;;  %v11219_v37 = vld [vmem:[#allocation7 + $0x4e4] ss:$24 sps:$4 sm:$0xff]  }
 0x19c   :  { %7482 = vmatpush1.bf16.msra.mxu1 %v11178_v38  ;;  %7448 = vmatprep.subr.bf16.mxu0 %v11183_v39  ;;  %v11222_v38 = vld [vmem:[#allocation7 + $0x874] ss:$24 sps:$4 sm:$0xff]   ;;  %v11217_v39 = vld [vmem:[#allocation7 + $0x4e0] ss:$24 sps:$4 sm:$0xff]  }
 0x19d   :  { %7483 = vmatprep.subr.bf16.mxu1 %v11186_v40  ;;  %v11220_v40 = vld [vmem:[#allocation7 + $0x870] ss:$24 sps:$4 sm:$0xff]  }
 0x19f   :  { %7449 = vmatpush1.bf16.msra.mxu0 %v11181_v41  ;;  %v11225_v41 = vld [vmem:[#allocation7 + $0x4b4] ss:$24 sps:$4 sm:$0xff]  }
 0x1a0   :  { %7484 = vmatpush1.bf16.msra.mxu1 %v11184_v44  ;;  %7450 = vmatprep.subr.bf16.mxu0 %v11189_v45  ;;  %v11228_v44 = vld [vmem:[#allocation7 + $0x844] ss:$24 sps:$4 sm:$0xff]   ;;  %v11223_v45 = vld [vmem:[#allocation7 + $0x4b0] ss:$24 sps:$4 sm:$0xff]  }
 0x1a1   :  { %7485 = vmatprep.subr.bf16.mxu1 %v11192_v46  ;;  %v11226_v46 = vld [vmem:[#allocation7 + $0x840] ss:$24 sps:$4 sm:$0xff]  }
 0x1a3   :  { %7451 = vmatpush2.bf16.msra.mxu0 %v11187_v48  ;;  %v11231_v48 = vld [vmem:[#allocation7 + $0x484] ss:$24 sps:$4 sm:$0xff]  }
 0x1a4   :  { %7486 = vmatpush1.bf16.msra.mxu1 %v11190_v49  ;;  %7452 = vmatprep.subr.bf16.mxu0 %v11195_v51  ;;  %v11234_v49 = vld [vmem:[#allocation7 + $0x814] ss:$24 sps:$4 sm:$0xff]   ;;  %v11229_v51 = vld [vmem:[#allocation7 + $0x480] ss:$24 sps:$4 sm:$0xff]  }
 0x1a5   :  { %7487 = vmatprep.subr.bf16.mxu1 %v11198_v53  ;;  %v11232_v53 = vld [vmem:[#allocation7 + $0x810] ss:$24 sps:$4 sm:$0xff]  }
 0x1a6   :  { %v1692_v4 = vpop.f32.mrf.mxu0 }
 0x1a7   :  { %v1733_v2 = vpop.f32.mrf.mxu1  ;;  %7453 = vmatpush2.bf16.msra.mxu0 %v11193_v57  ;;  %v2045_v9 = vmul.f32 %v1970_v43, %v1692_v4  ;;  %v11237_v57 = vld [vmem:[#allocation7 + $0x7e4] ss:$24 sps:$4 sm:$0xff]   ;;  %v11235_v43 = vld [vmem:[#allocation7 + $0x7e0] ss:$24 sps:$4 sm:$0xff]   ;;  %v11252_v4 = vld [vmem:[#allocation7 + $0x9f4] ss:$24 sps:$4 sm:$0xff]  }
 0x1a8   :  { %v2047_v5 = vmul.f32 %v1978_v56, %v1733_v2  ;;  %7488 = vmatpush1.bf16.msra.mxu1 %v11196_v58  ;;  %7454 = vmatprep.subr.bf16.mxu0 %v11201_v60  ;;  %v1694_v13 = vpop.f32.mrf.mxu0  ;;  %v2175_v56 = vmax.f32 %v12955_v42, 0.0  ;;  %v11240_v58 = vld [vmem:[#allocation7 + $0xa54] ss:$24 sps:$4 sm:$0xff]   ;;  %v11238_v60 = vld [vmem:[#allocation7 + $0xa50] ss:$24 sps:$4 sm:$0xff]  }
 0x1a9   :  { %v1735_v12 = vpop.f32.mrf.mxu1  ;;  %7489 = vmatprep.subr.bf16.mxu1 %v11204_v62  ;;  %v13006_v20 = vadd.f32 %v2084_v0, %v2045_v9  ;;  %v2046_v21 = vmul.f32 %v1974_v1, %v1694_v13  ;;  %v11246_v0 = vld [vmem:[#allocation7 + $0xa24] ss:$24 sps:$4 sm:$0xff]   ;;  %v11241_v42 = vld [vmem:[#allocation7 + $0x7b0] ss:$24 sps:$4 sm:$0xff]   ;;  %v11244_v2 = vld [vmem:[#allocation7 + $0xa20] ss:$24 sps:$4 sm:$0xff]  }
 0x1aa   :  { %v13004_v15 = vadd.f32 %v2092_v63, %v2047_v5  ;;  %v2048_v18 = vmul.f32 %v1982_v11, %v1735_v12  ;;  %v1696_v24 = vpop.f32.mrf.mxu0  ;;  %v11243_v63 = vld [vmem:[#allocation7 + $0x7b4] ss:$24 sps:$4 sm:$0xff]   ;;  %v13012_v11 = vpack.c.bf16 %v2175_v56, %v2175_v56  ;;  %v11247_v5 = vld [vmem:[#allocation7 + $0x780] ss:$24 sps:$4 sm:$0xff]   ;;  %v11256_v13 = vld [vmem:[#allocation7 + $0xd50] ss:$24 sps:$4 sm:$0xff]  }
 0x1ab   :  { %v1737_v61 = vpop.f32.mrf.mxu1  ;;  %7455 = vmatpush2.bf16.msra.mxu0 %v11199_v6  ;;  %v2160_v26 = vadd.f32 %v2088_v10, %v2046_v21  ;;  %v11250_v6 = vld [vmem:[#allocation7 + $0x9f0] ss:$24 sps:$4 sm:$0xff]   ;;  %v11258_v9 = vld [vmem:[#allocation7 + $0xd54] ss:$24 sps:$4 sm:$0xff]   ;;  %v2177_v10 = vmax.f32 %v13006_v20, 0.0 }
 0x1ac   :  { %v2162_v25 = vadd.f32 %v2096_v3, %v2048_v18  ;;  %7490 = vmatpush1.bf16.msra.mxu1 %v11202_v7  ;;  %7456 = vmatprep.subr.bf16.mxu0 %v11207_v14  ;;  %v1697_v30 = vpop.f32.mrf.mxu0  ;;  %v11249_v3 = vld [vmem:[#allocation7 + $0x784] ss:$24 sps:$4 sm:$0xff]   ;;  %v11253_v12 = vld [vmem:[#allocation7 + $0x9c0] ss:$24 sps:$4 sm:$0xff]   ;;  %v11261_v14 = vld [vmem:[#allocation7 + $0x994] ss:$24 sps:$4 sm:$0xff]  }
 0x1ad   :  { %v1738_v29 = vpop.f32.mrf.mxu1  ;;  %7491 = vmatprep.subr.bf16.mxu1 %v11210_v16  ;;  %v2178_v33 = vmax.f32 %v2160_v26, 0.0  ;;  %v11255_v7 = vld [vmem:[#allocation7 + $0x9c4] ss:$24 sps:$4 sm:$0xff]   ;;  %v13019_v18 = vpack.c.bf16 %v2177_v10, %v2177_v10  ;;  %v11259_v21 = vld [vmem:[#allocation7 + $0x990] ss:$24 sps:$4 sm:$0xff]  }
 0x1ae   :  { %v2180_v62 = vmax.f32 %v2162_v25, 0.0  ;;  %v11264_v16 = vld [vmem:[#allocation7 + $0xd24] ss:$24 sps:$4 sm:$0xff]   ;;  %v11262_v61 = vld [vmem:[#allocation7 + $0xd20] ss:$24 sps:$4 sm:$0xff]  }
 0x1af   :  { %v13008_v34 = vpack.c.bf16 %v2178_v33, %v2178_v33  ;;  %7457 = vmatpush2.bf16.msra.mxu0 %v11205_v27  ;;  %v11267_v24 = vld [vmem:[#allocation7 + $0x964] ss:$24 sps:$4 sm:$0xff]   ;;  %v11270_v25 = vld [vmem:[#allocation7 + $0xcf4] ss:$24 sps:$4 sm:$0xff]   ;;  %v11265_v20 = vld [vmem:[#allocation7 + $0x960] ss:$24 sps:$4 sm:$0xff]  }
 0x1b0   :  { %7492 = vmatpush2.bf16.msra.mxu1 %v11208_v19  ;;  %7458 = vmatprep.subr.bf16.mxu0 %v11213_v31  ;;  %v13014_v1 = vpack.c.bf16 %v2180_v62, %v2180_v62  ;;  %v11268_v26 = vld [vmem:[#allocation7 + $0xcf0] ss:$24 sps:$4 sm:$0xff]   ;;  %v11273_v19 = vld [vmem:[#allocation7 + $0x934] ss:$24 sps:$4 sm:$0xff]   ;;  %v11276_v29 = vld [vmem:[#allocation7 + $0xcc4] ss:$24 sps:$4 sm:$0xff]  }
 0x1b1   :  { %7493 = vmatprep.subr.bf16.mxu1 %v11216_v32  ;;  %7507 = vmatprep.mubr.bf16.mxu1 %v13008_v34  ;;  %v13022_v27 = vld [vmem:[#allocation4 + $0x8] sm:$0xff]  ;;  %v13024_v30 = vld [vmem:[#allocation6 + $0x8] sm:$0xff] }
 0x1b2   :  { %v1994_v31 = vrot.slane %v13022_v27, %v12933_v17  ;;  %v11271_v32 = vld [vmem:[#allocation7 + $0x930] ss:$24 sps:$4 sm:$0xff]   ;;  %v11274_v33 = vld [vmem:[#allocation7 + $0xcc0] ss:$24 sps:$4 sm:$0xff]   ;;  %v11300_v10 = vld [vmem:[#allocation7 + $0xc04] ss:$24 sps:$4 sm:$0xff]  }
 0x1b3   :  { %7459 = vmatpush2.bf16.msra.mxu0 %v11211_v35  ;;  %v11279_v35 = vld [vmem:[#allocation7 + $0x904] ss:$24 sps:$4 sm:$0xff]   ;;  %v11283_v62 = vld [vmem:[#allocation7 + $0xbd0] ss:$24 sps:$4 sm:$0xff]  }
 0x1b4   :  { %7494 = vmatpush2.bf16.msra.mxu1 %v11214_v36  ;;  %7460 = vmatprep.subr.bf16.mxu0 %v11219_v37  ;;  %v11282_v36 = vld [vmem:[#allocation7 + $0xc94] ss:$24 sps:$4 sm:$0xff]   ;;  %v2108_v37 = vrot.slane %v13024_v30, %v12933_v17 }
 0x1b5   :  { %7495 = vmatprep.subr.bf16.mxu1 %v11222_v38  ;;  %v1990_v38 = vrot.slane %v13022_v27, %v12940_v22 }
 0x1b7   :  { %7461 = vmatpush2.bf16.msra.mxu0 %v11217_v39 }
 0x1b8   :  { %7496 = vmatpush2.bf16.msra.mxu1 %v11220_v40  ;;  %7462 = vmatprep.subr.bf16.mxu0 %v11225_v41 }
 0x1b9   :  { %7497 = vmatprep.subr.bf16.mxu1 %v11228_v44  ;;  %v11277_v44 = vld [vmem:[#allocation7 + $0x900] ss:$24 sps:$4 sm:$0xff]  }
 0x1bb   :  { %7463 = vmatpush2.bf16.msra.mxu0 %v11223_v45  ;;  %v11280_v45 = vld [vmem:[#allocation7 + $0xc90] ss:$24 sps:$4 sm:$0xff]  }
 0x1bc   :  { %7498 = vmatpush2.bf16.msra.mxu1 %v11226_v46  ;;  %7464 = vmatprep.subr.bf16.mxu0 %v11231_v48  ;;  %v2104_v46 = vrot.slane %v13024_v30, %v12940_v22 }
 0x1bd   :  { %7499 = vmatprep.subr.bf16.mxu1 %v11234_v49 }
 0x1bf   :  { %7465 = vmatpush2.bf16.msra.mxu0 %v11229_v51  ;;  %v11285_v51 = vld [vmem:[#allocation7 + $0xbd4] ss:$24 sps:$4 sm:$0xff]  }
 0x1c0   :  { %7500 = vmatpush2.bf16.msra.mxu1 %v11232_v53  ;;  %7516 = vmatprep.subr.bf16.mxu0 %v11240_v58  ;;  %v11288_v53 = vld [vmem:[#allocation7 + $0xc64] ss:$24 sps:$4 sm:$0xff]  }
 0x1c1   :  { %7501 = vmatprep.subr.bf16.mxu1 %v11237_v57 }
 0x1c2   :  { %7467 = vmatmul.mubr.bf16.vlgmr.msra.gmra.mxu0 %v13012_v11 }
 0x1c3   :  { %7517 = vmatpush1.bf16.msra.mxu0 %v11238_v60  ;;  %7548 = vmatprep.mubr.bf16.mxu0 %v13014_v1 }
 0x1c4   :  { %7502 = vmatpush2.bf16.msra.mxu1 %v11235_v43  ;;  %7518 = vmatprep.subr.bf16.mxu0 %v11246_v0 }
 0x1c5   :  { %7503 = vmatprep.subr.bf16.mxu1 %v11243_v63  ;;  %v11286_v63 = vld [vmem:[#allocation7 + $0xc60] ss:$24 sps:$4 sm:$0xff]  }
 0x1c7   :  { %7519 = vmatpush1.bf16.msra.mxu0 %v11244_v2  ;;  %v11291_v2 = vld [vmem:[#allocation7 + $0xba4] ss:$24 sps:$4 sm:$0xff]  }
 0x1c8   :  { %7504 = vmatpush2.bf16.msra.mxu1 %v11241_v42  ;;  %7520 = vmatprep.subr.bf16.mxu0 %v11252_v4 }
 0x1c9   :  { %7505 = vmatprep.subr.bf16.mxu1 %v11249_v3  ;;  %v11294_v3 = vld [vmem:[#allocation7 + $0xc34] ss:$24 sps:$4 sm:$0xff]  }
 0x1cb   :  { %7521 = vmatpush1.bf16.msra.mxu0 %v11250_v6  ;;  %v11289_v6 = vld [vmem:[#allocation7 + $0xba0] ss:$24 sps:$4 sm:$0xff]  }
 0x1cc   :  { %7506 = vmatpush2.bf16.msra.mxu1 %v11247_v5  ;;  %7522 = vmatprep.subr.bf16.mxu0 %v11255_v7  ;;  %v11292_v7 = vld [vmem:[#allocation7 + $0xc30] ss:$24 sps:$4 sm:$0xff]  }
 0x1cd   :  { %7557 = vmatprep.subr.bf16.mxu1 %v11258_v9  ;;  %v11297_v9 = vld [vmem:[#allocation7 + $0xb74] ss:$24 sps:$4 sm:$0xff]  }
 0x1cf   :  { %7508 = vmatmul.mubr.bf16.vlgmr.msra.gmra.mxu1 %v13019_v18  ;;  %7523 = vmatpush1.bf16.msra.mxu0 %v11253_v12  ;;  %v11295_v12 = vld [vmem:[#allocation7 + $0xb70] ss:$24 sps:$4 sm:$0xff]  }
 0x1d0   :  { %7558 = vmatpush1.bf16.msra.mxu1 %v11256_v13  ;;  %7524 = vmatprep.subr.bf16.mxu0 %v11261_v14  ;;  %v11298_v13 = vld [vmem:[#allocation7 + $0xc00] ss:$24 sps:$4 sm:$0xff]   ;;  %v11303_v14 = vld [vmem:[#allocation7 + $0xb44] ss:$24 sps:$4 sm:$0xff]  }
 0x1d1   :  { %7559 = vmatprep.subr.bf16.mxu1 %v11264_v16  ;;  %v11306_v16 = vld [vmem:[#allocation7 + $0xed4] ss:$24 sps:$4 sm:$0xff]  }
 0x1d3   :  { %7525 = vmatpush1.bf16.msra.mxu0 %v11259_v21  ;;  %v11301_v21 = vld [vmem:[#allocation7 + $0xb40] ss:$24 sps:$4 sm:$0xff]  }
 0x1d4   :  { %7560 = vmatpush1.bf16.msra.mxu1 %v11262_v61  ;;  %7526 = vmatprep.subr.bf16.mxu0 %v11267_v24  ;;  %v11304_v61 = vld [vmem:[#allocation7 + $0xed0] ss:$24 sps:$4 sm:$0xff]   ;;  %v11309_v24 = vld [vmem:[#allocation7 + $0xb14] ss:$24 sps:$4 sm:$0xff]  }
 0x1d5   :  { %7561 = vmatprep.subr.bf16.mxu1 %v11270_v25  ;;  %v11312_v25 = vld [vmem:[#allocation7 + $0xea4] ss:$24 sps:$4 sm:$0xff]  }
 0x1d7   :  { %7527 = vmatpush1.bf16.msra.mxu0 %v11265_v20  ;;  %v11307_v20 = vld [vmem:[#allocation7 + $0xb10] ss:$24 sps:$4 sm:$0xff]  }
 0x1d8   :  { %7562 = vmatpush1.bf16.msra.mxu1 %v11268_v26  ;;  %7528 = vmatprep.subr.bf16.mxu0 %v11273_v19  ;;  %v11310_v26 = vld [vmem:[#allocation7 + $0xea0] ss:$24 sps:$4 sm:$0xff]   ;;  %v11315_v19 = vld [vmem:[#allocation7 + $0xae4] ss:$24 sps:$4 sm:$0xff]  }
 0x1d9   :  { %7563 = vmatprep.subr.bf16.mxu1 %v11276_v29  ;;  %v11318_v29 = vld [vmem:[#allocation7 + $0xe74] ss:$24 sps:$4 sm:$0xff]  }
 0x1da   :  { %v13032_v40 = vpop.f32.mrf.mxu0 }
 0x1db   :  { %v1815_v39 = vpop.f32.mrf.mxu1  ;;  %7529 = vmatpush1.bf16.msra.mxu0 %v11271_v32  ;;  %v11313_v32 = vld [vmem:[#allocation7 + $0xae0] ss:$24 sps:$4 sm:$0xff]  }
 0x1dc   :  { %v2051_v41 = vmul.f32 %v1994_v31, %v1815_v39  ;;  %7564 = vmatpush1.bf16.msra.mxu1 %v11274_v33  ;;  %7530 = vmatprep.subr.bf16.mxu0 %v11279_v35  ;;  %v1776_v49 = vpop.f32.mrf.mxu0  ;;  %v1998_v31 = vrot.slane %v13022_v27, %v12943_v23  ;;  %v11316_v33 = vld [vmem:[#allocation7 + $0xe70] ss:$24 sps:$4 sm:$0xff]   ;;  %v11321_v35 = vld [vmem:[#allocation7 + $0xab4] ss:$24 sps:$4 sm:$0xff]  }
 0x1dd   :  { %v13036_v48 = vpop.f32.mrf.mxu1  ;;  %7565 = vmatprep.subr.bf16.mxu1 %v11282_v36  ;;  %v2050_v57 = vmul.f32 %v1990_v38, %v1776_v49  ;;  %v11324_v36 = vld [vmem:[#allocation7 + $0xe44] ss:$24 sps:$4 sm:$0xff]   ;;  %v2112_v38 = vrot.slane %v13024_v30, %v12943_v23  ;;  %v11319_v39 = vld [vmem:[#allocation7 + $0xab0] ss:$24 sps:$4 sm:$0xff]   ;;  %v11325_v49 = vld [vmem:[#allocation7 + $0xa80] ss:$24 sps:$4 sm:$0xff]  }
 0x1de   :  { %v13038_v56 = vadd.f32 %v2108_v37, %v2051_v41  ;;  %v1778_v43 = vpop.f32.mrf.mxu0  ;;  %v2052_v37 = vmul.f32 %v1998_v31, %v13036_v48  ;;  %v11322_v41 = vld [vmem:[#allocation7 + $0xe40] ss:$24 sps:$4 sm:$0xff]   ;;  %v1986_v48 = vrot.slane %v13022_v27, %v12960_v52  ;;  %v2014_v31 = vrot.slane %v13022_v27, %v12983_v54 }
 0x1df   :  { %v1819_v58 = vpop.f32.mrf.mxu1  ;;  %7531 = vmatpush1.bf16.msra.mxu0 %v11277_v44  ;;  %v2164_v60 = vadd.f32 %v2104_v46, %v2050_v57  ;;  %v11327_v44 = vld [vmem:[#allocation7 + $0xa84] ss:$24 sps:$4 sm:$0xff]   ;;  %v11331_v43 = vld [vmem:[#allocation7 + $0xde0] ss:$24 sps:$4 sm:$0xff]  }
 0x1e0   :  { %7566 = vmatpush1.bf16.msra.mxu1 %v11280_v45  ;;  %7532 = vmatprep.subr.bf16.mxu0 %v11285_v51  ;;  %v1779_v42 = vpop.f32.mrf.mxu0  ;;  %v11330_v45 = vld [vmem:[#allocation7 + $0xe14] ss:$24 sps:$4 sm:$0xff]   ;;  %v2166_v46 = vadd.f32 %v2112_v38, %v2052_v37  ;;  %v11328_v51 = vld [vmem:[#allocation7 + $0xe10] ss:$24 sps:$4 sm:$0xff]   ;;  %v11333_v57 = vld [vmem:[#allocation7 + $0xde4] ss:$24 sps:$4 sm:$0xff]   ;;  %v2128_v38 = vrot.slane %v13024_v30, %v12983_v54 }
 0x1e1   :  { %v1820_v0 = vpop.f32.mrf.mxu1  ;;  %7567 = vmatprep.subr.bf16.mxu1 %v11288_v53  ;;  %v2182_v4 = vmax.f32 %v2164_v60, 0.0  ;;  %v2179_v53 = vmax.f32 %v13004_v15, 0.0  ;;  %v11336_v58 = vld [vmem:[#allocation7 + $0x1054] ss:$24 sps:$4 sm:$0xff]   ;;  %v11334_v60 = vld [vmem:[#allocation7 + $0x1050] ss:$24 sps:$4 sm:$0xff]   ;;  %v2049_v42 = vmul.f32 %v1986_v48, %v13032_v40  ;;  %v2100_v15 = vrot.slane %v13024_v30, %v12960_v52 }
 0x1e2   :  { %v11343_v40 = vld [vmem:[#allocation7 + $0xd80] ss:$24 sps:$4 sm:$0xff]  }
 0x1e3   :  { %v13040_v5 = vpack.c.bf16 %v2182_v4, %v2182_v4  ;;  %7533 = vmatpush2.bf16.msra.mxu0 %v11283_v62  ;;  %v2184_v62 = vmax.f32 %v2166_v46, 0.0  ;;  %v13051_v0 = vpack.c.bf16 %v2179_v53, %v2179_v53  ;;  %v11342_v4 = vld [vmem:[#allocation7 + $0x1024] ss:$24 sps:$4 sm:$0xff]   ;;  %v2120_v46 = vrot.slane %v13024_v30, %v12986_v55 }
 0x1e4   :  { %7568 = vmatpush1.bf16.msra.mxu1 %v11286_v63  ;;  %7534 = vmatprep.subr.bf16.mxu0 %v11291_v2  ;;  %v11339_v63 = vld [vmem:[#allocation7 + $0xdb4] ss:$24 sps:$4 sm:$0xff]   ;;  %v11337_v2 = vld [vmem:[#allocation7 + $0xdb0] ss:$24 sps:$4 sm:$0xff]  }
 0x1e5   :  { %7569 = vmatprep.subr.bf16.mxu1 %v11294_v3  ;;  %7589 = vmatprep.mubr.bf16.mxu1 %v13040_v5  ;;  %v11340_v3 = vld [vmem:[#allocation7 + $0x1020] ss:$24 sps:$4 sm:$0xff]  }
 0x1e7   :  { %7535 = vmatpush2.bf16.msra.mxu0 %v11289_v6  ;;  %v13056_v6 = vpack.c.bf16 %v2184_v62, %v2184_v62 }
 0x1e8   :  { %7570 = vmatpush1.bf16.msra.mxu1 %v11292_v7  ;;  %7536 = vmatprep.subr.bf16.mxu0 %v11297_v9  ;;  %v11345_v7 = vld [vmem:[#allocation7 + $0xd84] ss:$24 sps:$4 sm:$0xff]   ;;  %v11348_v9 = vld [vmem:[#allocation7 + $0xff4] ss:$24 sps:$4 sm:$0xff]  }
 0x1e9   :  { %7571 = vmatprep.subr.bf16.mxu1 %v11300_v10  ;;  %v2163_v10 = vadd.f32 %v2100_v15, %v2049_v42  ;;  %v11369_v15 = vld [vmem:[#allocation7 + $0xf34] ss:$24 sps:$4 sm:$0xff]  }
 0x1eb   :  { %7537 = vmatpush2.bf16.msra.mxu0 %v11295_v12  ;;  %v11346_v12 = vld [vmem:[#allocation7 + $0xff0] ss:$24 sps:$4 sm:$0xff]  }
 0x1ec   :  { %7572 = vmatpush1.bf16.msra.mxu1 %v11298_v13  ;;  %7538 = vmatprep.subr.bf16.mxu0 %v11303_v14  ;;  %v2181_v13 = vmax.f32 %v2163_v10, 0.0  ;;  %v11351_v14 = vld [vmem:[#allocation7 + $0xfc4] ss:$24 sps:$4 sm:$0xff]  }
 0x1ed   :  { %7573 = vmatprep.subr.bf16.mxu1 %v11306_v16  ;;  %v11354_v16 = vld [vmem:[#allocation7 + $0x1354] ss:$24 sps:$4 sm:$0xff]   ;;  %v11375_v10 = vld [vmem:[#allocation7 + $0xf04] ss:$24 sps:$4 sm:$0xff]  }
 0x1ef   :  { %7539 = vmatpush2.bf16.msra.mxu0 %v11301_v21  ;;  %v11349_v21 = vld [vmem:[#allocation7 + $0xfc0] ss:$24 sps:$4 sm:$0xff]  }
 0x1f0   :  { %7574 = vmatpush2.bf16.msra.mxu1 %v11304_v61  ;;  %7540 = vmatprep.subr.bf16.mxu0 %v11309_v24  ;;  %v11352_v61 = vld [vmem:[#allocation7 + $0x1350] ss:$24 sps:$4 sm:$0xff]   ;;  %v11357_v24 = vld [vmem:[#allocation7 + $0xf94] ss:$24 sps:$4 sm:$0xff]  }
 0x1f1   :  { %7575 = vmatprep.subr.bf16.mxu1 %v11312_v25  ;;  %v11360_v25 = vld [vmem:[#allocation7 + $0x1324] ss:$24 sps:$4 sm:$0xff]  }
 0x1f3   :  { %7541 = vmatpush2.bf16.msra.mxu0 %v11307_v20  ;;  %v2010_v20 = vrot.slane %v13022_v27, %v12977_v47 }
 0x1f4   :  { %7576 = vmatpush2.bf16.msra.mxu1 %v11310_v26  ;;  %7542 = vmatprep.subr.bf16.mxu0 %v11315_v19  ;;  %v2002_v26 = vrot.slane %v13022_v27, %v12980_v50  ;;  %v13064_v19 = vpack.c.bf16 %v2181_v13, %v2181_v13  ;;  %v11376_v13 = vld [vmem:[#allocation7 + $0x1290] ss:$24 sps:$4 sm:$0xff]  }
 0x1f5   :  { %7577 = vmatprep.subr.bf16.mxu1 %v11318_v29  ;;  %v2124_v29 = vrot.slane %v13024_v30, %v12977_v47  ;;  %v11366_v47 = vld [vmem:[#allocation7 + $0x12f4] ss:$24 sps:$4 sm:$0xff]  }
 0x1f7   :  { %7543 = vmatpush2.bf16.msra.mxu0 %v11313_v32  ;;  %v11355_v32 = vld [vmem:[#allocation7 + $0xf90] ss:$24 sps:$4 sm:$0xff]  }
 0x1f8   :  { %7578 = vmatpush2.bf16.msra.mxu1 %v11316_v33  ;;  %7544 = vmatprep.subr.bf16.mxu0 %v11321_v35  ;;  %v11358_v33 = vld [vmem:[#allocation7 + $0x1320] ss:$24 sps:$4 sm:$0xff]   ;;  %v2116_v35 = vrot.slane %v13024_v30, %v12980_v50 }
 0x1f9   :  { %7579 = vmatprep.subr.bf16.mxu1 %v11324_v36  ;;  %v2006_v36 = vrot.slane %v13022_v27, %v12986_v55 }
 0x1fb   :  { %7545 = vmatpush2.bf16.msra.mxu0 %v11319_v39 }
 0x1fc   :  { %7580 = vmatpush2.bf16.msra.mxu1 %v11322_v41  ;;  %7546 = vmatprep.subr.bf16.mxu0 %v11327_v44  ;;  %v11363_v41 = vld [vmem:[#allocation7 + $0xf64] ss:$24 sps:$4 sm:$0xff]  }
 0x1fd   :  { %7581 = vmatprep.subr.bf16.mxu1 %v11330_v45 }
 0x1ff   :  { %7547 = vmatpush2.bf16.msra.mxu0 %v11325_v49 }
 0x200   :  { %7582 = vmatpush2.bf16.msra.mxu1 %v11328_v51  ;;  %7598 = vmatprep.subr.bf16.mxu0 %v11336_v58  ;;  %v11361_v58 = vld [vmem:[#allocation7 + $0xf60] ss:$24 sps:$4 sm:$0xff]  }
 0x201   :  { %7583 = vmatprep.subr.bf16.mxu1 %v11333_v57 }
 0x202   :  { %7549 = vmatmul.mubr.bf16.vlgmr.msra.gmra.mxu0 %v13051_v0 }
 0x203   :  { %7599 = vmatpush1.bf16.msra.mxu0 %v11334_v60  ;;  %7630 = vmatprep.mubr.bf16.mxu0 %v13056_v6 }
 0x204   :  { %7584 = vmatpush2.bf16.msra.mxu1 %v11331_v43  ;;  %7600 = vmatprep.subr.bf16.mxu0 %v11342_v4  ;;  %v11364_v43 = vld [vmem:[#allocation7 + $0x12f0] ss:$24 sps:$4 sm:$0xff]  }
 0x205   :  { %7585 = vmatprep.subr.bf16.mxu1 %v11339_v63 }
 0x207   :  { %7601 = vmatpush1.bf16.msra.mxu0 %v11340_v3 }
 0x208   :  { %7586 = vmatpush2.bf16.msra.mxu1 %v11337_v2  ;;  %7602 = vmatprep.subr.bf16.mxu0 %v11348_v9  ;;  %v11372_v2 = vld [vmem:[#allocation7 + $0x12c4] ss:$24 sps:$4 sm:$0xff]   ;;  %v11370_v9 = vld [vmem:[#allocation7 + $0x12c0] ss:$24 sps:$4 sm:$0xff]  }
 0x209   :  { %7587 = vmatprep.subr.bf16.mxu1 %v11345_v7  ;;  %v11367_v7 = vld [vmem:[#allocation7 + $0xf30] ss:$24 sps:$4 sm:$0xff]  }
 0x20b   :  { %7603 = vmatpush1.bf16.msra.mxu0 %v11346_v12  ;;  %v11373_v12 = vld [vmem:[#allocation7 + $0xf00] ss:$24 sps:$4 sm:$0xff]  }
 0x20c   :  { %7588 = vmatpush2.bf16.msra.mxu1 %v11343_v40  ;;  %7604 = vmatprep.subr.bf16.mxu0 %v11351_v14  ;;  %v11378_v40 = vld [vmem:[#allocation7 + $0x1294] ss:$24 sps:$4 sm:$0xff]  }
 0x20d   :  { %7639 = vmatprep.subr.bf16.mxu1 %v11354_v16  ;;  %v11381_v14 = vld [vmem:[#allocation7 + $0x11d4] ss:$24 sps:$4 sm:$0xff]   ;;  %v11384_v16 = vld [vmem:[#allocation7 + $0x1264] ss:$24 sps:$4 sm:$0xff]  }
 0x20e   :  { %v1856_v39 = vpop.f32.mrf.mxu0 }
 0x20f   :  { %v1897_v37 = vpop.f32.mrf.mxu1  ;;  %7590 = vmatmul.mubr.bf16.vlgmr.msra.gmra.mxu1 %v13064_v19  ;;  %7605 = vmatpush1.bf16.msra.mxu0 %v11349_v21  ;;  %v2053_v45 = vmul.f32 %v2002_v26, %v1856_v39  ;;  %v11379_v21 = vld [vmem:[#allocation7 + $0x11d0] ss:$24 sps:$4 sm:$0xff]   ;;  %v11405_v39 = vld [vmem:[#allocation7 + $0x1114] ss:$24 sps:$4 sm:$0xff]  }
 0x210   :  { %v2055_v44 = vmul.f32 %v2010_v20, %v1897_v37  ;;  %7640 = vmatpush1.bf16.msra.mxu1 %v11352_v61  ;;  %7606 = vmatprep.subr.bf16.mxu0 %v11357_v24  ;;  %v1858_v27 = vpop.f32.mrf.mxu0  ;;  %v11382_v61 = vld [vmem:[#allocation7 + $0x1260] ss:$24 sps:$4 sm:$0xff]   ;;  %v11387_v24 = vld [vmem:[#allocation7 + $0x11a4] ss:$24 sps:$4 sm:$0xff]   ;;  %v11388_v26 = vld [vmem:[#allocation7 + $0x1230] ss:$24 sps:$4 sm:$0xff]  }
 0x211   :  { %v1899_v49 = vpop.f32.mrf.mxu1  ;;  %7641 = vmatprep.subr.bf16.mxu1 %v11360_v25  ;;  %v13081_v48 = vadd.f32 %v2116_v35, %v2053_v45  ;;  %v2054_v54 = vmul.f32 %v2006_v36, %v1858_v27  ;;  %v11390_v25 = vld [vmem:[#allocation7 + $0x1234] ss:$24 sps:$4 sm:$0xff]   ;;  %v11385_v20 = vld [vmem:[#allocation7 + $0x11a0] ss:$24 sps:$4 sm:$0xff]   ;;  %v11399_v35 = vld [vmem:[#allocation7 + $0x1144] ss:$24 sps:$4 sm:$0xff]  }
 0x212   :  { %v13079_v51 = vadd.f32 %v2124_v29, %v2055_v44  ;;  %v2056_v53 = vmul.f32 %v2014_v31, %v1899_v49  ;;  %v1860_v60 = vpop.f32.mrf.mxu0  ;;  %v11393_v29 = vld [vmem:[#allocation7 + $0x1174] ss:$24 sps:$4 sm:$0xff]   ;;  %v11396_v31 = vld [vmem:[#allocation7 + $0x1204] ss:$24 sps:$4 sm:$0xff]   ;;  %v11397_v37 = vld [vmem:[#allocation7 + $0x1140] ss:$24 sps:$4 sm:$0xff]  }
 0x213   :  { %v1901_v57 = vpop.f32.mrf.mxu1  ;;  %7607 = vmatpush1.bf16.msra.mxu0 %v11355_v32  ;;  %v2168_v63 = vadd.f32 %v2120_v46, %v2054_v54  ;;  %v11391_v32 = vld [vmem:[#allocation7 + $0x1170] ss:$24 sps:$4 sm:$0xff]   ;;  %v11402_v36 = vld [vmem:[#allocation7 + $0x14d4] ss:$24 sps:$4 sm:$0xff]   ;;  %v11406_v44 = vld [vmem:[#allocation7 + $0x14a0] ss:$24 sps:$4 sm:$0xff]  }
 0x214   :  { %v13083_v62 = vadd.f32 %v2128_v38, %v2056_v53  ;;  %7642 = vmatpush1.bf16.msra.mxu1 %v11358_v33  ;;  %7608 = vmatprep.subr.bf16.mxu0 %v11363_v41  ;;  %v1861_v42 = vpop.f32.mrf.mxu0  ;;  %v11394_v33 = vld [vmem:[#allocation7 + $0x1200] ss:$24 sps:$4 sm:$0xff]   ;;  %v11400_v38 = vld [vmem:[#allocation7 + $0x14d0] ss:$24 sps:$4 sm:$0xff]   ;;  %v11408_v41 = vld [vmem:[#allocation7 + $0x14a4] ss:$24 sps:$4 sm:$0xff]  }
 0x215   :  { %v1902_v30 = vpop.f32.mrf.mxu1  ;;  %7643 = vmatprep.subr.bf16.mxu1 %v11366_v47  ;;  %v2186_v3 = vmax.f32 %v2168_v63, 0.0  ;;  %v11403_v47 = vld [vmem:[#allocation7 + $0x1110] ss:$24 sps:$4 sm:$0xff]   ;;  %v11411_v45 = vld [vmem:[#allocation7 + $0x10e4] ss:$24 sps:$4 sm:$0xff]  }
 0x216   :  { %v11414_v46 = vld [vmem:[#allocation7 + $0x1474] ss:$24 sps:$4 sm:$0xff]   ;;  %v11409_v49 = vld [vmem:[#allocation7 + $0x10e0] ss:$24 sps:$4 sm:$0xff]   ;;  %v11412_v27 = vld [vmem:[#allocation7 + $0x1470] ss:$24 sps:$4 sm:$0xff]  }
 0x217   :  { %v13085_v4 = vpack.c.bf16 %v2186_v3, %v2186_v3  ;;  %7609 = vmatpush1.bf16.msra.mxu0 %v11361_v58  ;;  %v11417_v53 = vld [vmem:[#allocation7 + $0x10b4] ss:$24 sps:$4 sm:$0xff]   ;;  %v11420_v54 = vld [vmem:[#allocation7 + $0x1444] ss:$24 sps:$4 sm:$0xff]   ;;  %v11415_v57 = vld [vmem:[#allocation7 + $0x10b0] ss:$24 sps:$4 sm:$0xff]  }
 0x218   :  { %7644 = vmatpush1.bf16.msra.mxu1 %v11364_v43  ;;  %7610 = vmatprep.subr.bf16.mxu0 %v11369_v15  ;;  %v11418_v58 = vld [vmem:[#allocation7 + $0x1440] ss:$24 sps:$4 sm:$0xff]   ;;  %v11423_v43 = vld [vmem:[#allocation7 + $0x1084] ss:$24 sps:$4 sm:$0xff]   ;;  %v11426_v60 = vld [vmem:[#allocation7 + $0x1414] ss:$24 sps:$4 sm:$0xff]  }
 0x219   :  { %7645 = vmatprep.subr.bf16.mxu1 %v11372_v2  ;;  %7671 = vmatprep.mubr.bf16.mxu1 %v13085_v4  ;;  %v11421_v63 = vld [vmem:[#allocation7 + $0x1080] ss:$24 sps:$4 sm:$0xff]   ;;  %v11424_v30 = vld [vmem:[#allocation7 + $0x1410] ss:$24 sps:$4 sm:$0xff]   ;;  %v11429_v42 = vld [vmem:[#allocation7 + $0x13e4] ss:$24 sps:$4 sm:$0xff]  }
 0x21a   :  { %v2183_v15 = vmax.f32 %v13038_v56, 0.0  ;;  %v11432_v2 = vld [vmem:[#allocation7 + $0x1654] ss:$24 sps:$4 sm:$0xff]   ;;  %v11436_v56 = vld [vmem:[#allocation7 + $0x1620] ss:$24 sps:$4 sm:$0xff]  }
 0x21b   :  { %7611 = vmatpush1.bf16.msra.mxu0 %v11367_v7  ;;  %v13089_v3 = vld [vmem:[#allocation4 + $0x10] sm:$0x3]  ;;  %v11427_v7 = vld [vmem:[#allocation7 + $0x13e0] ss:$24 sps:$4 sm:$0xff]  }
 0x21c   :  { %7646 = vmatpush1.bf16.msra.mxu1 %v11370_v9  ;;  %7612 = vmatprep.subr.bf16.mxu0 %v11375_v10  ;;  %v11430_v9 = vld [vmem:[#allocation7 + $0x1650] ss:$24 sps:$4 sm:$0xff]   ;;  %v2188_v10 = vmax.f32 %v13083_v62, 0.0 }
 0x21d   :  { %7647 = vmatprep.subr.bf16.mxu1 %v11378_v40  ;;  %v11435_v40 = vld [vmem:[#allocation7 + $0x13b4] ss:$24 sps:$4 sm:$0xff]  }
 0x21f   :  { %7613 = vmatpush1.bf16.msra.mxu0 %v11373_v12  ;;  %v13092_v12 = vld [vmem:[#allocation6 + $0x10] sm:$0x3] }
 0x220   :  { %7648 = vmatpush1.bf16.msra.mxu1 %v11376_v13  ;;  %7614 = vmatprep.subr.bf16.mxu0 %v11381_v14  ;;  %v13094_v13 = vpack.c.bf16 %v2183_v15, %v2183_v15  ;;  %v11433_v14 = vld [vmem:[#allocation7 + $0x13b0] ss:$24 sps:$4 sm:$0xff]   ;;  %v11465_v15 = vld [vmem:[#allocation7 + $0x1534] ss:$24 sps:$4 sm:$0xff]  }
 0x221   :  { %7649 = vmatprep.subr.bf16.mxu1 %v11384_v16  ;;  %v11438_v16 = vld [vmem:[#allocation7 + $0x1624] ss:$24 sps:$4 sm:$0xff]  }
 0x223   :  { %7615 = vmatpush2.bf16.msra.mxu0 %v11379_v21  ;;  %v2022_v21 = vrot.slane %v13089_v3, %v12940_v22 }
 0x224   :  { %7650 = vmatpush1.bf16.msra.mxu1 %v11382_v61  ;;  %7616 = vmatprep.subr.bf16.mxu0 %v11387_v24  ;;  %v13098_v61 = vpack.c.bf16 %v2188_v10, %v2188_v10  ;;  %v11441_v24 = vld [vmem:[#allocation7 + $0x1384] ss:$24 sps:$4 sm:$0xff]  }
 0x225   :  { %7651 = vmatprep.subr.bf16.mxu1 %v11390_v25  ;;  %v11444_v25 = vld [vmem:[#allocation7 + $0x15f4] ss:$24 sps:$4 sm:$0xff]   ;;  %v11471_v10 = vld [vmem:[#allocation7 + $0x1504] ss:$24 sps:$4 sm:$0xff]  }
 0x227   :  { %7617 = vmatpush2.bf16.msra.mxu0 %v11385_v20  ;;  %v2136_v20 = vrot.slane %v13092_v12, %v12940_v22 }
 0x228   :  { %7652 = vmatpush1.bf16.msra.mxu1 %v11388_v26  ;;  %7618 = vmatprep.subr.bf16.mxu0 %v11393_v29 }
 0x229   :  { %7653 = vmatprep.subr.bf16.mxu1 %v11396_v31  ;;  %v11439_v31 = vld [vmem:[#allocation7 + $0x1380] ss:$24 sps:$4 sm:$0xff]  }
 0x22b   :  { %7619 = vmatpush2.bf16.msra.mxu0 %v11391_v32  ;;  %v11442_v32 = vld [vmem:[#allocation7 + $0x15f0] ss:$24 sps:$4 sm:$0xff]  }
 0x22c   :  { %7654 = vmatpush1.bf16.msra.mxu1 %v11394_v33  ;;  %7620 = vmatprep.subr.bf16.mxu0 %v11399_v35 }
 0x22d   :  { %7655 = vmatprep.subr.bf16.mxu1 %v11402_v36  ;;  %v2185_v36 = vmax.f32 %v13081_v48, 0.0  ;;  %v11454_v48 = vld [vmem:[#allocation7 + $0x1920] ss:$24 sps:$4 sm:$0xff]  }
 0x22f   :  { %7621 = vmatpush2.bf16.msra.mxu0 %v11397_v37 }
 0x230   :  { %7656 = vmatpush2.bf16.msra.mxu1 %v11400_v38  ;;  %7622 = vmatprep.subr.bf16.mxu0 %v11405_v39  ;;  %v11447_v38 = vld [vmem:[#allocation7 + $0x15c4] ss:$24 sps:$4 sm:$0xff]   ;;  %v11450_v39 = vld [vmem:[#allocation7 + $0x1954] ss:$24 sps:$4 sm:$0xff]  }
 0x231   :  { %7657 = vmatprep.subr.bf16.mxu1 %v11408_v41 }
 0x233   :  { %7623 = vmatpush2.bf16.msra.mxu0 %v11403_v47  ;;  %v11445_v47 = vld [vmem:[#allocation7 + $0x15c0] ss:$24 sps:$4 sm:$0xff]  }
 0x234   :  { %7658 = vmatpush2.bf16.msra.mxu1 %v11406_v44  ;;  %7624 = vmatprep.subr.bf16.mxu0 %v11411_v45  ;;  %v11448_v44 = vld [vmem:[#allocation7 + $0x1950] ss:$24 sps:$4 sm:$0xff]   ;;  %v11453_v45 = vld [vmem:[#allocation7 + $0x1594] ss:$24 sps:$4 sm:$0xff]  }
 0x235   :  { %7659 = vmatprep.subr.bf16.mxu1 %v11414_v46  ;;  %v11456_v46 = vld [vmem:[#allocation7 + $0x1924] ss:$24 sps:$4 sm:$0xff]  }
 0x237   :  { %7625 = vmatpush2.bf16.msra.mxu0 %v11409_v49  ;;  %v13107_v49 = vpack.c.bf16 %v2185_v36, %v2185_v36  ;;  %v11490_v36 = vld [vmem:[#allocation7 + $0x1800] ss:$24 sps:$4 sm:$0xff]  }
 0x238   :  { %7660 = vmatpush2.bf16.msra.mxu1 %v11412_v27  ;;  %7626 = vmatprep.subr.bf16.mxu0 %v11417_v53  ;;  %v11451_v53 = vld [vmem:[#allocation7 + $0x1590] ss:$24 sps:$4 sm:$0xff]  }
 0x239   :  { %7661 = vmatprep.subr.bf16.mxu1 %v11420_v54 }
 0x23b   :  { %7627 = vmatpush2.bf16.msra.mxu0 %v11415_v57  ;;  %v11459_v57 = vld [vmem:[#allocation7 + $0x1564] ss:$24 sps:$4 sm:$0xff]  }
 0x23c   :  { %7662 = vmatpush2.bf16.msra.mxu1 %v11418_v58  ;;  %7628 = vmatprep.subr.bf16.mxu0 %v11423_v43  ;;  %v11462_v58 = vld [vmem:[#allocation7 + $0x18f4] ss:$24 sps:$4 sm:$0xff]  }
 0x23d   :  { %7663 = vmatprep.subr.bf16.mxu1 %v11426_v60 }
 0x23f   :  { %7629 = vmatpush2.bf16.msra.mxu0 %v11421_v63  ;;  %v11457_v63 = vld [vmem:[#allocation7 + $0x1560] ss:$24 sps:$4 sm:$0xff]  }
 0x240   :  { %7664 = vmatpush2.bf16.msra.mxu1 %v11424_v30  ;;  %7680 = vmatprep.subr.bf16.mxu0 %v11432_v2  ;;  %v11460_v30 = vld [vmem:[#allocation7 + $0x18f0] ss:$24 sps:$4 sm:$0xff]   ;;  %v11468_v2 = vld [vmem:[#allocation7 + $0x18c4] ss:$24 sps:$4 sm:$0xff]  }
 0x241   :  { %7665 = vmatprep.subr.bf16.mxu1 %v11429_v42 }
 0x242   :  { %7631 = vmatmul.mubr.bf16.vlgmr.msra.gmra.mxu0 %v13094_v13  ;;  %v13101_v62 = vpop.f32.mrf.mxu0 }
 0x243   :  { %7681 = vmatpush1.bf16.msra.mxu0 %v11430_v9  ;;  %7712 = vmatprep.mubr.bf16.mxu0 %v13098_v61  ;;  %v11466_v9 = vld [vmem:[#allocation7 + $0x18c0] ss:$24 sps:$4 sm:$0xff]  }
 0x244   :  { %7666 = vmatpush2.bf16.msra.mxu1 %v11427_v7  ;;  %v1940_v26 = vpop.f32.mrf.mxu0  ;;  %7682 = vmatprep.subr.bf16.mxu0 %v11438_v16  ;;  %v11463_v7 = vld [vmem:[#allocation7 + $0x1530] ss:$24 sps:$4 sm:$0xff]   ;;  %v11477_v16 = vld [vmem:[#allocation7 + $0x17d4] ss:$24 sps:$4 sm:$0xff]  }
 0x245   :  { %7667 = vmatprep.subr.bf16.mxu1 %v11435_v40  ;;  %v2058_v29 = vmul.f32 %v2022_v21, %v1940_v26  ;;  %v11474_v40 = vld [vmem:[#allocation7 + $0x1894] ss:$24 sps:$4 sm:$0xff]   ;;  %v11480_v21 = vld [vmem:[#allocation7 + $0x1864] ss:$24 sps:$4 sm:$0xff]  }
 0x246   :  { %v1942_v33 = vpop.f32.mrf.mxu0  ;;  %v11486_v26 = vld [vmem:[#allocation7 + $0x1834] ss:$24 sps:$4 sm:$0xff]  }
 0x247   :  { %7683 = vmatpush1.bf16.msra.mxu0 %v11436_v56  ;;  %v2172_v35 = vadd.f32 %v2136_v20, %v2058_v29  ;;  %v11472_v56 = vld [vmem:[#allocation7 + $0x1890] ss:$24 sps:$4 sm:$0xff]   ;;  %v11483_v20 = vld [vmem:[#allocation7 + $0x17a4] ss:$24 sps:$4 sm:$0xff]   ;;  %v11481_v29 = vld [vmem:[#allocation7 + $0x17a0] ss:$24 sps:$4 sm:$0xff]  }
 0x248   :  { %7668 = vmatpush2.bf16.msra.mxu1 %v11433_v14  ;;  %7684 = vmatprep.subr.bf16.mxu0 %v11444_v25  ;;  %v1943_v37 = vpop.f32.mrf.mxu0  ;;  %v11469_v14 = vld [vmem:[#allocation7 + $0x1500] ss:$24 sps:$4 sm:$0xff]   ;;  %v11492_v33 = vld [vmem:[#allocation7 + $0x1804] ss:$24 sps:$4 sm:$0xff]  }
 0x249   :  { %7669 = vmatprep.subr.bf16.mxu1 %v11441_v24  ;;  %v2190_v41 = vmax.f32 %v2172_v35, 0.0  ;;  %v11475_v24 = vld [vmem:[#allocation7 + $0x17d0] ss:$24 sps:$4 sm:$0xff]   ;;  %v11478_v25 = vld [vmem:[#allocation7 + $0x1860] ss:$24 sps:$4 sm:$0xff]  }
 0x24a   :  { %v11487_v35 = vld [vmem:[#allocation7 + $0x1770] ss:$24 sps:$4 sm:$0xff]   ;;  %v11495_v37 = vld [vmem:[#allocation7 + $0x1744] ss:$24 sps:$4 sm:$0xff]  }
 0x24b   :  { %7685 = vmatpush1.bf16.msra.mxu0 %v11442_v32  ;;  %v13109_v27 = vpack.c.bf16 %v2190_v41, %v2190_v41  ;;  %v11489_v32 = vld [vmem:[#allocation7 + $0x1774] ss:$24 sps:$4 sm:$0xff]   ;;  %v11496_v41 = vld [vmem:[#allocation7 + $0x1ad0] ss:$24 sps:$4 sm:$0xff]  }
 0x24c   :  { %7670 = vmatpush2.bf16.msra.mxu1 %v11439_v31  ;;  %7686 = vmatprep.subr.bf16.mxu0 %v11447_v38  ;;  %v11484_v31 = vld [vmem:[#allocation7 + $0x1830] ss:$24 sps:$4 sm:$0xff]   ;;  %v11498_v38 = vld [vmem:[#allocation7 + $0x1ad4] ss:$24 sps:$4 sm:$0xff]  }
 0x24d   :  { %7721 = vmatprep.subr.bf16.mxu1 %v11450_v39  ;;  %v11493_v39 = vld [vmem:[#allocation7 + $0x1740] ss:$24 sps:$4 sm:$0xff]  }
 0x24f   :  { %v13111_v54 = vpop.f32.mrf.mxu1  ;;  %7672 = vmatmul.mubr.bf16.vlgmr.msra.gmra.mxu1 %v13107_v49  ;;  %7687 = vmatpush1.bf16.msra.mxu0 %v11445_v47  ;;  %v11501_v47 = vld [vmem:[#allocation7 + $0x1714] ss:$24 sps:$4 sm:$0xff]  }
 0x250   :  { %7722 = vmatpush1.bf16.msra.mxu1 %v11448_v44  ;;  %7688 = vmatprep.subr.bf16.mxu0 %v11453_v45  ;;  %v11504_v44 = vld [vmem:[#allocation7 + $0x1aa4] ss:$24 sps:$4 sm:$0xff]   ;;  %v11499_v45 = vld [vmem:[#allocation7 + $0x1710] ss:$24 sps:$4 sm:$0xff]  }
 0x251   :  { %v13114_v43 = vpop.f32.mrf.mxu1  ;;  %7723 = vmatprep.subr.bf16.mxu1 %v11456_v46  ;;  %7753 = vmatprep.mubr.bf16.mxu1 %v13109_v27  ;;  %v11502_v46 = vld [vmem:[#allocation7 + $0x1aa0] ss:$24 sps:$4 sm:$0xff]  }
 0x253   :  { %v7431_v60 = vpop.f32.mrf.mxu1  ;;  %7689 = vmatpush1.bf16.msra.mxu0 %v11451_v53  ;;  %v11507_v53 = vld [vmem:[#allocation7 + $0x16e4] ss:$24 sps:$4 sm:$0xff]  }
 0x254   :  { %7724 = vmatpush1.bf16.msra.mxu1 %v11454_v48  ;;  %7690 = vmatprep.subr.bf16.mxu0 %v11459_v57  ;;  %v11510_v48 = vld [vmem:[#allocation7 + $0x1a74] ss:$24 sps:$4 sm:$0xff]   ;;  %v11505_v57 = vld [vmem:[#allocation7 + $0x16e0] ss:$24 sps:$4 sm:$0xff]  }
 0x255   :  { %v7432_v42 = vpop.f32.mrf.mxu1  ;;  %7725 = vmatprep.subr.bf16.mxu1 %v11462_v58  ;;  %v11508_v58 = vld [vmem:[#allocation7 + $0x1a70] ss:$24 sps:$4 sm:$0xff]   ;;  %v11513_v60 = vld [vmem:[#allocation7 + $0x16b4] ss:$24 sps:$4 sm:$0xff]  }
 0x256   :  { %v11514_v42 = vld [vmem:[#allocation7 + $0x1a40] ss:$24 sps:$4 sm:$0xff]  }
 0x257   :  { %7691 = vmatpush1.bf16.msra.mxu0 %v11457_v63  ;;  %v11516_v63 = vld [vmem:[#allocation7 + $0x1a44] ss:$24 sps:$4 sm:$0xff]  }
 0x258   :  { %7726 = vmatpush1.bf16.msra.mxu1 %v11460_v30  ;;  %7692 = vmatprep.subr.bf16.mxu0 %v11465_v15  ;;  %v11511_v30 = vld [vmem:[#allocation7 + $0x16b0] ss:$24 sps:$4 sm:$0xff]   ;;  %v11519_v15 = vld [vmem:[#allocation7 + $0x1684] ss:$24 sps:$4 sm:$0xff]  }
 0x259   :  { %7727 = vmatprep.subr.bf16.mxu1 %v11468_v2  ;;  %v11522_v2 = vld [vmem:[#allocation7 + $0x1a14] ss:$24 sps:$4 sm:$0xff]  }
 0x25b   :  { %7693 = vmatpush1.bf16.msra.mxu0 %v11463_v7  ;;  %v11517_v7 = vld [vmem:[#allocation7 + $0x1680] ss:$24 sps:$4 sm:$0xff]  }
 0x25c   :  { %7728 = vmatpush1.bf16.msra.mxu1 %v11466_v9  ;;  %7694 = vmatprep.subr.bf16.mxu0 %v11471_v10  ;;  %v11520_v9 = vld [vmem:[#allocation7 + $0x1a10] ss:$24 sps:$4 sm:$0xff]   ;;  %v2187_v10 = vmax.f32 %v13079_v51, 0.0  ;;  %v2132_v51 = vrot.slane %v13092_v12, %v12960_v52 }
 0x25d   :  { %7729 = vmatprep.subr.bf16.mxu1 %v11474_v40  ;;  %v2018_v40 = vrot.slane %v13089_v3, %v12960_v52  ;;  %v11529_v3 = vld [vmem:[#allocation7 + $0x19b0] ss:$24 sps:$4 sm:$0xff]  }
 0x25f   :  { %7695 = vmatpush1.bf16.msra.mxu0 %v11469_v14  ;;  %v11525_v14 = vld [vmem:[#allocation7 + $0x19e4] ss:$24 sps:$4 sm:$0xff]  }
 0x260   :  { %7730 = vmatpush1.bf16.msra.mxu1 %v11472_v56  ;;  %7696 = vmatprep.subr.bf16.mxu0 %v11477_v16  ;;  %v11528_v56 = vld [vmem:[#allocation7 + $0x15c] ss:$24 sps:$4 sm:$0xff]   ;;  %v11523_v16 = vld [vmem:[#allocation7 + $0x19e0] ss:$24 sps:$4 sm:$0xff]  }
 0x261   :  { %7731 = vmatprep.subr.bf16.mxu1 %v11480_v21  ;;  %v11526_v21 = vld [vmem:[#allocation7 + $0x158] ss:$24 sps:$4 sm:$0xff]  }
 0x263   :  { %7697 = vmatpush2.bf16.msra.mxu0 %v11475_v24  ;;  %v11531_v24 = vld [vmem:[#allocation7 + $0x19b4] ss:$24 sps:$4 sm:$0xff]  }
 0x264   :  { %7732 = vmatpush1.bf16.msra.mxu1 %v11478_v25  ;;  %7698 = vmatprep.subr.bf16.mxu0 %v11483_v20  ;;  %v11534_v25 = vld [vmem:[#allocation7 + $0x12c] ss:$24 sps:$4 sm:$0xff]   ;;  %v13120_v20 = vpack.c.bf16 %v2187_v10, %v2187_v10  ;;  %v11556_v10 = vld [vmem:[#allocation7 + $0x3f8] ss:$24 sps:$4 sm:$0xff]  }
 0x265   :  { %7733 = vmatprep.subr.bf16.mxu1 %v11486_v26  ;;  %v2057_v26 = vmul.f32 %v2018_v40, %v13101_v62 }
 0x267   :  { %7699 = vmatpush2.bf16.msra.mxu0 %v11481_v29  ;;  %v11532_v29 = vld [vmem:[#allocation7 + $0x128] ss:$24 sps:$4 sm:$0xff]  }
 0x268   :  { %7734 = vmatpush1.bf16.msra.mxu1 %v11484_v31  ;;  %7700 = vmatprep.subr.bf16.mxu0 %v11489_v32  ;;  %v11537_v32 = vld [vmem:[#allocation7 + $0x1984] ss:$24 sps:$4 sm:$0xff]  }
 0x269   :  { %7735 = vmatprep.subr.bf16.mxu1 %v11492_v33  ;;  %v11540_v33 = vld [vmem:[#allocation7 + $0xfc] ss:$24 sps:$4 sm:$0xff]  }
 0x26b   :  { %7701 = vmatpush2.bf16.msra.mxu0 %v11487_v35 }
 0x26c   :  { %7736 = vmatpush1.bf16.msra.mxu1 %v11490_v36  ;;  %7702 = vmatprep.subr.bf16.mxu0 %v11495_v37  ;;  %v2171_v36 = vadd.f32 %v2132_v51, %v2057_v26  ;;  %v11565_v26 = vld [vmem:[#allocation7 + $0x8] ss:$24 sps:$4 sm:$0xff]   ;;  %v11568_v51 = vld [vmem:[#allocation7 + $0x398] ss:$24 sps:$4 sm:$0xff]  }
 0x26d   :  { %7737 = vmatprep.subr.bf16.mxu1 %v11498_v38  ;;  %v11535_v38 = vld [vmem:[#allocation7 + $0x1980] ss:$24 sps:$4 sm:$0xff]  }
 0x26f   :  { %7703 = vmatpush2.bf16.msra.mxu0 %v11493_v39  ;;  %v11538_v39 = vld [vmem:[#allocation7 + $0xf8] ss:$24 sps:$4 sm:$0xff]  }
 0x270   :  { %7738 = vmatpush2.bf16.msra.mxu1 %v11496_v41  ;;  %7704 = vmatprep.subr.bf16.mxu0 %v11501_v47  ;;  %v2189_v41 = vmax.f32 %v2171_v36, 0.0  ;;  %v11577_v36 = vld [vmem:[#allocation7 + $0x2a8] ss:$24 sps:$4 sm:$0xff]  }
 0x271   :  { %7739 = vmatprep.subr.bf16.mxu1 %v11504_v44  ;;  %v11546_v44 = vld [vmem:[#allocation7 + $0x45c] ss:$24 sps:$4 sm:$0xff]  }
 0x273   :  { %7705 = vmatpush2.bf16.msra.mxu0 %v11499_v45  ;;  %v11541_v45 = vld [vmem:[#allocation7 + $0xc8] ss:$24 sps:$4 sm:$0xff]  }
 0x274   :  { %7740 = vmatpush2.bf16.msra.mxu1 %v11502_v46  ;;  %7706 = vmatprep.subr.bf16.mxu0 %v11507_v53  ;;  %v11544_v46 = vld [vmem:[#allocation7 + $0x458] ss:$24 sps:$4 sm:$0xff]   ;;  %v11549_v53 = vld [vmem:[#allocation7 + $0x9c] ss:$24 sps:$4 sm:$0xff]  }
 0x275   :  { %7741 = vmatprep.subr.bf16.mxu1 %v11510_v48  ;;  %v11552_v48 = vld [vmem:[#allocation7 + $0x42c] ss:$24 sps:$4 sm:$0xff]  }
 0x277   :  { %7707 = vmatpush2.bf16.msra.mxu0 %v11505_v57  ;;  %v13129_v57 = vpack.c.bf16 %v2189_v41, %v2189_v41  ;;  %v11591_v41 = vld [vmem:[#allocation7 + $0x24c] ss:$24 sps:$4 sm:$0xff]  }
 0x278   :  { %7742 = vmatpush2.bf16.msra.mxu1 %v11508_v58  ;;  %7708 = vmatprep.subr.bf16.mxu0 %v11513_v60  ;;  %v11550_v58 = vld [vmem:[#allocation7 + $0x428] ss:$24 sps:$4 sm:$0xff]  }
 0x279   :  { %7743 = vmatprep.subr.bf16.mxu1 %v11516_v63  ;;  %v11555_v63 = vld [vmem:[#allocation7 + $0x6c] ss:$24 sps:$4 sm:$0xff]  }
 0x27b   :  { %7709 = vmatpush2.bf16.msra.mxu0 %v11511_v30  ;;  %v11558_v30 = vld [vmem:[#allocation7 + $0x3fc] ss:$24 sps:$4 sm:$0xff]  }
 0x27c   :  { %7744 = vmatpush2.bf16.msra.mxu1 %v11514_v42  ;;  %7710 = vmatprep.subr.bf16.mxu0 %v11519_v15 }
 0x27d   :  { %7745 = vmatprep.subr.bf16.mxu1 %v11522_v2 }
 0x27f   :  { %7711 = vmatpush2.bf16.msra.mxu0 %v11517_v7 }
 0x280   :  { %7746 = vmatpush2.bf16.msra.mxu1 %v11520_v9  ;;  %7762 = vmatprep.subr.bf16.mxu0 %v11528_v56  ;;  %v11553_v9 = vld [vmem:[#allocation7 + $0x68] ss:$24 sps:$4 sm:$0xff]   ;;  %v11564_v56 = vld [vmem:[#allocation7 + $0x3cc] ss:$24 sps:$4 sm:$0xff]  }
 0x281   :  { %7747 = vmatprep.subr.bf16.mxu1 %v11525_v14  ;;  %v11561_v14 = vld [vmem:[#allocation7 + $0x3c] ss:$24 sps:$4 sm:$0xff]  }
 0x282   :  { %v7468_v31 = vpop.f32.mrf.mxu0  ;;  %7713 = vmatmul.mubr.bf16.vlgmr.msra.gmra.mxu0 %v13120_v20 }
 0x283   :  { %v7469_v35 = vadd.f32 %v7468_v31, %v13111_v54  ;;  %7763 = vmatpush1.bf16.msra.mxu0 %v11526_v21  ;;  %7794 = vmatprep.mubr.bf16.mxu0 %v12962_v59  ;;  %v11543_v54 = vld [vmem:[#allocation7 + $0xcc] ss:$24 sps:$4 sm:$0xff]   ;;  %v11562_v21 = vld [vmem:[#allocation7 + $0x3c8] ss:$24 sps:$4 sm:$0xff]   ;;  %v11571_v31 = vld [vmem:[#allocation7 + $0x2d8] ss:$24 sps:$4 sm:$0xff]  }
 0x284   :  { %7748 = vmatpush2.bf16.msra.mxu1 %v11523_v16  ;;  %v7470_v62 = vpop.f32.mrf.mxu0  ;;  %7764 = vmatprep.subr.bf16.mxu0 %v11534_v25  ;;  %v11559_v16 = vld [vmem:[#allocation7 + $0x38] ss:$24 sps:$4 sm:$0xff]   ;;  %v11570_v25 = vld [vmem:[#allocation7 + $0x39c] ss:$24 sps:$4 sm:$0xff]  }
 0x285   :  { %7749 = vmatprep.subr.bf16.mxu1 %v11531_v24  ;;  %v7471_v12 = vadd.f32 %v7470_v62, %v13114_v43  ;;  %v11547_v43 = vld [vmem:[#allocation7 + $0x98] ss:$24 sps:$4 sm:$0xff]   ;;  %v11567_v24 = vld [vmem:[#allocation7 + $0xc] ss:$24 sps:$4 sm:$0xff]  }
 0x286   :  { %v7472_v37 = vpop.f32.mrf.mxu0  ;;  %v11580_v62 = vld [vmem:[#allocation7 + $0x338] ss:$24 sps:$4 sm:$0xff]  }
 0x287   :  { %7765 = vmatpush1.bf16.msra.mxu0 %v11532_v29  ;;  %v11576_v29 = vld [vmem:[#allocation7 + $0x36c] ss:$24 sps:$4 sm:$0xff]  }
 0x288   :  { %7750 = vmatpush2.bf16.msra.mxu1 %v11529_v3  ;;  %v7473_v47 = vpop.f32.mrf.mxu0  ;;  %7766 = vmatprep.subr.bf16.mxu0 %v11540_v33  ;;  %v11573_v3 = vld [vmem:[#allocation7 + $0x2dc] ss:$24 sps:$4 sm:$0xff]   ;;  %v11579_v33 = vld [vmem:[#allocation7 + $0x2ac] ss:$24 sps:$4 sm:$0xff]  }
 0x289   :  { %7751 = vmatprep.subr.bf16.mxu1 %v11537_v32  ;;  %v11574_v32 = vld [vmem:[#allocation7 + $0x368] ss:$24 sps:$4 sm:$0xff]   ;;  %v11588_v37 = vld [vmem:[#allocation7 + $0x30c] ss:$24 sps:$4 sm:$0xff]   ;;  %v11594_v47 = vld [vmem:[#allocation7 + $0x5dc] ss:$24 sps:$4 sm:$0xff]  }
 0x28b   :  { %7767 = vmatpush1.bf16.msra.mxu0 %v11538_v39  ;;  %v11586_v39 = vld [vmem:[#allocation7 + $0x308] ss:$24 sps:$4 sm:$0xff]  }
 0x28c   :  { %7752 = vmatpush2.bf16.msra.mxu1 %v11535_v38  ;;  %7768 = vmatprep.subr.bf16.mxu0 %v11543_v54  ;;  %v11583_v38 = vld [vmem:[#allocation7 + $0x278] ss:$24 sps:$4 sm:$0xff]   ;;  %v11589_v54 = vld [vmem:[#allocation7 + $0x248] ss:$24 sps:$4 sm:$0xff]  }
 0x28d   :  { %7803 = vmatprep.subr.bf16.mxu1 %v11546_v44  ;;  %v11592_v44 = vld [vmem:[#allocation7 + $0x5d8] ss:$24 sps:$4 sm:$0xff]  }
 0x28f   :  { %v7509_v60 = vpop.f32.mrf.mxu1  ;;  %7754 = vmatmul.mubr.bf16.vlgmr.msra.gmra.mxu1 %v13129_v57  ;;  %7769 = vmatpush1.bf16.msra.mxu0 %v11541_v45  ;;  %v11597_v45 = vld [vmem:[#allocation7 + $0x21c] ss:$24 sps:$4 sm:$0xff]  }
 0x290   :  { %v13132_v42 = vadd.f32 %v7509_v60, %v7469_v35  ;;  %7804 = vmatpush1.bf16.msra.mxu1 %v11544_v46  ;;  %7835 = vmatprep.mubr.bf16.mxu1 %v12969_v8  ;;  %v11582_v35 = vld [vmem:[#allocation7 + $0x33c] ss:$24 sps:$4 sm:$0xff]   ;;  %v11600_v46 = vld [vmem:[#allocation7 + $0x5ac] ss:$24 sps:$4 sm:$0xff]   ;;  %v11601_v60 = vld [vmem:[#allocation7 + $0x1e8] ss:$24 sps:$4 sm:$0xff]  }
 0x291   :  { %v7511_v15 = vpop.f32.mrf.mxu1  ;;  %7770 = vmatprep.subr.bf16.mxu0 %v11549_v53  ;;  %7805 = vmatprep.subr.bf16.mxu1 %v11552_v48  ;;  %v11595_v53 = vld [vmem:[#allocation7 + $0x218] ss:$24 sps:$4 sm:$0xff]   ;;  %v11598_v48 = vld [vmem:[#allocation7 + $0x5a8] ss:$24 sps:$4 sm:$0xff]  }
 0x292   :  { %v13135_v2 = vadd.f32 %v7511_v15, %v7471_v12  ;;  %v11585_v12 = vld [vmem:[#allocation7 + $0x27c] ss:$24 sps:$4 sm:$0xff]   ;;  %v11612_v15 = vld [vmem:[#allocation7 + $0x54c] ss:$24 sps:$4 sm:$0xff]  }
 0x293   :  { %v7513_v7 = vpop.f32.mrf.mxu1  ;;  %7771 = vmatpush1.bf16.msra.mxu0 %v11547_v43  ;;  %v11603_v43 = vld [vmem:[#allocation7 + $0x1ec] ss:$24 sps:$4 sm:$0xff]  }
 0x294   :  { %7806 = vmatpush1.bf16.msra.mxu1 %v11550_v58  ;;  %7772 = vmatprep.subr.bf16.mxu0 %v11555_v63  ;;  %v11606_v58 = vld [vmem:[#allocation7 + $0x57c] ss:$24 sps:$4 sm:$0xff]   ;;  %v11604_v63 = vld [vmem:[#allocation7 + $0x578] ss:$24 sps:$4 sm:$0xff]  }
 0x295   :  { %v7514_v40 = vpop.f32.mrf.mxu1  ;;  %7807 = vmatprep.subr.bf16.mxu1 %v11558_v30  ;;  %v11609_v30 = vld [vmem:[#allocation7 + $0x1bc] ss:$24 sps:$4 sm:$0xff]   ;;  %v11607_v7 = vld [vmem:[#allocation7 + $0x1b8] ss:$24 sps:$4 sm:$0xff]  }
 0x296   :  { %v11618_v40 = vld [vmem:[#allocation7 + $0x51c] ss:$24 sps:$4 sm:$0xff]  }
 0x297   :  { %7773 = vmatpush1.bf16.msra.mxu0 %v11553_v9  ;;  %v11610_v9 = vld [vmem:[#allocation7 + $0x548] ss:$24 sps:$4 sm:$0xff]  }
 0x298   :  { %7808 = vmatpush1.bf16.msra.mxu1 %v11556_v10  ;;  %7774 = vmatprep.subr.bf16.mxu0 %v11561_v14  ;;  %v11615_v10 = vld [vmem:[#allocation7 + $0x18c] ss:$24 sps:$4 sm:$0xff]   ;;  %v11613_v14 = vld [vmem:[#allocation7 + $0x188] ss:$24 sps:$4 sm:$0xff]  }
 0x299   :  { %7809 = vmatprep.subr.bf16.mxu1 %v11564_v56  ;;  %v11616_v56 = vld [vmem:[#allocation7 + $0x518] ss:$24 sps:$4 sm:$0xff]  }
 0x29b   :  { %7775 = vmatpush1.bf16.msra.mxu0 %v11559_v16  ;;  %v11621_v16 = vld [vmem:[#allocation7 + $0x4ec] ss:$24 sps:$4 sm:$0xff]  }
 0x29c   :  { %7810 = vmatpush1.bf16.msra.mxu1 %v11562_v21  ;;  %7776 = vmatprep.subr.bf16.mxu0 %v11567_v24  ;;  %v11624_v21 = vld [vmem:[#allocation7 + $0x75c] ss:$24 sps:$4 sm:$0xff]   ;;  %v11619_v24 = vld [vmem:[#allocation7 + $0x4e8] ss:$24 sps:$4 sm:$0xff]  }
 0x29d   :  { %7811 = vmatprep.subr.bf16.mxu1 %v11570_v25  ;;  %v11622_v25 = vld [vmem:[#allocation7 + $0x758] ss:$24 sps:$4 sm:$0xff]  }
 0x29f   :  { %7777 = vmatpush1.bf16.msra.mxu0 %v11565_v26  ;;  %v11627_v26 = vld [vmem:[#allocation7 + $0x4bc] ss:$24 sps:$4 sm:$0xff]  }
 0x2a0   :  { %7812 = vmatpush1.bf16.msra.mxu1 %v11568_v51  ;;  %7778 = vmatprep.subr.bf16.mxu0 %v11573_v3  ;;  %v11630_v51 = vld [vmem:[#allocation7 + $0x72c] ss:$24 sps:$4 sm:$0xff]   ;;  %v11625_v3 = vld [vmem:[#allocation7 + $0x4b8] ss:$24 sps:$4 sm:$0xff]  }
 0x2a1   :  { %7813 = vmatprep.subr.bf16.mxu1 %v11576_v29  ;;  %v11628_v29 = vld [vmem:[#allocation7 + $0x728] ss:$24 sps:$4 sm:$0xff]  }
 0x2a3   :  { %7779 = vmatpush2.bf16.msra.mxu0 %v11571_v31 }
 0x2a4   :  { %7814 = vmatpush1.bf16.msra.mxu1 %v11574_v32  ;;  %7780 = vmatprep.subr.bf16.mxu0 %v11579_v33  ;;  %v11633_v32 = vld [vmem:[#allocation7 + $0x48c] ss:$24 sps:$4 sm:$0xff]   ;;  %v11636_v33 = vld [vmem:[#allocation7 + $0x6fc] ss:$24 sps:$4 sm:$0xff]  }
 0x2a5   :  { %7815 = vmatprep.subr.bf16.mxu1 %v11582_v35 }
 0x2a7   :  { %7781 = vmatpush2.bf16.msra.mxu0 %v11577_v36 }
 0x2a8   :  { %7816 = vmatpush1.bf16.msra.mxu1 %v11580_v62  ;;  %7782 = vmatprep.subr.bf16.mxu0 %v11585_v12 }
 0x2a9   :  { %7817 = vmatprep.subr.bf16.mxu1 %v11588_v37  ;;  %v11631_v37 = vld [vmem:[#allocation7 + $0x488] ss:$24 sps:$4 sm:$0xff]  }
 0x2ab   :  { %7783 = vmatpush2.bf16.msra.mxu0 %v11583_v38  ;;  %v11634_v38 = vld [vmem:[#allocation7 + $0x6f8] ss:$24 sps:$4 sm:$0xff]  }
 0x2ac   :  { %7818 = vmatpush1.bf16.msra.mxu1 %v11586_v39  ;;  %7784 = vmatprep.subr.bf16.mxu0 %v11591_v41  ;;  %v11639_v41 = vld [vmem:[#allocation7 + $0x6cc] ss:$24 sps:$4 sm:$0xff]  }
 0x2ad   :  { %7819 = vmatprep.subr.bf16.mxu1 %v11594_v47  ;;  %v11642_v47 = vld [vmem:[#allocation7 + $0xa5c] ss:$24 sps:$4 sm:$0xff]  }
 0x2af   :  { %7785 = vmatpush2.bf16.msra.mxu0 %v11589_v54  ;;  %v11640_v54 = vld [vmem:[#allocation7 + $0xa58] ss:$24 sps:$4 sm:$0xff]  }
 0x2b0   :  { %7820 = vmatpush2.bf16.msra.mxu1 %v11592_v44  ;;  %7786 = vmatprep.subr.bf16.mxu0 %v11597_v45  ;;  %v11645_v44 = vld [vmem:[#allocation7 + $0x69c] ss:$24 sps:$4 sm:$0xff]   ;;  %v11643_v45 = vld [vmem:[#allocation7 + $0x698] ss:$24 sps:$4 sm:$0xff]  }
 0x2b1   :  { %7821 = vmatprep.subr.bf16.mxu1 %v11600_v46 }
 0x2b3   :  { %7787 = vmatpush2.bf16.msra.mxu0 %v11595_v53  ;;  %v11646_v53 = vld [vmem:[#allocation7 + $0xa28] ss:$24 sps:$4 sm:$0xff]  }
 0x2b4   :  { %7822 = vmatpush2.bf16.msra.mxu1 %v11598_v48  ;;  %7788 = vmatprep.subr.bf16.mxu0 %v11603_v43  ;;  %v11651_v48 = vld [vmem:[#allocation7 + $0x66c] ss:$24 sps:$4 sm:$0xff]  }
 0x2b5   :  { %7823 = vmatprep.subr.bf16.mxu1 %v11606_v58  ;;  %v11654_v58 = vld [vmem:[#allocation7 + $0x9fc] ss:$24 sps:$4 sm:$0xff]  }
 0x2b7   :  { %7789 = vmatpush2.bf16.msra.mxu0 %v11601_v60 }
 0x2b8   :  { %7824 = vmatpush2.bf16.msra.mxu1 %v11604_v63  ;;  %7790 = vmatprep.subr.bf16.mxu0 %v11609_v30  ;;  %v11649_v30 = vld [vmem:[#allocation7 + $0x668] ss:$24 sps:$4 sm:$0xff]  }
 0x2b9   :  { %7825 = vmatprep.subr.bf16.mxu1 %v11612_v15  ;;  %v11652_v15 = vld [vmem:[#allocation7 + $0x9f8] ss:$24 sps:$4 sm:$0xff]  }
 0x2bb   :  { %7791 = vmatpush2.bf16.msra.mxu0 %v11607_v7 }
 0x2bc   :  { %7826 = vmatpush2.bf16.msra.mxu1 %v11610_v9  ;;  %7792 = vmatprep.subr.bf16.mxu0 %v11615_v10  ;;  %v11657_v9 = vld [vmem:[#allocation7 + $0x63c] ss:$24 sps:$4 sm:$0xff]   ;;  %v11660_v10 = vld [vmem:[#allocation7 + $0x9cc] ss:$24 sps:$4 sm:$0xff]  }
 0x2bd   :  { %7827 = vmatprep.subr.bf16.mxu1 %v11618_v40 }
 0x2bf   :  { %7793 = vmatpush2.bf16.msra.mxu0 %v11613_v14  ;;  %v11655_v14 = vld [vmem:[#allocation7 + $0x638] ss:$24 sps:$4 sm:$0xff]  }
 0x2c0   :  { %7828 = vmatpush2.bf16.msra.mxu1 %v11616_v56  ;;  %7844 = vmatprep.subr.bf16.mxu0 %v11624_v21  ;;  %v11658_v56 = vld [vmem:[#allocation7 + $0x9c8] ss:$24 sps:$4 sm:$0xff]   ;;  %v11666_v21 = vld [vmem:[#allocation7 + $0x99c] ss:$24 sps:$4 sm:$0xff]  }
 0x2c1   :  { %7829 = vmatprep.subr.bf16.mxu1 %v11621_v16  ;;  %v11663_v16 = vld [vmem:[#allocation7 + $0x60c] ss:$24 sps:$4 sm:$0xff]  }
 0x2c2   :  { %v7550_v31 = vpop.f32.mrf.mxu0  ;;  %7795 = vmatmul.mubr.bf16.vlgmr.msra.gmra.mxu0 %v12973_v28 }
 0x2c3   :  { %v7551_v35 = vadd.f32 %v7550_v31, %v13132_v42  ;;  %7845 = vmatpush1.bf16.msra.mxu0 %v11622_v25  ;;  %7876 = vmatprep.mubr.bf16.mxu0 %v13008_v34  ;;  %v11637_v42 = vld [vmem:[#allocation7 + $0x6c8] ss:$24 sps:$4 sm:$0xff]   ;;  %v11664_v25 = vld [vmem:[#allocation7 + $0x998] ss:$24 sps:$4 sm:$0xff]   ;;  %v11675_v31 = vld [vmem:[#allocation7 + $0x8ac] ss:$24 sps:$4 sm:$0xff]  }
 0x2c4   :  { %7830 = vmatpush2.bf16.msra.mxu1 %v11619_v24  ;;  %v7552_v36 = vpop.f32.mrf.mxu0  ;;  %7846 = vmatprep.subr.bf16.mxu0 %v11630_v51  ;;  %v11661_v24 = vld [vmem:[#allocation7 + $0x608] ss:$24 sps:$4 sm:$0xff]   ;;  %v11672_v51 = vld [vmem:[#allocation7 + $0x96c] ss:$24 sps:$4 sm:$0xff]  }
 0x2c5   :  { %7831 = vmatprep.subr.bf16.mxu1 %v11627_v26  ;;  %v7553_v62 = vadd.f32 %v7552_v36, %v13135_v2  ;;  %v11648_v2 = vld [vmem:[#allocation7 + $0xa2c] ss:$24 sps:$4 sm:$0xff]   ;;  %v11669_v26 = vld [vmem:[#allocation7 + $0x8dc] ss:$24 sps:$4 sm:$0xff]  }
 0x2c6   :  { %v7554_v12 = vpop.f32.mrf.mxu0  ;;  %v11681_v36 = vld [vmem:[#allocation7 + $0x87c] ss:$24 sps:$4 sm:$0xff]  }
 0x2c7   :  { %7847 = vmatpush1.bf16.msra.mxu0 %v11628_v29  ;;  %v11670_v29 = vld [vmem:[#allocation7 + $0x968] ss:$24 sps:$4 sm:$0xff]   ;;  %v11679_v12 = vld [vmem:[#allocation7 + $0x878] ss:$24 sps:$4 sm:$0xff]  }
 0x2c8   :  { %7832 = vmatpush2.bf16.msra.mxu1 %v11625_v3  ;;  %v7555_v39 = vpop.f32.mrf.mxu0  ;;  %7848 = vmatprep.subr.bf16.mxu0 %v11636_v33  ;;  %v11667_v3 = vld [vmem:[#allocation7 + $0x8d8] ss:$24 sps:$4 sm:$0xff]   ;;  %v11673_v33 = vld [vmem:[#allocation7 + $0x8a8] ss:$24 sps:$4 sm:$0xff]  }
 0x2c9   :  { %7833 = vmatprep.subr.bf16.mxu1 %v11633_v32  ;;  %v11678_v32 = vld [vmem:[#allocation7 + $0x93c] ss:$24 sps:$4 sm:$0xff]  }
 0x2ca   :  { %v11690_v39 = vld [vmem:[#allocation7 + $0xbdc] ss:$24 sps:$4 sm:$0xff]  }
 0x2cb   :  { %7849 = vmatpush1.bf16.msra.mxu0 %v11634_v38  ;;  %v11687_v38 = vld [vmem:[#allocation7 + $0x84c] ss:$24 sps:$4 sm:$0xff]  }
 0x2cc   :  { %7834 = vmatpush2.bf16.msra.mxu1 %v11631_v37  ;;  %7850 = vmatprep.subr.bf16.mxu0 %v11639_v41  ;;  %v11682_v37 = vld [vmem:[#allocation7 + $0x908] ss:$24 sps:$4 sm:$0xff]  }
 0x2cd   :  { %7885 = vmatprep.subr.bf16.mxu1 %v11642_v47  ;;  %v11685_v41 = vld [vmem:[#allocation7 + $0x848] ss:$24 sps:$4 sm:$0xff]   ;;  %v11688_v47 = vld [vmem:[#allocation7 + $0xbd8] ss:$24 sps:$4 sm:$0xff]  }
 0x2cf   :  { %v7591_v46 = vpop.f32.mrf.mxu1  ;;  %7836 = vmatmul.mubr.bf16.vlgmr.msra.gmra.mxu1 %v13012_v11  ;;  %7851 = vmatpush1.bf16.msra.mxu0 %v11637_v42  ;;  %v11693_v42 = vld [vmem:[#allocation7 + $0x81c] ss:$24 sps:$4 sm:$0xff]  }
 0x2d0   :  { %v13142_v43 = vadd.f32 %v7591_v46, %v7551_v35  ;;  %7886 = vmatpush1.bf16.msra.mxu1 %v11640_v54  ;;  %7917 = vmatprep.mubr.bf16.mxu1 %v13014_v1  ;;  %v11676_v35 = vld [vmem:[#allocation7 + $0x938] ss:$24 sps:$4 sm:$0xff]   ;;  %v11696_v54 = vld [vmem:[#allocation7 + $0xbac] ss:$24 sps:$4 sm:$0xff]   ;;  %v11702_v46 = vld [vmem:[#allocation7 + $0xb7c] ss:$24 sps:$4 sm:$0xff]  }
 0x2d1   :  { %v7593_v60 = vpop.f32.mrf.mxu1  ;;  %7852 = vmatprep.subr.bf16.mxu0 %v11645_v44  ;;  %7887 = vmatprep.subr.bf16.mxu1 %v11648_v2  ;;  %v11691_v44 = vld [vmem:[#allocation7 + $0x818] ss:$24 sps:$4 sm:$0xff]   ;;  %v11699_v2 = vld [vmem:[#allocation7 + $0x7ec] ss:$24 sps:$4 sm:$0xff]  }
 0x2d2   :  { %v13145_v63 = vadd.f32 %v7593_v60, %v7553_v62  ;;  %v11684_v62 = vld [vmem:[#allocation7 + $0x90c] ss:$24 sps:$4 sm:$0xff]  }
 0x2d3   :  { %v7595_v7 = vpop.f32.mrf.mxu1  ;;  %7853 = vmatpush1.bf16.msra.mxu0 %v11643_v45  ;;  %v11694_v45 = vld [vmem:[#allocation7 + $0xba8] ss:$24 sps:$4 sm:$0xff]   ;;  %v11708_v60 = vld [vmem:[#allocation7 + $0xb4c] ss:$24 sps:$4 sm:$0xff]  }
 0x2d4   :  { %7888 = vmatpush1.bf16.msra.mxu1 %v11646_v53  ;;  %7854 = vmatprep.subr.bf16.mxu0 %v11651_v48  ;;  %v11697_v53 = vld [vmem:[#allocation7 + $0x7e8] ss:$24 sps:$4 sm:$0xff]   ;;  %v11700_v48 = vld [vmem:[#allocation7 + $0xb78] ss:$24 sps:$4 sm:$0xff]   ;;  %v11711_v7 = vld [vmem:[#allocation7 + $0x78c] ss:$24 sps:$4 sm:$0xff]  }
 0x2d5   :  { %v7596_v40 = vpop.f32.mrf.mxu1  ;;  %7889 = vmatprep.subr.bf16.mxu1 %v11654_v58  ;;  %v11705_v58 = vld [vmem:[#allocation7 + $0x7bc] ss:$24 sps:$4 sm:$0xff]  }
 0x2d6   :  { %v11712_v40 = vld [vmem:[#allocation7 + $0xb18] ss:$24 sps:$4 sm:$0xff]  }
 0x2d7   :  { %7855 = vmatpush1.bf16.msra.mxu0 %v11649_v30  ;;  %v11703_v30 = vld [vmem:[#allocation7 + $0x7b8] ss:$24 sps:$4 sm:$0xff]  }
 0x2d8   :  { %7890 = vmatpush1.bf16.msra.mxu1 %v11652_v15  ;;  %7856 = vmatprep.subr.bf16.mxu0 %v11657_v9  ;;  %v11706_v15 = vld [vmem:[#allocation7 + $0xb48] ss:$24 sps:$4 sm:$0xff]   ;;  %v11714_v9 = vld [vmem:[#allocation7 + $0xb1c] ss:$24 sps:$4 sm:$0xff]  }
 0x2d9   :  { %7891 = vmatprep.subr.bf16.mxu1 %v11660_v10  ;;  %v11709_v10 = vld [vmem:[#allocation7 + $0x788] ss:$24 sps:$4 sm:$0xff]  }
 0x2db   :  { %7857 = vmatpush1.bf16.msra.mxu0 %v11655_v14  ;;  %v11717_v14 = vld [vmem:[#allocation7 + $0xaec] ss:$24 sps:$4 sm:$0xff]  }
 0x2dc   :  { %7892 = vmatpush1.bf16.msra.mxu1 %v11658_v56  ;;  %7858 = vmatprep.subr.bf16.mxu0 %v11663_v16  ;;  %v11720_v56 = vld [vmem:[#allocation7 + $0xd5c] ss:$24 sps:$4 sm:$0xff]   ;;  %v11715_v16 = vld [vmem:[#allocation7 + $0xae8] ss:$24 sps:$4 sm:$0xff]  }
 0x2dd   :  { %7893 = vmatprep.subr.bf16.mxu1 %v11666_v21  ;;  %v11718_v21 = vld [vmem:[#allocation7 + $0xd58] ss:$24 sps:$4 sm:$0xff]  }
 0x2df   :  { %7859 = vmatpush1.bf16.msra.mxu0 %v11661_v24  ;;  %v11723_v24 = vld [vmem:[#allocation7 + $0xabc] ss:$24 sps:$4 sm:$0xff]  }
 0x2e0   :  { %7894 = vmatpush1.bf16.msra.mxu1 %v11664_v25  ;;  %7860 = vmatprep.subr.bf16.mxu0 %v11669_v26  ;;  %v11726_v25 = vld [vmem:[#allocation7 + $0xd2c] ss:$24 sps:$4 sm:$0xff]   ;;  %v11721_v26 = vld [vmem:[#allocation7 + $0xab8] ss:$24 sps:$4 sm:$0xff]  }
 0x2e1   :  { %7895 = vmatprep.subr.bf16.mxu1 %v11672_v51  ;;  %v11724_v51 = vld [vmem:[#allocation7 + $0xd28] ss:$24 sps:$4 sm:$0xff]  }
 0x2e3   :  { %7861 = vmatpush2.bf16.msra.mxu0 %v11667_v3 }
 0x2e4   :  { %7896 = vmatpush1.bf16.msra.mxu1 %v11670_v29  ;;  %7862 = vmatprep.subr.bf16.mxu0 %v11675_v31  ;;  %v11729_v29 = vld [vmem:[#allocation7 + $0xa8c] ss:$24 sps:$4 sm:$0xff]   ;;  %v11732_v31 = vld [vmem:[#allocation7 + $0xcfc] ss:$24 sps:$4 sm:$0xff]  }
 0x2e5   :  { %7897 = vmatprep.subr.bf16.mxu1 %v11678_v32 }
 0x2e7   :  { %7863 = vmatpush2.bf16.msra.mxu0 %v11673_v33 }
 0x2e8   :  { %7898 = vmatpush1.bf16.msra.mxu1 %v11676_v35  ;;  %7864 = vmatprep.subr.bf16.mxu0 %v11681_v36 }
 0x2e9   :  { %7899 = vmatprep.subr.bf16.mxu1 %v11684_v62  ;;  %v11727_v62 = vld [vmem:[#allocation7 + $0xa88] ss:$24 sps:$4 sm:$0xff]  }
 0x2eb   :  { %7865 = vmatpush2.bf16.msra.mxu0 %v11679_v12  ;;  %v11730_v12 = vld [vmem:[#allocation7 + $0xcf8] ss:$24 sps:$4 sm:$0xff]  }
 0x2ec   :  { %7900 = vmatpush1.bf16.msra.mxu1 %v11682_v37  ;;  %7866 = vmatprep.subr.bf16.mxu0 %v11687_v38  ;;  %v11735_v38 = vld [vmem:[#allocation7 + $0xccc] ss:$24 sps:$4 sm:$0xff]  }
 0x2ed   :  { %7901 = vmatprep.subr.bf16.mxu1 %v11690_v39  ;;  %v11738_v39 = vld [vmem:[#allocation7 + $0x105c] ss:$24 sps:$4 sm:$0xff]  }
 0x2ef   :  { %7867 = vmatpush2.bf16.msra.mxu0 %v11685_v41  ;;  %v11736_v41 = vld [vmem:[#allocation7 + $0x1058] ss:$24 sps:$4 sm:$0xff]  }
 0x2f0   :  { %7902 = vmatpush2.bf16.msra.mxu1 %v11688_v47  ;;  %7868 = vmatprep.subr.bf16.mxu0 %v11693_v42  ;;  %v11741_v47 = vld [vmem:[#allocation7 + $0xc9c] ss:$24 sps:$4 sm:$0xff]   ;;  %v11744_v42 = vld [vmem:[#allocation7 + $0x102c] ss:$24 sps:$4 sm:$0xff]  }
 0x2f1   :  { %7903 = vmatprep.subr.bf16.mxu1 %v11696_v54  ;;  %v11742_v54 = vld [vmem:[#allocation7 + $0x1028] ss:$24 sps:$4 sm:$0xff]  }
 0x2f3   :  { %7869 = vmatpush2.bf16.msra.mxu0 %v11691_v44 }
 0x2f4   :  { %7904 = vmatpush2.bf16.msra.mxu1 %v11694_v45  ;;  %7870 = vmatprep.subr.bf16.mxu0 %v11699_v2  ;;  %v11747_v45 = vld [vmem:[#allocation7 + $0xc6c] ss:$24 sps:$4 sm:$0xff]   ;;  %v11750_v2 = vld [vmem:[#allocation7 + $0xffc] ss:$24 sps:$4 sm:$0xff]  }
 0x2f5   :  { %7905 = vmatprep.subr.bf16.mxu1 %v11702_v46 }
 0x2f7   :  { %7871 = vmatpush2.bf16.msra.mxu0 %v11697_v53 }
 0x2f8   :  { %7906 = vmatpush2.bf16.msra.mxu1 %v11700_v48  ;;  %7872 = vmatprep.subr.bf16.mxu0 %v11705_v58 }
 0x2f9   :  { %7907 = vmatprep.subr.bf16.mxu1 %v11708_v60  ;;  %v11745_v60 = vld [vmem:[#allocation7 + $0xc68] ss:$24 sps:$4 sm:$0xff]  }
 0x2fb   :  { %7873 = vmatpush2.bf16.msra.mxu0 %v11703_v30  ;;  %v11748_v30 = vld [vmem:[#allocation7 + $0xff8] ss:$24 sps:$4 sm:$0xff]  }
 0x2fc   :  { %7908 = vmatpush2.bf16.msra.mxu1 %v11706_v15  ;;  %7874 = vmatprep.subr.bf16.mxu0 %v11711_v7  ;;  %v11753_v7 = vld [vmem:[#allocation7 + $0xc3c] ss:$24 sps:$4 sm:$0xff]  }
 0x2fd   :  { %7909 = vmatprep.subr.bf16.mxu1 %v11714_v9  ;;  %v11756_v9 = vld [vmem:[#allocation7 + $0xfcc] ss:$24 sps:$4 sm:$0xff]  }
 0x2ff   :  { %7875 = vmatpush2.bf16.msra.mxu0 %v11709_v10  ;;  %v11751_v10 = vld [vmem:[#allocation7 + $0xc38] ss:$24 sps:$4 sm:$0xff]  }
 0x300   :  { %7910 = vmatpush2.bf16.msra.mxu1 %v11712_v40  ;;  %7926 = vmatprep.subr.bf16.mxu0 %v11720_v56  ;;  %v11754_v40 = vld [vmem:[#allocation7 + $0xfc8] ss:$24 sps:$4 sm:$0xff]   ;;  %v11762_v56 = vld [vmem:[#allocation7 + $0xf9c] ss:$24 sps:$4 sm:$0xff]  }
 0x301   :  { %7911 = vmatprep.subr.bf16.mxu1 %v11717_v14  ;;  %v11759_v14 = vld [vmem:[#allocation7 + $0xc0c] ss:$24 sps:$4 sm:$0xff]  }
 0x302   :  { %v7632_v3 = vpop.f32.mrf.mxu0  ;;  %7877 = vmatmul.mubr.bf16.vlgmr.msra.gmra.mxu0 %v13019_v18 }
 0x303   :  { %v7633_v32 = vadd.f32 %v7632_v3, %v13142_v43  ;;  %7927 = vmatpush1.bf16.msra.mxu0 %v11718_v21  ;;  %7958 = vmatprep.mubr.bf16.mxu0 %v13040_v5  ;;  %v11733_v43 = vld [vmem:[#allocation7 + $0xcc8] ss:$24 sps:$4 sm:$0xff]   ;;  %v11760_v21 = vld [vmem:[#allocation7 + $0xf98] ss:$24 sps:$4 sm:$0xff]   ;;  %v11771_v3 = vld [vmem:[#allocation7 + $0xeac] ss:$24 sps:$4 sm:$0xff]  }
 0x304   :  { %7912 = vmatpush2.bf16.msra.mxu1 %v11715_v16  ;;  %v7634_v33 = vpop.f32.mrf.mxu0  ;;  %7928 = vmatprep.subr.bf16.mxu0 %v11726_v25  ;;  %v11757_v16 = vld [vmem:[#allocation7 + $0xc08] ss:$24 sps:$4 sm:$0xff]   ;;  %v11768_v25 = vld [vmem:[#allocation7 + $0xf6c] ss:$24 sps:$4 sm:$0xff]  }
 0x305   :  { %7913 = vmatprep.subr.bf16.mxu1 %v11723_v24  ;;  %v7635_v35 = vadd.f32 %v7634_v33, %v13145_v63  ;;  %v11739_v63 = vld [vmem:[#allocation7 + $0xc98] ss:$24 sps:$4 sm:$0xff]   ;;  %v11765_v24 = vld [vmem:[#allocation7 + $0xedc] ss:$24 sps:$4 sm:$0xff]  }
 0x306   :  { %v7636_v36 = vpop.f32.mrf.mxu0  ;;  %v11777_v33 = vld [vmem:[#allocation7 + $0xe7c] ss:$24 sps:$4 sm:$0xff]  }
 0x307   :  { %7929 = vmatpush1.bf16.msra.mxu0 %v11724_v51  ;;  %v11766_v51 = vld [vmem:[#allocation7 + $0xf68] ss:$24 sps:$4 sm:$0xff]   ;;  %v11775_v36 = vld [vmem:[#allocation7 + $0xe78] ss:$24 sps:$4 sm:$0xff]  }
 0x308   :  { %7914 = vmatpush2.bf16.msra.mxu1 %v11721_v26  ;;  %v7637_v37 = vpop.f32.mrf.mxu0  ;;  %7930 = vmatprep.subr.bf16.mxu0 %v11732_v31  ;;  %v11763_v26 = vld [vmem:[#allocation7 + $0xed8] ss:$24 sps:$4 sm:$0xff]   ;;  %v11769_v31 = vld [vmem:[#allocation7 + $0xea8] ss:$24 sps:$4 sm:$0xff]  }
 0x309   :  { %7915 = vmatprep.subr.bf16.mxu1 %v11729_v29  ;;  %v11774_v29 = vld [vmem:[#allocation7 + $0xf3c] ss:$24 sps:$4 sm:$0xff]  }
 0x30a   :  { %v11786_v37 = vld [vmem:[#allocation7 + $0x11dc] ss:$24 sps:$4 sm:$0xff]  }
 0x30b   :  { %7931 = vmatpush1.bf16.msra.mxu0 %v11730_v12  ;;  %v11783_v12 = vld [vmem:[#allocation7 + $0xe4c] ss:$24 sps:$4 sm:$0xff]  }
 0x30c   :  { %7916 = vmatpush2.bf16.msra.mxu1 %v11727_v62  ;;  %7932 = vmatprep.subr.bf16.mxu0 %v11735_v38  ;;  %v11778_v62 = vld [vmem:[#allocation7 + $0xf08] ss:$24 sps:$4 sm:$0xff]  }
 0x30d   :  { %7967 = vmatprep.subr.bf16.mxu1 %v11738_v39  ;;  %v11781_v38 = vld [vmem:[#allocation7 + $0xe48] ss:$24 sps:$4 sm:$0xff]   ;;  %v11784_v39 = vld [vmem:[#allocation7 + $0x11d8] ss:$24 sps:$4 sm:$0xff]  }
 0x30f   :  { %v7673_v44 = vpop.f32.mrf.mxu1  ;;  %7918 = vmatmul.mubr.bf16.vlgmr.msra.gmra.mxu1 %v13051_v0  ;;  %7933 = vmatpush1.bf16.msra.mxu0 %v11733_v43  ;;  %v11789_v43 = vld [vmem:[#allocation7 + $0xe1c] ss:$24 sps:$4 sm:$0xff]  }
 0x310   :  { %v13152_v46 = vadd.f32 %v7673_v44, %v7633_v32  ;;  %7968 = vmatpush1.bf16.msra.mxu1 %v11736_v41  ;;  %7999 = vmatprep.mubr.bf16.mxu1 %v13056_v6  ;;  %v11772_v32 = vld [vmem:[#allocation7 + $0xf38] ss:$24 sps:$4 sm:$0xff]   ;;  %v11792_v41 = vld [vmem:[#allocation7 + $0x11ac] ss:$24 sps:$4 sm:$0xff]   ;;  %v11793_v44 = vld [vmem:[#allocation7 + $0xde8] ss:$24 sps:$4 sm:$0xff]  }
 0x311   :  { %v7675_v53 = vpop.f32.mrf.mxu1  ;;  %7934 = vmatprep.subr.bf16.mxu0 %v11741_v47  ;;  %7969 = vmatprep.subr.bf16.mxu1 %v11744_v42  ;;  %v11787_v47 = vld [vmem:[#allocation7 + $0xe18] ss:$24 sps:$4 sm:$0xff]   ;;  %v11790_v42 = vld [vmem:[#allocation7 + $0x11a8] ss:$24 sps:$4 sm:$0xff]  }
 0x312   :  { %v13155_v48 = vadd.f32 %v7675_v53, %v7635_v35  ;;  %v11780_v35 = vld [vmem:[#allocation7 + $0xf0c] ss:$24 sps:$4 sm:$0xff]  }
 0x313   :  { %v7677_v58 = vpop.f32.mrf.mxu1  ;;  %7935 = vmatpush1.bf16.msra.mxu0 %v11739_v63  ;;  %v11795_v63 = vld [vmem:[#allocation7 + $0xdec] ss:$24 sps:$4 sm:$0xff]  }
 0x314   :  { %7970 = vmatpush1.bf16.msra.mxu1 %v11742_v54  ;;  %7936 = vmatprep.subr.bf16.mxu0 %v11747_v45  ;;  %v11798_v54 = vld [vmem:[#allocation7 + $0x117c] ss:$24 sps:$4 sm:$0xff]   ;;  %v11796_v45 = vld [vmem:[#allocation7 + $0x1178] ss:$24 sps:$4 sm:$0xff]   ;;  %v11804_v53 = vld [vmem:[#allocation7 + $0x114c] ss:$24 sps:$4 sm:$0xff]  }
 0x315   :  { %v7678_v15 = vpop.f32.mrf.mxu1  ;;  %7971 = vmatprep.subr.bf16.mxu1 %v11750_v2  ;;  %v11801_v2 = vld [vmem:[#allocation7 + $0xdbc] ss:$24 sps:$4 sm:$0xff]   ;;  %v11799_v58 = vld [vmem:[#allocation7 + $0xdb8] ss:$24 sps:$4 sm:$0xff]  }
 0x316   :  { %v11810_v15 = vld [vmem:[#allocation7 + $0x111c] ss:$24 sps:$4 sm:$0xff]  }
 0x317   :  { %7937 = vmatpush1.bf16.msra.mxu0 %v11745_v60  ;;  %v11802_v60 = vld [vmem:[#allocation7 + $0x1148] ss:$24 sps:$4 sm:$0xff]  }
 0x318   :  { %7972 = vmatpush1.bf16.msra.mxu1 %v11748_v30  ;;  %7938 = vmatprep.subr.bf16.mxu0 %v11753_v7  ;;  %v11807_v30 = vld [vmem:[#allocation7 + $0xd8c] ss:$24 sps:$4 sm:$0xff]   ;;  %v11805_v7 = vld [vmem:[#allocation7 + $0xd88] ss:$24 sps:$4 sm:$0xff]  }
 0x319   :  { %7973 = vmatprep.subr.bf16.mxu1 %v11756_v9  ;;  %v11808_v9 = vld [vmem:[#allocation7 + $0x1118] ss:$24 sps:$4 sm:$0xff]  }
 0x31b   :  { %7939 = vmatpush1.bf16.msra.mxu0 %v11751_v10  ;;  %v11813_v10 = vld [vmem:[#allocation7 + $0x10ec] ss:$24 sps:$4 sm:$0xff]  }
 0x31c   :  { %7974 = vmatpush1.bf16.msra.mxu1 %v11754_v40  ;;  %7940 = vmatprep.subr.bf16.mxu0 %v11759_v14  ;;  %v11816_v40 = vld [vmem:[#allocation7 + $0x135c] ss:$24 sps:$4 sm:$0xff]   ;;  %v11811_v14 = vld [vmem:[#allocation7 + $0x10e8] ss:$24 sps:$4 sm:$0xff]  }
 0x31d   :  { %7975 = vmatprep.subr.bf16.mxu1 %v11762_v56  ;;  %v11814_v56 = vld [vmem:[#allocation7 + $0x1358] ss:$24 sps:$4 sm:$0xff]  }
 0x31f   :  { %7941 = vmatpush1.bf16.msra.mxu0 %v11757_v16  ;;  %v11819_v16 = vld [vmem:[#allocation7 + $0x10bc] ss:$24 sps:$4 sm:$0xff]  }
 0x320   :  { %7976 = vmatpush1.bf16.msra.mxu1 %v11760_v21  ;;  %7942 = vmatprep.subr.bf16.mxu0 %v11765_v24  ;;  %v11822_v21 = vld [vmem:[#allocation7 + $0x132c] ss:$24 sps:$4 sm:$0xff]  }
 0x321   :  { %7977 = vmatprep.subr.bf16.mxu1 %v11768_v25 }
 0x323   :  { %7943 = vmatpush2.bf16.msra.mxu0 %v11763_v26  ;;  %v11817_v26 = vld [vmem:[#allocation7 + $0x10b8] ss:$24 sps:$4 sm:$0xff]  }
 0x324   :  { %7978 = vmatpush1.bf16.msra.mxu1 %v11766_v51  ;;  %7944 = vmatprep.subr.bf16.mxu0 %v11771_v3  ;;  %v11820_v51 = vld [vmem:[#allocation7 + $0x1328] ss:$24 sps:$4 sm:$0xff]  }
 0x325   :  { %7979 = vmatprep.subr.bf16.mxu1 %v11774_v29  ;;  %v11825_v29 = vld [vmem:[#allocation7 + $0x108c] ss:$24 sps:$4 sm:$0xff]  }
 0x327   :  { %7945 = vmatpush2.bf16.msra.mxu0 %v11769_v31  ;;  %v11828_v31 = vld [vmem:[#allocation7 + $0x12fc] ss:$24 sps:$4 sm:$0xff]  }
 0x328   :  { %7980 = vmatpush1.bf16.msra.mxu1 %v11772_v32  ;;  %7946 = vmatprep.subr.bf16.mxu0 %v11777_v33 }
 0x329   :  { %7981 = vmatprep.subr.bf16.mxu1 %v11780_v35  ;;  %v11823_v35 = vld [vmem:[#allocation7 + $0x1088] ss:$24 sps:$4 sm:$0xff]  }
 0x32b   :  { %7947 = vmatpush2.bf16.msra.mxu0 %v11775_v36  ;;  %v11826_v36 = vld [vmem:[#allocation7 + $0x12f8] ss:$24 sps:$4 sm:$0xff]  }
 0x32c   :  { %7982 = vmatpush1.bf16.msra.mxu1 %v11778_v62  ;;  %7948 = vmatprep.subr.bf16.mxu0 %v11783_v12  ;;  %v11834_v12 = vld [vmem:[#allocation7 + $0x165c] ss:$24 sps:$4 sm:$0xff]  }
 0x32d   :  { %7983 = vmatprep.subr.bf16.mxu1 %v11786_v37  ;;  %v11829_v37 = vld [vmem:[#allocation7 + $0x12c8] ss:$24 sps:$4 sm:$0xff]  }
 0x32f   :  { %7949 = vmatpush2.bf16.msra.mxu0 %v11781_v38  ;;  %v11832_v38 = vld [vmem:[#allocation7 + $0x1658] ss:$24 sps:$4 sm:$0xff]  }
 0x330   :  { %7984 = vmatpush2.bf16.msra.mxu1 %v11784_v39  ;;  %7950 = vmatprep.subr.bf16.mxu0 %v11789_v43  ;;  %v11837_v39 = vld [vmem:[#allocation7 + $0x129c] ss:$24 sps:$4 sm:$0xff]   ;;  %v11840_v43 = vld [vmem:[#allocation7 + $0x162c] ss:$24 sps:$4 sm:$0xff]  }
 0x331   :  { %7985 = vmatprep.subr.bf16.mxu1 %v11792_v41 }
 0x333   :  { %7951 = vmatpush2.bf16.msra.mxu0 %v11787_v47  ;;  %v11835_v47 = vld [vmem:[#allocation7 + $0x1298] ss:$24 sps:$4 sm:$0xff]  }
 0x334   :  { %7986 = vmatpush2.bf16.msra.mxu1 %v11790_v42  ;;  %7952 = vmatprep.subr.bf16.mxu0 %v11795_v63  ;;  %v11838_v42 = vld [vmem:[#allocation7 + $0x1628] ss:$24 sps:$4 sm:$0xff]  }
 0x335   :  { %7987 = vmatprep.subr.bf16.mxu1 %v11798_v54  ;;  %v11843_v54 = vld [vmem:[#allocation7 + $0x126c] ss:$24 sps:$4 sm:$0xff]  }
 0x337   :  { %7953 = vmatpush2.bf16.msra.mxu0 %v11793_v44  ;;  %v11846_v44 = vld [vmem:[#allocation7 + $0x15fc] ss:$24 sps:$4 sm:$0xff]  }
 0x338   :  { %7988 = vmatpush2.bf16.msra.mxu1 %v11796_v45  ;;  %7954 = vmatprep.subr.bf16.mxu0 %v11801_v2 }
 0x339   :  { %7989 = vmatprep.subr.bf16.mxu1 %v11804_v53  ;;  %v11841_v53 = vld [vmem:[#allocation7 + $0x1268] ss:$24 sps:$4 sm:$0xff]  }
 0x33b   :  { %7955 = vmatpush2.bf16.msra.mxu0 %v11799_v58  ;;  %v11844_v58 = vld [vmem:[#allocation7 + $0x15f8] ss:$24 sps:$4 sm:$0xff]  }
 0x33c   :  { %7990 = vmatpush2.bf16.msra.mxu1 %v11802_v60  ;;  %7956 = vmatprep.subr.bf16.mxu0 %v11807_v30  ;;  %v11849_v30 = vld [vmem:[#allocation7 + $0x123c] ss:$24 sps:$4 sm:$0xff]  }
 0x33d   :  { %7991 = vmatprep.subr.bf16.mxu1 %v11810_v15  ;;  %v11852_v15 = vld [vmem:[#allocation7 + $0x15cc] ss:$24 sps:$4 sm:$0xff]  }
 0x33f   :  { %7957 = vmatpush2.bf16.msra.mxu0 %v11805_v7  ;;  %v11847_v7 = vld [vmem:[#allocation7 + $0x1238] ss:$24 sps:$4 sm:$0xff]  }
 0x340   :  { %7992 = vmatpush2.bf16.msra.mxu1 %v11808_v9  ;;  %8008 = vmatprep.subr.bf16.mxu0 %v11816_v40  ;;  %v11850_v9 = vld [vmem:[#allocation7 + $0x15c8] ss:$24 sps:$4 sm:$0xff]   ;;  %v11858_v40 = vld [vmem:[#allocation7 + $0x159c] ss:$24 sps:$4 sm:$0xff]  }
 0x341   :  { %7993 = vmatprep.subr.bf16.mxu1 %v11813_v10  ;;  %v11855_v10 = vld [vmem:[#allocation7 + $0x120c] ss:$24 sps:$4 sm:$0xff]  }
 0x342   :  { %v7714_v24 = vpop.f32.mrf.mxu0  ;;  %7959 = vmatmul.mubr.bf16.vlgmr.msra.gmra.mxu0 %v13064_v19 }
 0x343   :  { %v7715_v25 = vadd.f32 %v7714_v24, %v13152_v46  ;;  %8009 = vmatpush1.bf16.msra.mxu0 %v11814_v56  ;;  %8040 = vmatprep.mubr.bf16.mxu0 %v13085_v4  ;;  %v11831_v46 = vld [vmem:[#allocation7 + $0x12cc] ss:$24 sps:$4 sm:$0xff]   ;;  %v11856_v56 = vld [vmem:[#allocation7 + $0x1598] ss:$24 sps:$4 sm:$0xff]  }
 0x344   :  { %7994 = vmatpush2.bf16.msra.mxu1 %v11811_v14  ;;  %v7716_v3 = vpop.f32.mrf.mxu0  ;;  %8010 = vmatprep.subr.bf16.mxu0 %v11822_v21  ;;  %v11853_v14 = vld [vmem:[#allocation7 + $0x1208] ss:$24 sps:$4 sm:$0xff]   ;;  %v11864_v21 = vld [vmem:[#allocation7 + $0x156c] ss:$24 sps:$4 sm:$0xff]   ;;  %v11859_v24 = vld [vmem:[#allocation7 + $0x14d8] ss:$24 sps:$4 sm:$0xff]  }
 0x345   :  { %7995 = vmatprep.subr.bf16.mxu1 %v11819_v16  ;;  %v7717_v32 = vadd.f32 %v7716_v3, %v13155_v48  ;;  %v11861_v16 = vld [vmem:[#allocation7 + $0x14dc] ss:$24 sps:$4 sm:$0xff]   ;;  %v11865_v3 = vld [vmem:[#allocation7 + $0x14a8] ss:$24 sps:$4 sm:$0xff]  }
 0x346   :  { %v7718_v33 = vpop.f32.mrf.mxu0 }
 0x347   :  { %8011 = vmatpush1.bf16.msra.mxu0 %v11820_v51  ;;  %v11870_v51 = vld [vmem:[#allocation7 + $0x153c] ss:$24 sps:$4 sm:$0xff]   ;;  %v11871_v33 = vld [vmem:[#allocation7 + $0x1478] ss:$24 sps:$4 sm:$0xff]  }
 0x348   :  { %7996 = vmatpush2.bf16.msra.mxu1 %v11817_v26  ;;  %v7719_v62 = vpop.f32.mrf.mxu0  ;;  %8012 = vmatprep.subr.bf16.mxu0 %v11828_v31  ;;  %v11867_v26 = vld [vmem:[#allocation7 + $0x14ac] ss:$24 sps:$4 sm:$0xff]   ;;  %v11873_v31 = vld [vmem:[#allocation7 + $0x147c] ss:$24 sps:$4 sm:$0xff]  }
 0x349   :  { %7997 = vmatprep.subr.bf16.mxu1 %v11825_v29  ;;  %v11868_v29 = vld [vmem:[#allocation7 + $0x1538] ss:$24 sps:$4 sm:$0xff]   ;;  %v11882_v62 = vld [vmem:[#allocation7 + $0x17dc] ss:$24 sps:$4 sm:$0xff]  }
 0x34b   :  { %8013 = vmatpush1.bf16.msra.mxu0 %v11826_v36  ;;  %v11879_v36 = vld [vmem:[#allocation7 + $0x144c] ss:$24 sps:$4 sm:$0xff]  }
 0x34c   :  { %7998 = vmatpush2.bf16.msra.mxu1 %v11823_v35  ;;  %8014 = vmatprep.subr.bf16.mxu0 %v11831_v46  ;;  %v11874_v35 = vld [vmem:[#allocation7 + $0x1508] ss:$24 sps:$4 sm:$0xff]  }
 0x34d   :  { %8049 = vmatprep.subr.bf16.mxu1 %v11834_v12  ;;  %v11877_v46 = vld [vmem:[#allocation7 + $0x1448] ss:$24 sps:$4 sm:$0xff]   ;;  %v11880_v12 = vld [vmem:[#allocation7 + $0x17d8] ss:$24 sps:$4 sm:$0xff]  }
 0x34f   :  { %v7755_v48 = vpop.f32.mrf.mxu1  ;;  %8000 = vmatmul.mubr.bf16.vlgmr.msra.gmra.mxu1 %v13094_v13  ;;  %8015 = vmatpush1.bf16.msra.mxu0 %v11829_v37  ;;  %v11885_v37 = vld [vmem:[#allocation7 + $0x141c] ss:$24 sps:$4 sm:$0xff]  }
 0x350   :  { %v13162_v41 = vadd.f32 %v7755_v48, %v7715_v25  ;;  %8050 = vmatpush1.bf16.msra.mxu1 %v11832_v38  ;;  %8081 = vmatprep.mubr.bf16.mxu1 %v13098_v61  ;;  %v11862_v25 = vld [vmem:[#allocation7 + $0x1568] ss:$24 sps:$4 sm:$0xff]   ;;  %v11888_v38 = vld [vmem:[#allocation7 + $0x17ac] ss:$24 sps:$4 sm:$0xff]  }
 0x351   :  { %v7757_v63 = vpop.f32.mrf.mxu1  ;;  %8016 = vmatprep.subr.bf16.mxu0 %v11837_v39  ;;  %8051 = vmatprep.subr.bf16.mxu1 %v11840_v43  ;;  %v11883_v39 = vld [vmem:[#allocation7 + $0x1418] ss:$24 sps:$4 sm:$0xff]   ;;  %v11886_v43 = vld [vmem:[#allocation7 + $0x17a8] ss:$24 sps:$4 sm:$0xff]   ;;  %v11891_v48 = vld [vmem:[#allocation7 + $0x13ec] ss:$24 sps:$4 sm:$0xff]  }
 0x352   :  { %v13165_v45 = vadd.f32 %v7757_v63, %v7717_v32  ;;  %v11876_v32 = vld [vmem:[#allocation7 + $0x150c] ss:$24 sps:$4 sm:$0xff]   ;;  %v11892_v63 = vld [vmem:[#allocation7 + $0x1778] ss:$24 sps:$4 sm:$0xff]  }
 0x353   :  { %v7759_v2 = vpop.f32.mrf.mxu1  ;;  %8017 = vmatpush1.bf16.msra.mxu0 %v11835_v47  ;;  %v11894_v47 = vld [vmem:[#allocation7 + $0x177c] ss:$24 sps:$4 sm:$0xff]  }
 0x354   :  { %8052 = vmatpush1.bf16.msra.mxu1 %v11838_v42  ;;  %8018 = vmatprep.subr.bf16.mxu0 %v11843_v54  ;;  %v11889_v42 = vld [vmem:[#allocation7 + $0x13e8] ss:$24 sps:$4 sm:$0xff]   ;;  %v11897_v54 = vld [vmem:[#allocation7 + $0x13bc] ss:$24 sps:$4 sm:$0xff]   ;;  %v11895_v2 = vld [vmem:[#allocation7 + $0x13b8] ss:$24 sps:$4 sm:$0xff]  }
 0x355   :  { %v7760_v60 = vpop.f32.mrf.mxu1  ;;  %8053 = vmatprep.subr.bf16.mxu1 %v11846_v44  ;;  %v11900_v44 = vld [vmem:[#allocation7 + $0x174c] ss:$24 sps:$4 sm:$0xff]  }
 0x356   :  { %v11906_v60 = vld [vmem:[#allocation7 + $0x171c] ss:$24 sps:$4 sm:$0xff]  }
 0x357   :  { %8019 = vmatpush1.bf16.msra.mxu0 %v11841_v53  ;;  %v11898_v53 = vld [vmem:[#allocation7 + $0x1748] ss:$24 sps:$4 sm:$0xff]  }
 0x358   :  { %8054 = vmatpush1.bf16.msra.mxu1 %v11844_v58  ;;  %8020 = vmatprep.subr.bf16.mxu0 %v11849_v30  ;;  %v11903_v58 = vld [vmem:[#allocation7 + $0x138c] ss:$24 sps:$4 sm:$0xff]   ;;  %v11901_v30 = vld [vmem:[#allocation7 + $0x1388] ss:$24 sps:$4 sm:$0xff]  }
 0x359   :  { %8055 = vmatprep.subr.bf16.mxu1 %v11852_v15  ;;  %v11904_v15 = vld [vmem:[#allocation7 + $0x1718] ss:$24 sps:$4 sm:$0xff]  }
 0x35b   :  { %8021 = vmatpush1.bf16.msra.mxu0 %v11847_v7  ;;  %v11909_v7 = vld [vmem:[#allocation7 + $0x16ec] ss:$24 sps:$4 sm:$0xff]  }
 0x35c   :  { %8056 = vmatpush1.bf16.msra.mxu1 %v11850_v9  ;;  %8022 = vmatprep.subr.bf16.mxu0 %v11855_v10  ;;  %v11912_v9 = vld [vmem:[#allocation7 + $0x195c] ss:$24 sps:$4 sm:$0xff]   ;;  %v11907_v10 = vld [vmem:[#allocation7 + $0x16e8] ss:$24 sps:$4 sm:$0xff]  }
 0x35d   :  { %8057 = vmatprep.subr.bf16.mxu1 %v11858_v40  ;;  %v11910_v40 = vld [vmem:[#allocation7 + $0x1958] ss:$24 sps:$4 sm:$0xff]  }
 0x35f   :  { %8023 = vmatpush1.bf16.msra.mxu0 %v11853_v14  ;;  %v11915_v14 = vld [vmem:[#allocation7 + $0x16bc] ss:$24 sps:$4 sm:$0xff]  }
 0x360   :  { %8058 = vmatpush1.bf16.msra.mxu1 %v11856_v56  ;;  %8024 = vmatprep.subr.bf16.mxu0 %v11861_v16  ;;  %v11918_v56 = vld [vmem:[#allocation7 + $0x192c] ss:$24 sps:$4 sm:$0xff]  }
 0x361   :  { %8059 = vmatprep.subr.bf16.mxu1 %v11864_v21  ;;  %v11913_v21 = vld [vmem:[#allocation7 + $0x16b8] ss:$24 sps:$4 sm:$0xff]  }
 0x363   :  { %8025 = vmatpush2.bf16.msra.mxu0 %v11859_v24  ;;  %v11916_v24 = vld [vmem:[#allocation7 + $0x1928] ss:$24 sps:$4 sm:$0xff]  }
 0x364   :  { %8060 = vmatpush1.bf16.msra.mxu1 %v11862_v25  ;;  %8026 = vmatprep.subr.bf16.mxu0 %v11867_v26  ;;  %v11921_v26 = vld [vmem:[#allocation7 + $0x168c] ss:$24 sps:$4 sm:$0xff]  }
 0x365   :  { %8061 = vmatprep.subr.bf16.mxu1 %v11870_v51  ;;  %v11924_v51 = vld [vmem:[#allocation7 + $0x18fc] ss:$24 sps:$4 sm:$0xff]  }
 0x367   :  { %8027 = vmatpush2.bf16.msra.mxu0 %v11865_v3 }
 0x368   :  { %8062 = vmatpush1.bf16.msra.mxu1 %v11868_v29  ;;  %8028 = vmatprep.subr.bf16.mxu0 %v11873_v31  ;;  %v11919_v29 = vld [vmem:[#allocation7 + $0x1688] ss:$24 sps:$4 sm:$0xff]   ;;  %v11922_v31 = vld [vmem:[#allocation7 + $0x18f8] ss:$24 sps:$4 sm:$0xff]  }
 0x369   :  { %8063 = vmatprep.subr.bf16.mxu1 %v11876_v32 }
 0x36b   :  { %8029 = vmatpush2.bf16.msra.mxu0 %v11871_v33  ;;  %v11927_v33 = vld [vmem:[#allocation7 + $0x18cc] ss:$24 sps:$4 sm:$0xff]  }
 0x36c   :  { %8064 = vmatpush1.bf16.msra.mxu1 %v11874_v35  ;;  %8030 = vmatprep.subr.bf16.mxu0 %v11879_v36  ;;  %v11930_v35 = vld [vmem:[#allocation7 + $0x164] ss:$24 sps:$4 sm:$0xff]   ;;  %v11925_v36 = vld [vmem:[#allocation7 + $0x18c8] ss:$24 sps:$4 sm:$0xff]  }
 0x36d   :  { %8065 = vmatprep.subr.bf16.mxu1 %v11882_v62  ;;  %v11928_v62 = vld [vmem:[#allocation7 + $0x160] ss:$24 sps:$4 sm:$0xff]  }
 0x36f   :  { %8031 = vmatpush2.bf16.msra.mxu0 %v11877_v46  ;;  %v11933_v46 = vld [vmem:[#allocation7 + $0x189c] ss:$24 sps:$4 sm:$0xff]  }
 0x370   :  { %8066 = vmatpush2.bf16.msra.mxu1 %v11880_v12  ;;  %8032 = vmatprep.subr.bf16.mxu0 %v11885_v37  ;;  %v11936_v12 = vld [vmem:[#allocation7 + $0x134] ss:$24 sps:$4 sm:$0xff]  }
 0x371   :  { %8067 = vmatprep.subr.bf16.mxu1 %v11888_v38 }
 0x373   :  { %8033 = vmatpush2.bf16.msra.mxu0 %v11883_v39  ;;  %v11931_v39 = vld [vmem:[#allocation7 + $0x1898] ss:$24 sps:$4 sm:$0xff]  }
 0x374   :  { %8068 = vmatpush2.bf16.msra.mxu1 %v11886_v43  ;;  %8034 = vmatprep.subr.bf16.mxu0 %v11891_v48  ;;  %v11934_v43 = vld [vmem:[#allocation7 + $0x130] ss:$24 sps:$4 sm:$0xff]  }
 0x375   :  { %8069 = vmatprep.subr.bf16.mxu1 %v11894_v47  ;;  %v11939_v47 = vld [vmem:[#allocation7 + $0x186c] ss:$24 sps:$4 sm:$0xff]  }
 0x377   :  { %8035 = vmatpush2.bf16.msra.mxu0 %v11889_v42  ;;  %v11942_v42 = vld [vmem:[#allocation7 + $0x104] ss:$24 sps:$4 sm:$0xff]  }
 0x378   :  { %8070 = vmatpush2.bf16.msra.mxu1 %v11892_v63  ;;  %8036 = vmatprep.subr.bf16.mxu0 %v11897_v54 }
 0x379   :  { %8071 = vmatprep.subr.bf16.mxu1 %v11900_v44  ;;  %v11937_v44 = vld [vmem:[#allocation7 + $0x1868] ss:$24 sps:$4 sm:$0xff]  }
 0x37b   :  { %8037 = vmatpush2.bf16.msra.mxu0 %v11895_v2  ;;  %v11940_v2 = vld [vmem:[#allocation7 + $0x100] ss:$24 sps:$4 sm:$0xff]  }
 0x37c   :  { %8072 = vmatpush2.bf16.msra.mxu1 %v11898_v53  ;;  %8038 = vmatprep.subr.bf16.mxu0 %v11903_v58  ;;  %v11945_v58 = vld [vmem:[#allocation7 + $0x183c] ss:$24 sps:$4 sm:$0xff]  }
 0x37d   :  { %8073 = vmatprep.subr.bf16.mxu1 %v11906_v60  ;;  %v11948_v60 = vld [vmem:[#allocation7 + $0xd4] ss:$24 sps:$4 sm:$0xff]  }
 0x37f   :  { %8039 = vmatpush2.bf16.msra.mxu0 %v11901_v30  ;;  %v11946_v30 = vld [vmem:[#allocation7 + $0xd0] ss:$24 sps:$4 sm:$0xff]  }
 0x380   :  { %8074 = vmatpush2.bf16.msra.mxu1 %v11904_v15  ;;  %8090 = vmatprep.subr.bf16.mxu0 %v11912_v9  ;;  %v11951_v15 = vld [vmem:[#allocation7 + $0x180c] ss:$24 sps:$4 sm:$0xff]   ;;  %v11949_v9 = vld [vmem:[#allocation7 + $0x1808] ss:$24 sps:$4 sm:$0xff]  }
 0x381   :  { %8075 = vmatprep.subr.bf16.mxu1 %v11909_v7  ;;  %v11954_v7 = vld [vmem:[#allocation7 + $0xa4] ss:$24 sps:$4 sm:$0xff]  }
 0x382   :  { %v7796_v16 = vpop.f32.mrf.mxu0  ;;  %8041 = vmatmul.mubr.bf16.vlgmr.msra.gmra.mxu0 %v13107_v49 }
 0x383   :  { %8091 = vmatpush1.bf16.msra.mxu0 %v11910_v40  ;;  %8122 = vmatprep.mubr.bf16.mxu0 %v13109_v27  ;;  %v11957_v40 = vld [vmem:[#allocation7 + $0x1adc] ss:$24 sps:$4 sm:$0xff]  }
 0x384   :  { %8076 = vmatpush2.bf16.msra.mxu1 %v11907_v10  ;;  %v7798_v25 = vpop.f32.mrf.mxu0  ;;  %8092 = vmatprep.subr.bf16.mxu0 %v11918_v56  ;;  %v11952_v10 = vld [vmem:[#allocation7 + $0xa0] ss:$24 sps:$4 sm:$0xff]  }
 0x385   :  { %8077 = vmatprep.subr.bf16.mxu1 %v11915_v14  ;;  %v11960_v14 = vld [vmem:[#allocation7 + $0x74] ss:$24 sps:$4 sm:$0xff]   ;;  %v11955_v56 = vld [vmem:[#allocation7 + $0x1ad8] ss:$24 sps:$4 sm:$0xff]  }
 0x386   :  { %v7800_v3 = vpop.f32.mrf.mxu0 }
 0x387   :  { %8093 = vmatpush1.bf16.msra.mxu0 %v11916_v24  ;;  %v11966_v24 = vld [vmem:[#allocation7 + $0x44] ss:$24 sps:$4 sm:$0xff]   ;;  %v11972_v3 = vld [vmem:[#allocation7 + $0x14] ss:$24 sps:$4 sm:$0xff]  }
 0x388   :  { %8078 = vmatpush2.bf16.msra.mxu1 %v11913_v21  ;;  %v7801_v32 = vpop.f32.mrf.mxu0  ;;  %8094 = vmatprep.subr.bf16.mxu0 %v11924_v51  ;;  %v11963_v21 = vld [vmem:[#allocation7 + $0x1aac] ss:$24 sps:$4 sm:$0xff]   ;;  %v11969_v51 = vld [vmem:[#allocation7 + $0x1a7c] ss:$24 sps:$4 sm:$0xff]  }
 0x389   :  { %8079 = vmatprep.subr.bf16.mxu1 %v11921_v26  ;;  %v11964_v26 = vld [vmem:[#allocation7 + $0x40] ss:$24 sps:$4 sm:$0xff]   ;;  %v11975_v32 = vld [vmem:[#allocation7 + $0x1a4c] ss:$24 sps:$4 sm:$0xff]  }
 0x38b   :  { %8095 = vmatpush1.bf16.msra.mxu0 %v11922_v31  ;;  %v11970_v31 = vld [vmem:[#allocation7 + $0x10] ss:$24 sps:$4 sm:$0xff]  }
 0x38c   :  { %8080 = vmatpush2.bf16.msra.mxu1 %v11919_v29  ;;  %8096 = vmatprep.subr.bf16.mxu0 %v11927_v33  ;;  %v11967_v29 = vld [vmem:[#allocation7 + $0x1a78] ss:$24 sps:$4 sm:$0xff]   ;;  %v11978_v33 = vld [vmem:[#allocation7 + $0x2e4] ss:$24 sps:$4 sm:$0xff]  }
 0x38d   :  { %8131 = vmatprep.subr.bf16.mxu1 %v11930_v35  ;;  %v11973_v35 = vld [vmem:[#allocation7 + $0x1a48] ss:$24 sps:$4 sm:$0xff]  }
 0x38f   :  { %v7837_v37 = vpop.f32.mrf.mxu1  ;;  %8082 = vmatmul.mubr.bf16.vlgmr.msra.gmra.mxu1 %v13120_v20  ;;  %8097 = vmatpush1.bf16.msra.mxu0 %v11925_v36  ;;  %v11976_v36 = vld [vmem:[#allocation7 + $0x2e0] ss:$24 sps:$4 sm:$0xff]  }
 0x390   :  { %v13170_v38 = vadd.f32 %v7837_v37, %v7796_v16  ;;  %8132 = vmatpush1.bf16.msra.mxu1 %v11928_v62  ;;  %8163 = vmatprep.mubr.bf16.mxu1 %v12962_v59  ;;  %v11943_v59 = vld [vmem:[#allocation7 + $0x1838] ss:$24 sps:$4 sm:$0xff]   ;;  %v11981_v62 = vld [vmem:[#allocation7 + $0x1a1c] ss:$24 sps:$4 sm:$0xff]  }
 0x391   :  { %v7839_v48 = vpop.f32.mrf.mxu1  ;;  %8098 = vmatprep.subr.bf16.mxu0 %v11933_v46  ;;  %8133 = vmatprep.subr.bf16.mxu1 %v11936_v12  ;;  %v11958_v16 = vld [vmem:[#allocation7 + $0x70] ss:$24 sps:$4 sm:$0xff]   ;;  %v11984_v46 = vld [vmem:[#allocation7 + $0x2b4] ss:$24 sps:$4 sm:$0xff]  }
 0x392   :  { %v13173_v63 = vadd.f32 %v7839_v48, %v7798_v25  ;;  %v11961_v25 = vld [vmem:[#allocation7 + $0x1aa8] ss:$24 sps:$4 sm:$0xff]   ;;  %v11979_v12 = vld [vmem:[#allocation7 + $0x1a18] ss:$24 sps:$4 sm:$0xff]  }
 0x393   :  { %v7841_v54 = vpop.f32.mrf.mxu1  ;;  %8099 = vmatpush1.bf16.msra.mxu0 %v11931_v39  ;;  %v11982_v37 = vld [vmem:[#allocation7 + $0x2b0] ss:$24 sps:$4 sm:$0xff]   ;;  %v11987_v39 = vld [vmem:[#allocation7 + $0x19ec] ss:$24 sps:$4 sm:$0xff]  }
 0x394   :  { %8134 = vmatpush1.bf16.msra.mxu1 %v11934_v43  ;;  %8100 = vmatprep.subr.bf16.mxu0 %v11939_v47  ;;  %v11990_v43 = vld [vmem:[#allocation7 + $0x284] ss:$24 sps:$4 sm:$0xff]   ;;  %v11985_v48 = vld [vmem:[#allocation7 + $0x19e8] ss:$24 sps:$4 sm:$0xff]   ;;  %v11996_v54 = vld [vmem:[#allocation7 + $0x254] ss:$24 sps:$4 sm:$0xff]  }
 0x395   :  { %v7842_v53 = vpop.f32.mrf.mxu1  ;;  %8135 = vmatprep.subr.bf16.mxu1 %v11942_v42  ;;  %v11988_v47 = vld [vmem:[#allocation7 + $0x280] ss:$24 sps:$4 sm:$0xff]   ;;  %v11993_v42 = vld [vmem:[#allocation7 + $0x19bc] ss:$24 sps:$4 sm:$0xff]  }
 0x396   :  { %v11999_v53 = vld [vmem:[#allocation7 + $0x198c] ss:$24 sps:$4 sm:$0xff]  }
 0x397   :  { %8101 = vmatpush1.bf16.msra.mxu0 %v11937_v44  ;;  %v11991_v44 = vld [vmem:[#allocation7 + $0x19b8] ss:$24 sps:$4 sm:$0xff]  }
 0x398   :  { %8136 = vmatpush1.bf16.msra.mxu1 %v11940_v2  ;;  %8102 = vmatprep.subr.bf16.mxu0 %v11945_v58  ;;  %v11994_v2 = vld [vmem:[#allocation7 + $0x250] ss:$24 sps:$4 sm:$0xff]   ;;  %v12002_v58 = vld [vmem:[#allocation7 + $0x224] ss:$24 sps:$4 sm:$0xff]  }
 0x399   :  { %8137 = vmatprep.subr.bf16.mxu1 %v11948_v60  ;;  %v11997_v60 = vld [vmem:[#allocation7 + $0x1988] ss:$24 sps:$4 sm:$0xff]  }
 0x39b   :  { %8103 = vmatpush1.bf16.msra.mxu0 %v11943_v59  ;;  %v12000_v59 = vld [vmem:[#allocation7 + $0x220] ss:$24 sps:$4 sm:$0xff]  }
 0x39c   :  { %8138 = vmatpush1.bf16.msra.mxu1 %v11946_v30  ;;  %8104 = vmatprep.subr.bf16.mxu0 %v11951_v15  ;;  %v12005_v30 = vld [vmem:[#allocation7 + $0x1f4] ss:$24 sps:$4 sm:$0xff]   ;;  %v12008_v15 = vld [vmem:[#allocation7 + $0x464] ss:$24 sps:$4 sm:$0xff]  }
 0x39d   :  { %8139 = vmatprep.subr.bf16.mxu1 %v11954_v7  ;;  %v12003_v7 = vld [vmem:[#allocation7 + $0x1f0] ss:$24 sps:$4 sm:$0xff]  }
 0x39f   :  { %8105 = vmatpush1.bf16.msra.mxu0 %v11949_v9  ;;  %v12006_v9 = vld [vmem:[#allocation7 + $0x460] ss:$24 sps:$4 sm:$0xff]  }
 0x3a0   :  { %8140 = vmatpush1.bf16.msra.mxu1 %v11952_v10  ;;  %8106 = vmatprep.subr.bf16.mxu0 %v11957_v40  ;;  %v12011_v10 = vld [vmem:[#allocation7 + $0x1c4] ss:$24 sps:$4 sm:$0xff]   ;;  %v12014_v40 = vld [vmem:[#allocation7 + $0x434] ss:$24 sps:$4 sm:$0xff]  }
 0x3a1   :  { %8141 = vmatprep.subr.bf16.mxu1 %v11960_v14 }
 0x3a3   :  { %8107 = vmatpush2.bf16.msra.mxu0 %v11955_v56 }
 0x3a4   :  { %8142 = vmatpush1.bf16.msra.mxu1 %v11958_v16  ;;  %8108 = vmatprep.subr.bf16.mxu0 %v11963_v21  ;;  %v12009_v16 = vld [vmem:[#allocation7 + $0x1c0] ss:$24 sps:$4 sm:$0xff]   ;;  %v12012_v21 = vld [vmem:[#allocation7 + $0x430] ss:$24 sps:$4 sm:$0xff]  }
 0x3a5   :  { %8143 = vmatprep.subr.bf16.mxu1 %v11966_v24 }
 0x3a7   :  { %8109 = vmatpush2.bf16.msra.mxu0 %v11961_v25  ;;  %v12017_v25 = vld [vmem:[#allocation7 + $0x194] ss:$24 sps:$4 sm:$0xff]  }
 0x3a8   :  { %8144 = vmatpush1.bf16.msra.mxu1 %v11964_v26  ;;  %8110 = vmatprep.subr.bf16.mxu0 %v11969_v51  ;;  %v12020_v26 = vld [vmem:[#allocation7 + $0x404] ss:$24 sps:$4 sm:$0xff]  }
 0x3a9   :  { %8145 = vmatprep.subr.bf16.mxu1 %v11972_v3 }
 0x3ab   :  { %8111 = vmatpush2.bf16.msra.mxu0 %v11967_v29  ;;  %v12015_v29 = vld [vmem:[#allocation7 + $0x190] ss:$24 sps:$4 sm:$0xff]  }
 0x3ac   :  { %8146 = vmatpush1.bf16.msra.mxu1 %v11970_v31  ;;  %8112 = vmatprep.subr.bf16.mxu0 %v11975_v32  ;;  %v12018_v31 = vld [vmem:[#allocation7 + $0x400] ss:$24 sps:$4 sm:$0xff]  }
 0x3ad   :  { %8147 = vmatprep.subr.bf16.mxu1 %v11978_v33  ;;  %v12026_v33 = vld [vmem:[#allocation7 + $0x764] ss:$24 sps:$4 sm:$0xff]  }
 0x3af   :  { %8113 = vmatpush2.bf16.msra.mxu0 %v11973_v35  ;;  %v12024_v35 = vld [vmem:[#allocation7 + $0x760] ss:$24 sps:$4 sm:$0xff]  }
 0x3b0   :  { %8148 = vmatpush2.bf16.msra.mxu1 %v11976_v36  ;;  %8114 = vmatprep.subr.bf16.mxu0 %v11981_v62  ;;  %v12029_v36 = vld [vmem:[#allocation7 + $0x3a4] ss:$24 sps:$4 sm:$0xff]   ;;  %v12032_v62 = vld [vmem:[#allocation7 + $0x734] ss:$24 sps:$4 sm:$0xff]  }
 0x3b1   :  { %8149 = vmatprep.subr.bf16.mxu1 %v11984_v46 }
 0x3b3   :  { %8115 = vmatpush2.bf16.msra.mxu0 %v11979_v12  ;;  %v12027_v12 = vld [vmem:[#allocation7 + $0x3a0] ss:$24 sps:$4 sm:$0xff]  }
 0x3b4   :  { %8150 = vmatpush2.bf16.msra.mxu1 %v11982_v37  ;;  %8116 = vmatprep.subr.bf16.mxu0 %v11987_v39  ;;  %v12030_v37 = vld [vmem:[#allocation7 + $0x730] ss:$24 sps:$4 sm:$0xff]  }
 0x3b5   :  { %8151 = vmatprep.subr.bf16.mxu1 %v11990_v43  ;;  %v12035_v43 = vld [vmem:[#allocation7 + $0x374] ss:$24 sps:$4 sm:$0xff]  }
 0x3b7   :  { %8117 = vmatpush2.bf16.msra.mxu0 %v11985_v48  ;;  %v12038_v48 = vld [vmem:[#allocation7 + $0x704] ss:$24 sps:$4 sm:$0xff]  }
 0x3b8   :  { %8152 = vmatpush2.bf16.msra.mxu1 %v11988_v47  ;;  %8118 = vmatprep.subr.bf16.mxu0 %v11993_v42 }
 0x3b9   :  { %8153 = vmatprep.subr.bf16.mxu1 %v11996_v54  ;;  %v12033_v54 = vld [vmem:[#allocation7 + $0x370] ss:$24 sps:$4 sm:$0xff]  }
 0x3bb   :  { %8119 = vmatpush2.bf16.msra.mxu0 %v11991_v44 }
 0x3bc   :  { %8154 = vmatpush2.bf16.msra.mxu1 %v11994_v2  ;;  %8120 = vmatprep.subr.bf16.mxu0 %v11999_v53  ;;  %v12041_v2 = vld [vmem:[#allocation7 + $0x344] ss:$24 sps:$4 sm:$0xff]   ;;  %v12044_v53 = vld [vmem:[#allocation7 + $0x6d4] ss:$24 sps:$4 sm:$0xff]  }
 0x3bd   :  { %8155 = vmatprep.subr.bf16.mxu1 %v12002_v58  ;;  %v12042_v58 = vld [vmem:[#allocation7 + $0x6d0] ss:$24 sps:$4 sm:$0xff]  }
 0x3bf   :  { %8121 = vmatpush2.bf16.msra.mxu0 %v11997_v60  ;;  %v12047_v60 = vld [vmem:[#allocation7 + $0x314] ss:$24 sps:$4 sm:$0xff]  }
 0x3c0   :  { %8156 = vmatpush2.bf16.msra.mxu1 %v12000_v59  ;;  %8172 = vmatprep.subr.bf16.mxu0 %v12008_v15  ;;  %v12050_v59 = vld [vmem:[#allocation7 + $0x6a4] ss:$24 sps:$4 sm:$0xff]   ;;  %v12048_v15 = vld [vmem:[#allocation7 + $0x6a0] ss:$24 sps:$4 sm:$0xff]  }
 0x3c1   :  { %8157 = vmatprep.subr.bf16.mxu1 %v12005_v30  ;;  %v12045_v30 = vld [vmem:[#allocation7 + $0x310] ss:$24 sps:$4 sm:$0xff]  }
 0x3c2   :  { %v7878_v14 = vpop.f32.mrf.mxu0  ;;  %8123 = vmatmul.mubr.bf16.vlgmr.msra.gmra.mxu0 %v13129_v57 }
 0x3c3   :  { %v7879_v56 = vadd.f32 %v7878_v14, %v13170_v38  ;;  %8173 = vmatpush1.bf16.msra.mxu0 %v12006_v9  ;;  %8204 = vmatprep.mubr.bf16.mxu0 %v12969_v8  ;;  %v12023_v38 = vld [vmem:[#allocation7 + $0x3d4] ss:$24 sps:$4 sm:$0xff]   ;;  %v12021_v8 = vld [vmem:[#allocation7 + $0x3d0] ss:$24 sps:$4 sm:$0xff]  }
 0x3c4   :  { %8158 = vmatpush2.bf16.msra.mxu1 %v12003_v7  ;;  %v7880_v24 = vpop.f32.mrf.mxu0  ;;  %8174 = vmatprep.subr.bf16.mxu0 %v12014_v40  ;;  %v12053_v7 = vld [vmem:[#allocation7 + $0x5e4] ss:$24 sps:$4 sm:$0xff]   ;;  %v12056_v9 = vld [vmem:[#allocation7 + $0x674] ss:$24 sps:$4 sm:$0xff]   ;;  %v12054_v40 = vld [vmem:[#allocation7 + $0x670] ss:$24 sps:$4 sm:$0xff]  }
 0x3c5   :  { %8159 = vmatprep.subr.bf16.mxu1 %v12011_v10  ;;  %v7881_v51 = vadd.f32 %v7880_v24, %v13173_v63  ;;  %v12051_v10 = vld [vmem:[#allocation7 + $0x5e0] ss:$24 sps:$4 sm:$0xff]   ;;  %v12059_v14 = vld [vmem:[#allocation7 + $0x5b4] ss:$24 sps:$4 sm:$0xff]   ;;  %v12065_v24 = vld [vmem:[#allocation7 + $0x584] ss:$24 sps:$4 sm:$0xff]  }
 0x3c6   :  { %v7882_v3 = vpop.f32.mrf.mxu0 }
 0x3c7   :  { %8175 = vmatpush1.bf16.msra.mxu0 %v12012_v21  ;;  %v12060_v21 = vld [vmem:[#allocation7 + $0x640] ss:$24 sps:$4 sm:$0xff]   ;;  %v12071_v3 = vld [vmem:[#allocation7 + $0x554] ss:$24 sps:$4 sm:$0xff]  }
 0x3c8   :  { %8160 = vmatpush2.bf16.msra.mxu1 %v12009_v16  ;;  %v7883_v32 = vpop.f32.mrf.mxu0  ;;  %8176 = vmatprep.subr.bf16.mxu0 %v12020_v26  ;;  %v12057_v16 = vld [vmem:[#allocation7 + $0x5b0] ss:$24 sps:$4 sm:$0xff]   ;;  %v12063_v26 = vld [vmem:[#allocation7 + $0x580] ss:$24 sps:$4 sm:$0xff]  }
 0x3c9   :  { %8161 = vmatprep.subr.bf16.mxu1 %v12017_v25  ;;  %v12068_v25 = vld [vmem:[#allocation7 + $0x614] ss:$24 sps:$4 sm:$0xff]   ;;  %v12072_v32 = vld [vmem:[#allocation7 + $0x8e0] ss:$24 sps:$4 sm:$0xff]  }
 0x3cb   :  { %8177 = vmatpush1.bf16.msra.mxu0 %v12018_v31  ;;  %v12069_v31 = vld [vmem:[#allocation7 + $0x550] ss:$24 sps:$4 sm:$0xff]  }
 0x3cc   :  { %8162 = vmatpush2.bf16.msra.mxu1 %v12015_v29  ;;  %8178 = vmatprep.subr.bf16.mxu0 %v12023_v38  ;;  %v12074_v29 = vld [vmem:[#allocation7 + $0x8e4] ss:$24 sps:$4 sm:$0xff]  }
 0x3cd   :  { %8213 = vmatprep.subr.bf16.mxu1 %v12026_v33  ;;  %v12077_v38 = vld [vmem:[#allocation7 + $0x524] ss:$24 sps:$4 sm:$0xff]   ;;  %v12080_v33 = vld [vmem:[#allocation7 + $0x8b4] ss:$24 sps:$4 sm:$0xff]  }
 0x3cf   :  { %v7919_v63 = vpop.f32.mrf.mxu1  ;;  %8164 = vmatmul.mubr.bf16.vlgmr.msra.gmra.mxu1 %v12973_v28  ;;  %8179 = vmatpush1.bf16.msra.mxu0 %v12021_v8  ;;  %v12036_v28 = vld [vmem:[#allocation7 + $0x700] ss:$24 sps:$4 sm:$0xff]  }
 0x3d0   :  { %v13180_v46 = vadd.f32 %v7919_v63, %v7879_v56  ;;  %8214 = vmatpush1.bf16.msra.mxu1 %v12024_v35  ;;  %8245 = vmatprep.mubr.bf16.mxu1 %v13008_v34  ;;  %v12039_v34 = vld [vmem:[#allocation7 + $0x340] ss:$24 sps:$4 sm:$0xff]   ;;  %v12062_v56 = vld [vmem:[#allocation7 + $0x644] ss:$24 sps:$4 sm:$0xff]   ;;  %v12078_v35 = vld [vmem:[#allocation7 + $0x8b0] ss:$24 sps:$4 sm:$0xff]  }
 0x3d1   :  { %v7921_v39 = vpop.f32.mrf.mxu1  ;;  %8180 = vmatprep.subr.bf16.mxu0 %v12029_v36  ;;  %8215 = vmatprep.subr.bf16.mxu1 %v12032_v62  ;;  %v12075_v8 = vld [vmem:[#allocation7 + $0x520] ss:$24 sps:$4 sm:$0xff]   ;;  %v12083_v36 = vld [vmem:[#allocation7 + $0x4f4] ss:$24 sps:$4 sm:$0xff]   ;;  %v12086_v62 = vld [vmem:[#allocation7 + $0x884] ss:$24 sps:$4 sm:$0xff]  }
 0x3d2   :  { %v13183_v47 = vadd.f32 %v7921_v39, %v7881_v51  ;;  %v12066_v51 = vld [vmem:[#allocation7 + $0x610] ss:$24 sps:$4 sm:$0xff]   ;;  %v12092_v39 = vld [vmem:[#allocation7 + $0x854] ss:$24 sps:$4 sm:$0xff]  }
 0x3d3   :  { %v7923_v42 = vpop.f32.mrf.mxu1  ;;  %8181 = vmatpush1.bf16.msra.mxu0 %v12027_v12  ;;  %v12081_v63 = vld [vmem:[#allocation7 + $0x4f0] ss:$24 sps:$4 sm:$0xff]   ;;  %v12084_v12 = vld [vmem:[#allocation7 + $0x880] ss:$24 sps:$4 sm:$0xff]  }
 0x3d4   :  { %8216 = vmatpush1.bf16.msra.mxu1 %v12030_v37  ;;  %8182 = vmatprep.subr.bf16.mxu0 %v12035_v43  ;;  %v12089_v37 = vld [vmem:[#allocation7 + $0x4c4] ss:$24 sps:$4 sm:$0xff]   ;;  %v12087_v43 = vld [vmem:[#allocation7 + $0x4c0] ss:$24 sps:$4 sm:$0xff]   ;;  %v12095_v42 = vld [vmem:[#allocation7 + $0x494] ss:$24 sps:$4 sm:$0xff]  }
 0x3d5   :  { %v7924_v44 = vpop.f32.mrf.mxu1  ;;  %8217 = vmatprep.subr.bf16.mxu1 %v12038_v48  ;;  %v12090_v48 = vld [vmem:[#allocation7 + $0x850] ss:$24 sps:$4 sm:$0xff]  }
 0x3d6   :  { %v12096_v44 = vld [vmem:[#allocation7 + $0x820] ss:$24 sps:$4 sm:$0xff]  }
 0x3d7   :  { %8183 = vmatpush1.bf16.msra.mxu0 %v12033_v54  ;;  %v12098_v54 = vld [vmem:[#allocation7 + $0x824] ss:$24 sps:$4 sm:$0xff]  }
 0x3d8   :  { %8218 = vmatpush1.bf16.msra.mxu1 %v12036_v28  ;;  %8184 = vmatprep.subr.bf16.mxu0 %v12041_v2  ;;  %v12093_v28 = vld [vmem:[#allocation7 + $0x490] ss:$24 sps:$4 sm:$0xff]   ;;  %v12101_v2 = vld [vmem:[#allocation7 + $0x7f4] ss:$24 sps:$4 sm:$0xff]  }
 0x3d9   :  { %8219 = vmatprep.subr.bf16.mxu1 %v12044_v53  ;;  %v12104_v53 = vld [vmem:[#allocation7 + $0xa64] ss:$24 sps:$4 sm:$0xff]  }
 0x3db   :  { %8185 = vmatpush1.bf16.msra.mxu0 %v12039_v34  ;;  %v12099_v34 = vld [vmem:[#allocation7 + $0x7f0] ss:$24 sps:$4 sm:$0xff]  }
 0x3dc   :  { %8220 = vmatpush1.bf16.msra.mxu1 %v12042_v58  ;;  %8186 = vmatprep.subr.bf16.mxu0 %v12047_v60  ;;  %v12102_v58 = vld [vmem:[#allocation7 + $0xa60] ss:$24 sps:$4 sm:$0xff]   ;;  %v12107_v60 = vld [vmem:[#allocation7 + $0x7c4] ss:$24 sps:$4 sm:$0xff]  }
 0x3dd   :  { %8221 = vmatprep.subr.bf16.mxu1 %v12050_v59  ;;  %v12110_v59 = vld [vmem:[#allocation7 + $0xa34] ss:$24 sps:$4 sm:$0xff]  }
 0x3df   :  { %8187 = vmatpush1.bf16.msra.mxu0 %v12045_v30 }
 0x3e0   :  { %8222 = vmatpush1.bf16.msra.mxu1 %v12048_v15  ;;  %8188 = vmatprep.subr.bf16.mxu0 %v12053_v7  ;;  %v12105_v7 = vld [vmem:[#allocation7 + $0x7c0] ss:$24 sps:$4 sm:$0xff]  }
 0x3e1   :  { %8223 = vmatprep.subr.bf16.mxu1 %v12056_v9  ;;  %v12108_v9 = vld [vmem:[#allocation7 + $0xa30] ss:$24 sps:$4 sm:$0xff]  }
 0x3e3   :  { %8189 = vmatpush2.bf16.msra.mxu0 %v12051_v10 }
 0x3e4   :  { %8224 = vmatpush1.bf16.msra.mxu1 %v12054_v40  ;;  %8190 = vmatprep.subr.bf16.mxu0 %v12059_v14  ;;  %v12113_v40 = vld [vmem:[#allocation7 + $0x794] ss:$24 sps:$4 sm:$0xff]   ;;  %v12116_v14 = vld [vmem:[#allocation7 + $0xa04] ss:$24 sps:$4 sm:$0xff]  }
 0x3e5   :  { %8225 = vmatprep.subr.bf16.mxu1 %v12062_v56 }
 0x3e7   :  { %8191 = vmatpush2.bf16.msra.mxu0 %v12057_v16 }
 0x3e8   :  { %8226 = vmatpush1.bf16.msra.mxu1 %v12060_v21  ;;  %8192 = vmatprep.subr.bf16.mxu0 %v12065_v24  ;;  %v12111_v21 = vld [vmem:[#allocation7 + $0x790] ss:$24 sps:$4 sm:$0xff]  }
 0x3e9   :  { %8227 = vmatprep.subr.bf16.mxu1 %v12068_v25  ;;  %v12122_v25 = vld [vmem:[#allocation7 + $0xd64] ss:$24 sps:$4 sm:$0xff]  }
 0x3eb   :  { %8193 = vmatpush2.bf16.msra.mxu0 %v12063_v26  ;;  %v12120_v26 = vld [vmem:[#allocation7 + $0xd60] ss:$24 sps:$4 sm:$0xff]  }
 0x3ec   :  { %8228 = vmatpush1.bf16.msra.mxu1 %v12066_v51  ;;  %8194 = vmatprep.subr.bf16.mxu0 %v12071_v3  ;;  %v12125_v51 = vld [vmem:[#allocation7 + $0x9a4] ss:$24 sps:$4 sm:$0xff]   ;;  %v12128_v3 = vld [vmem:[#allocation7 + $0xd34] ss:$24 sps:$4 sm:$0xff]  }
 0x3ed   :  { %8229 = vmatprep.subr.bf16.mxu1 %v12074_v29 }
 0x3ef   :  { %8195 = vmatpush2.bf16.msra.mxu0 %v12069_v31  ;;  %v12123_v31 = vld [vmem:[#allocation7 + $0x9a0] ss:$24 sps:$4 sm:$0xff]  }
 0x3f0   :  { %8230 = vmatpush2.bf16.msra.mxu1 %v12072_v32  ;;  %8196 = vmatprep.subr.bf16.mxu0 %v12077_v38  ;;  %v12126_v32 = vld [vmem:[#allocation7 + $0xd30] ss:$24 sps:$4 sm:$0xff]  }
 0x3f1   :  { %8231 = vmatprep.subr.bf16.mxu1 %v12080_v33  ;;  %v12131_v33 = vld [vmem:[#allocation7 + $0x974] ss:$24 sps:$4 sm:$0xff]  }
 0x3f3   :  { %8197 = vmatpush2.bf16.msra.mxu0 %v12075_v8  ;;  %v12134_v8 = vld [vmem:[#allocation7 + $0xd04] ss:$24 sps:$4 sm:$0xff]  }
 0x3f4   :  { %8232 = vmatpush2.bf16.msra.mxu1 %v12078_v35  ;;  %8198 = vmatprep.subr.bf16.mxu0 %v12083_v36 }
 0x3f5   :  { %8233 = vmatprep.subr.bf16.mxu1 %v12086_v62  ;;  %v12129_v62 = vld [vmem:[#allocation7 + $0x970] ss:$24 sps:$4 sm:$0xff]  }
 0x3f7   :  { %8199 = vmatpush2.bf16.msra.mxu0 %v12081_v63 }
 0x3f8   :  { %8234 = vmatpush2.bf16.msra.mxu1 %v12084_v12  ;;  %8200 = vmatprep.subr.bf16.mxu0 %v12089_v37  ;;  %v12137_v12 = vld [vmem:[#allocation7 + $0x944] ss:$24 sps:$4 sm:$0xff]   ;;  %v12140_v37 = vld [vmem:[#allocation7 + $0xcd4] ss:$24 sps:$4 sm:$0xff]  }
 0x3f9   :  { %8235 = vmatprep.subr.bf16.mxu1 %v12092_v39  ;;  %v12138_v39 = vld [vmem:[#allocation7 + $0xcd0] ss:$24 sps:$4 sm:$0xff]  }
 0x3fb   :  { %8201 = vmatpush2.bf16.msra.mxu0 %v12087_v43  ;;  %v12143_v43 = vld [vmem:[#allocation7 + $0x914] ss:$24 sps:$4 sm:$0xff]  }
 0x3fc   :  { %8236 = vmatpush2.bf16.msra.mxu1 %v12090_v48  ;;  %8202 = vmatprep.subr.bf16.mxu0 %v12095_v42  ;;  %v12146_v48 = vld [vmem:[#allocation7 + $0xca4] ss:$24 sps:$4 sm:$0xff]   ;;  %v12141_v42 = vld [vmem:[#allocation7 + $0x910] ss:$24 sps:$4 sm:$0xff]  }
 0x3fd   :  { %8237 = vmatprep.subr.bf16.mxu1 %v12098_v54  ;;  %v12144_v54 = vld [vmem:[#allocation7 + $0xca0] ss:$24 sps:$4 sm:$0xff]  }
 0x3ff   :  { %8203 = vmatpush2.bf16.msra.mxu0 %v12093_v28  ;;  %v12149_v28 = vld [vmem:[#allocation7 + $0xbe4] ss:$24 sps:$4 sm:$0xff]  }
 0x400   :  { %8238 = vmatpush2.bf16.msra.mxu1 %v12096_v44  ;;  %8254 = vmatprep.subr.bf16.mxu0 %v12104_v53  ;;  %v12152_v44 = vld [vmem:[#allocation7 + $0xc74] ss:$24 sps:$4 sm:$0xff]   ;;  %v12150_v53 = vld [vmem:[#allocation7 + $0xc70] ss:$24 sps:$4 sm:$0xff]  }
 0x401   :  { %8239 = vmatprep.subr.bf16.mxu1 %v12101_v2  ;;  %v12147_v2 = vld [vmem:[#allocation7 + $0xbe0] ss:$24 sps:$4 sm:$0xff]  }
 0x402   :  { %v7960_v30 = vpop.f32.mrf.mxu0  ;;  %8205 = vmatmul.mubr.bf16.vlgmr.msra.gmra.mxu0 %v13012_v11  ;;  %v12114_v11 = vld [vmem:[#allocation7 + $0xa00] ss:$24 sps:$4 sm:$0xff]  }
 0x403   :  { %v7961_v15 = vadd.f32 %v7960_v30, %v13180_v46  ;;  %8255 = vmatpush1.bf16.msra.mxu0 %v12102_v58  ;;  %8286 = vmatprep.mubr.bf16.mxu0 %v13014_v1  ;;  %v12119_v46 = vld [vmem:[#allocation7 + $0x9d4] ss:$24 sps:$4 sm:$0xff]   ;;  %v12117_v1 = vld [vmem:[#allocation7 + $0x9d0] ss:$24 sps:$4 sm:$0xff]   ;;  %v12158_v58 = vld [vmem:[#allocation7 + $0xc44] ss:$24 sps:$4 sm:$0xff]  }
 0x404   :  { %8240 = vmatpush2.bf16.msra.mxu1 %v12099_v34  ;;  %v7962_v10 = vpop.f32.mrf.mxu0  ;;  %8256 = vmatprep.subr.bf16.mxu0 %v12110_v59  ;;  %v12155_v34 = vld [vmem:[#allocation7 + $0xbb4] ss:$24 sps:$4 sm:$0xff]   ;;  %v12156_v59 = vld [vmem:[#allocation7 + $0xc40] ss:$24 sps:$4 sm:$0xff]   ;;  %v12161_v30 = vld [vmem:[#allocation7 + $0xb84] ss:$24 sps:$4 sm:$0xff]  }
 0x405   :  { %8241 = vmatprep.subr.bf16.mxu1 %v12107_v60  ;;  %v7963_v56 = vadd.f32 %v7962_v10, %v13183_v47  ;;  %v12153_v60 = vld [vmem:[#allocation7 + $0xbb0] ss:$24 sps:$4 sm:$0xff]   ;;  %v12167_v10 = vld [vmem:[#allocation7 + $0xb54] ss:$24 sps:$4 sm:$0xff]  }
 0x406   :  { %v7964_v16 = vpop.f32.mrf.mxu0 }
 0x407   :  { %8257 = vmatpush1.bf16.msra.mxu0 %v12108_v9  ;;  %v12162_v9 = vld [vmem:[#allocation7 + $0xc10] ss:$24 sps:$4 sm:$0xff]   ;;  %v12173_v16 = vld [vmem:[#allocation7 + $0xb24] ss:$24 sps:$4 sm:$0xff]  }
 0x408   :  { %8242 = vmatpush2.bf16.msra.mxu1 %v12105_v7  ;;  %v7965_v24 = vpop.f32.mrf.mxu0  ;;  %8258 = vmatprep.subr.bf16.mxu0 %v12116_v14  ;;  %v12159_v7 = vld [vmem:[#allocation7 + $0xb80] ss:$24 sps:$4 sm:$0xff]   ;;  %v12165_v14 = vld [vmem:[#allocation7 + $0xb50] ss:$24 sps:$4 sm:$0xff]  }
 0x409   :  { %8243 = vmatprep.subr.bf16.mxu1 %v12113_v40  ;;  %v12170_v40 = vld [vmem:[#allocation7 + $0xee4] ss:$24 sps:$4 sm:$0xff]   ;;  %v12174_v24 = vld [vmem:[#allocation7 + $0xeb0] ss:$24 sps:$4 sm:$0xff]  }
 0x40b   :  { %8259 = vmatpush1.bf16.msra.mxu0 %v12114_v11  ;;  %v12171_v11 = vld [vmem:[#allocation7 + $0xb20] ss:$24 sps:$4 sm:$0xff]  }
 0x40c   :  { %8244 = vmatpush2.bf16.msra.mxu1 %v12111_v21  ;;  %8260 = vmatprep.subr.bf16.mxu0 %v12119_v46  ;;  %v12176_v21 = vld [vmem:[#allocation7 + $0xeb4] ss:$24 sps:$4 sm:$0xff]  }
 0x40d   :  { %8295 = vmatprep.subr.bf16.mxu1 %v12122_v25  ;;  %v12179_v46 = vld [vmem:[#allocation7 + $0xaf4] ss:$24 sps:$4 sm:$0xff]   ;;  %v12182_v25 = vld [vmem:[#allocation7 + $0xe84] ss:$24 sps:$4 sm:$0xff]  }
 0x40f   :  { %v8001_v47 = vpop.f32.mrf.mxu1  ;;  %8246 = vmatmul.mubr.bf16.vlgmr.msra.gmra.mxu1 %v13019_v18  ;;  %8261 = vmatpush1.bf16.msra.mxu0 %v12117_v1  ;;  %v12132_v18 = vld [vmem:[#allocation7 + $0xd00] ss:$24 sps:$4 sm:$0xff]   ;;  %v12177_v1 = vld [vmem:[#allocation7 + $0xaf0] ss:$24 sps:$4 sm:$0xff]  }
 0x410   :  { %v13190_v29 = vadd.f32 %v8001_v47, %v7961_v15  ;;  %8296 = vmatpush1.bf16.msra.mxu1 %v12120_v26  ;;  %8327 = vmatprep.mubr.bf16.mxu1 %v13040_v5  ;;  %v12135_v5 = vld [vmem:[#allocation7 + $0x940] ss:$24 sps:$4 sm:$0xff]   ;;  %v12164_v15 = vld [vmem:[#allocation7 + $0xc14] ss:$24 sps:$4 sm:$0xff]  }
 0x411   :  { %v8003_v38 = vpop.f32.mrf.mxu1  ;;  %8262 = vmatprep.subr.bf16.mxu0 %v12125_v51  ;;  %8297 = vmatprep.subr.bf16.mxu1 %v12128_v3  ;;  %v12180_v26 = vld [vmem:[#allocation7 + $0xe80] ss:$24 sps:$4 sm:$0xff]   ;;  %v12185_v51 = vld [vmem:[#allocation7 + $0xac4] ss:$24 sps:$4 sm:$0xff]   ;;  %v12188_v3 = vld [vmem:[#allocation7 + $0xe54] ss:$24 sps:$4 sm:$0xff]  }
 0x412   :  { %v13193_v35 = vadd.f32 %v8003_v38, %v7963_v56  ;;  %v12168_v56 = vld [vmem:[#allocation7 + $0xee0] ss:$24 sps:$4 sm:$0xff]   ;;  %v12194_v38 = vld [vmem:[#allocation7 + $0xe24] ss:$24 sps:$4 sm:$0xff]  }
 0x413   :  { %v8005_v36 = vpop.f32.mrf.mxu1  ;;  %8263 = vmatpush1.bf16.msra.mxu0 %v12123_v31  ;;  %v12183_v47 = vld [vmem:[#allocation7 + $0xac0] ss:$24 sps:$4 sm:$0xff]   ;;  %v12186_v31 = vld [vmem:[#allocation7 + $0xe50] ss:$24 sps:$4 sm:$0xff]  }
 0x414   :  { %8298 = vmatpush1.bf16.msra.mxu1 %v12126_v32  ;;  %8264 = vmatprep.subr.bf16.mxu0 %v12131_v33  ;;  %v12191_v32 = vld [vmem:[#allocation7 + $0xa94] ss:$24 sps:$4 sm:$0xff]   ;;  %v12189_v33 = vld [vmem:[#allocation7 + $0xa90] ss:$24 sps:$4 sm:$0xff]  }
 0x415   :  { %v8006_v63 = vpop.f32.mrf.mxu1  ;;  %8299 = vmatprep.subr.bf16.mxu1 %v12134_v8  ;;  %v12192_v8 = vld [vmem:[#allocation7 + $0xe20] ss:$24 sps:$4 sm:$0xff]   ;;  %v12197_v36 = vld [vmem:[#allocation7 + $0xdf4] ss:$24 sps:$4 sm:$0xff]  }
 0x416   :  { %v12198_v63 = vld [vmem:[#allocation7 + $0x1060] ss:$24 sps:$4 sm:$0xff]  }
 0x417   :  { %8265 = vmatpush1.bf16.msra.mxu0 %v12129_v62  ;;  %v12200_v62 = vld [vmem:[#allocation7 + $0x1064] ss:$24 sps:$4 sm:$0xff]  }
 0x418   :  { %8300 = vmatpush1.bf16.msra.mxu1 %v12132_v18  ;;  %8266 = vmatprep.subr.bf16.mxu0 %v12137_v12  ;;  %v12195_v18 = vld [vmem:[#allocation7 + $0xdf0] ss:$24 sps:$4 sm:$0xff]   ;;  %v12203_v12 = vld [vmem:[#allocation7 + $0xdc4] ss:$24 sps:$4 sm:$0xff]  }
 0x419   :  { %8301 = vmatprep.subr.bf16.mxu1 %v12140_v37  ;;  %v12206_v37 = vld [vmem:[#allocation7 + $0x1034] ss:$24 sps:$4 sm:$0xff]  }
 0x41b   :  { %8267 = vmatpush1.bf16.msra.mxu0 %v12135_v5 }
 0x41c   :  { %8302 = vmatpush1.bf16.msra.mxu1 %v12138_v39  ;;  %8268 = vmatprep.subr.bf16.mxu0 %v12143_v43  ;;  %v12201_v43 = vld [vmem:[#allocation7 + $0xdc0] ss:$24 sps:$4 sm:$0xff]  }
 0x41d   :  { %8303 = vmatprep.subr.bf16.mxu1 %v12146_v48  ;;  %v12204_v48 = vld [vmem:[#allocation7 + $0x1030] ss:$24 sps:$4 sm:$0xff]  }
 0x41f   :  { %8269 = vmatpush1.bf16.msra.mxu0 %v12141_v42 }
 0x420   :  { %8304 = vmatpush1.bf16.msra.mxu1 %v12144_v54  ;;  %8270 = vmatprep.subr.bf16.mxu0 %v12149_v28  ;;  %v12209_v54 = vld [vmem:[#allocation7 + $0xd94] ss:$24 sps:$4 sm:$0xff]   ;;  %v12212_v28 = vld [vmem:[#allocation7 + $0x1004] ss:$24 sps:$4 sm:$0xff]  }
 0x421   :  { %8305 = vmatprep.subr.bf16.mxu1 %v12152_v44 }
 0x423   :  { %8271 = vmatpush2.bf16.msra.mxu0 %v12147_v2 }
 0x424   :  { %8306 = vmatpush1.bf16.msra.mxu1 %v12150_v53  ;;  %8272 = vmatprep.subr.bf16.mxu0 %v12155_v34  ;;  %v12207_v53 = vld [vmem:[#allocation7 + $0xd90] ss:$24 sps:$4 sm:$0xff]  }
 0x425   :  { %8307 = vmatprep.subr.bf16.mxu1 %v12158_v58  ;;  %v12218_v58 = vld [vmem:[#allocation7 + $0x1364] ss:$24 sps:$4 sm:$0xff]  }
 0x427   :  { %8273 = vmatpush2.bf16.msra.mxu0 %v12153_v60  ;;  %v12216_v60 = vld [vmem:[#allocation7 + $0x1360] ss:$24 sps:$4 sm:$0xff]  }
 0x428   :  { %8308 = vmatpush1.bf16.msra.mxu1 %v12156_v59  ;;  %8274 = vmatprep.subr.bf16.mxu0 %v12161_v30  ;;  %v12221_v59 = vld [vmem:[#allocation7 + $0xfa4] ss:$24 sps:$4 sm:$0xff]   ;;  %v12224_v30 = vld [vmem:[#allocation7 + $0x1334] ss:$24 sps:$4 sm:$0xff]  }
 0x429   :  { %8309 = vmatprep.subr.bf16.mxu1 %v12164_v15 }
 0x42b   :  { %8275 = vmatpush2.bf16.msra.mxu0 %v12159_v7  ;;  %v12219_v7 = vld [vmem:[#allocation7 + $0xfa0] ss:$24 sps:$4 sm:$0xff]  }
 0x42c   :  { %8310 = vmatpush1.bf16.msra.mxu1 %v12162_v9  ;;  %8276 = vmatprep.subr.bf16.mxu0 %v12167_v10  ;;  %v12222_v9 = vld [vmem:[#allocation7 + $0x1330] ss:$24 sps:$4 sm:$0xff]  }
 0x42d   :  { %8311 = vmatprep.subr.bf16.mxu1 %v12170_v40  ;;  %v12227_v40 = vld [vmem:[#allocation7 + $0xf74] ss:$24 sps:$4 sm:$0xff]  }
 0x42f   :  { %8277 = vmatpush2.bf16.msra.mxu0 %v12165_v14  ;;  %v12230_v14 = vld [vmem:[#allocation7 + $0x1304] ss:$24 sps:$4 sm:$0xff]  }
 0x430   :  { %8312 = vmatpush2.bf16.msra.mxu1 %v12168_v56  ;;  %8278 = vmatprep.subr.bf16.mxu0 %v12173_v16 }
 0x431   :  { %8313 = vmatprep.subr.bf16.mxu1 %v12176_v21  ;;  %v12225_v21 = vld [vmem:[#allocation7 + $0xf70] ss:$24 sps:$4 sm:$0xff]  }
 0x433   :  { %8279 = vmatpush2.bf16.msra.mxu0 %v12171_v11 }
 0x434   :  { %8314 = vmatpush2.bf16.msra.mxu1 %v12174_v24  ;;  %8280 = vmatprep.subr.bf16.mxu0 %v12179_v46  ;;  %v12233_v24 = vld [vmem:[#allocation7 + $0xf44] ss:$24 sps:$4 sm:$0xff]   ;;  %v12236_v46 = vld [vmem:[#allocation7 + $0x12d4] ss:$24 sps:$4 sm:$0xff]  }
 0x435   :  { %8315 = vmatprep.subr.bf16.mxu1 %v12182_v25  ;;  %v12234_v25 = vld [vmem:[#allocation7 + $0x12d0] ss:$24 sps:$4 sm:$0xff]  }
 0x437   :  { %8281 = vmatpush2.bf16.msra.mxu0 %v12177_v1  ;;  %v12239_v1 = vld [vmem:[#allocation7 + $0xf14] ss:$24 sps:$4 sm:$0xff]  }
 0x438   :  { %8316 = vmatpush2.bf16.msra.mxu1 %v12180_v26  ;;  %8282 = vmatprep.subr.bf16.mxu0 %v12185_v51  ;;  %v12242_v26 = vld [vmem:[#allocation7 + $0x12a4] ss:$24 sps:$4 sm:$0xff]   ;;  %v12237_v51 = vld [vmem:[#allocation7 + $0xf10] ss:$24 sps:$4 sm:$0xff]  }
 0x439   :  { %8317 = vmatprep.subr.bf16.mxu1 %v12188_v3  ;;  %v12240_v3 = vld [vmem:[#allocation7 + $0x12a0] ss:$24 sps:$4 sm:$0xff]  }
 0x43b   :  { %8283 = vmatpush2.bf16.msra.mxu0 %v12183_v47  ;;  %v12245_v47 = vld [vmem:[#allocation7 + $0x11e4] ss:$24 sps:$4 sm:$0xff]  }
 0x43c   :  { %8318 = vmatpush2.bf16.msra.mxu1 %v12186_v31  ;;  %8284 = vmatprep.subr.bf16.mxu0 %v12191_v32  ;;  %v12248_v31 = vld [vmem:[#allocation7 + $0x1274] ss:$24 sps:$4 sm:$0xff]   ;;  %v12243_v32 = vld [vmem:[#allocation7 + $0x11e0] ss:$24 sps:$4 sm:$0xff]  }
 0x43d   :  { %8319 = vmatprep.subr.bf16.mxu1 %v12194_v38  ;;  %v12246_v38 = vld [vmem:[#allocation7 + $0x1270] ss:$24 sps:$4 sm:$0xff]  }
 0x43f   :  { %8285 = vmatpush2.bf16.msra.mxu0 %v12189_v33  ;;  %v12251_v33 = vld [vmem:[#allocation7 + $0x11b4] ss:$24 sps:$4 sm:$0xff]  }
 0x440   :  { %8320 = vmatpush2.bf16.msra.mxu1 %v12192_v8  ;;  %8336 = vmatprep.subr.bf16.mxu0 %v12200_v62  ;;  %v12254_v8 = vld [vmem:[#allocation7 + $0x1244] ss:$24 sps:$4 sm:$0xff]   ;;  %v12252_v62 = vld [vmem:[#allocation7 + $0x1240] ss:$24 sps:$4 sm:$0xff]  }
 0x441   :  { %8321 = vmatprep.subr.bf16.mxu1 %v12197_v36  ;;  %v12249_v36 = vld [vmem:[#allocation7 + $0x11b0] ss:$24 sps:$4 sm:$0xff]  }
 0x442   :  { %v8042_v5 = vpop.f32.mrf.mxu0  ;;  %8287 = vmatmul.mubr.bf16.vlgmr.msra.gmra.mxu0 %v13051_v0  ;;  %v12210_v0 = vld [vmem:[#allocation7 + $0x1000] ss:$24 sps:$4 sm:$0xff]  }
 0x443   :  { %v8043_v39 = vadd.f32 %v8042_v5, %v13190_v29  ;;  %8337 = vmatpush1.bf16.msra.mxu0 %v12198_v63  ;;  %8368 = vmatprep.mubr.bf16.mxu0 %v13056_v6  ;;  %v12215_v29 = vld [vmem:[#allocation7 + $0xfd4] ss:$24 sps:$4 sm:$0xff]   ;;  %v12213_v6 = vld [vmem:[#allocation7 + $0xfd0] ss:$24 sps:$4 sm:$0xff]  }
 0x444   :  { %8322 = vmatpush2.bf16.msra.mxu1 %v12195_v18  ;;  %v8044_v42 = vpop.f32.mrf.mxu0  ;;  %8338 = vmatprep.subr.bf16.mxu0 %v12206_v37  ;;  %v12257_v18 = vld [vmem:[#allocation7 + $0x1184] ss:$24 sps:$4 sm:$0xff]   ;;  %v12260_v63 = vld [vmem:[#allocation7 + $0x1214] ss:$24 sps:$4 sm:$0xff]   ;;  %v12258_v37 = vld [vmem:[#allocation7 + $0x1210] ss:$24 sps:$4 sm:$0xff]  }
 0x445   :  { %8323 = vmatprep.subr.bf16.mxu1 %v12203_v12  ;;  %v8045_v44 = vadd.f32 %v8044_v42, %v13193_v35  ;;  %v12255_v12 = vld [vmem:[#allocation7 + $0x1180] ss:$24 sps:$4 sm:$0xff]   ;;  %v12263_v5 = vld [vmem:[#allocation7 + $0x1154] ss:$24 sps:$4 sm:$0xff]   ;;  %v12269_v42 = vld [vmem:[#allocation7 + $0x1124] ss:$24 sps:$4 sm:$0xff]  }
 0x446   :  { %v8046_v2 = vpop.f32.mrf.mxu0 }
 0x447   :  { %8339 = vmatpush1.bf16.msra.mxu0 %v12204_v48  ;;  %v12264_v48 = vld [vmem:[#allocation7 + $0x14e0] ss:$24 sps:$4 sm:$0xff]   ;;  %v12275_v2 = vld [vmem:[#allocation7 + $0x10f4] ss:$24 sps:$4 sm:$0xff]  }
 0x448   :  { %8324 = vmatpush2.bf16.msra.mxu1 %v12201_v43  ;;  %v8047_v34 = vpop.f32.mrf.mxu0  ;;  %8340 = vmatprep.subr.bf16.mxu0 %v12212_v28  ;;  %v12261_v43 = vld [vmem:[#allocation7 + $0x1150] ss:$24 sps:$4 sm:$0xff]   ;;  %v12267_v28 = vld [vmem:[#allocation7 + $0x1120] ss:$24 sps:$4 sm:$0xff]  }
 0x449   :  { %8325 = vmatprep.subr.bf16.mxu1 %v12209_v54  ;;  %v12272_v54 = vld [vmem:[#allocation7 + $0x14b4] ss:$24 sps:$4 sm:$0xff]   ;;  %v12276_v34 = vld [vmem:[#allocation7 + $0x1480] ss:$24 sps:$4 sm:$0xff]  }
 0x44b   :  { %8341 = vmatpush1.bf16.msra.mxu0 %v12210_v0  ;;  %v12273_v0 = vld [vmem:[#allocation7 + $0x10f0] ss:$24 sps:$4 sm:$0xff]  }
 0x44c   :  { %8326 = vmatpush2.bf16.msra.mxu1 %v12207_v53  ;;  %8342 = vmatprep.subr.bf16.mxu0 %v12215_v29  ;;  %v12278_v53 = vld [vmem:[#allocation7 + $0x1484] ss:$24 sps:$4 sm:$0xff]  }
 0x44d   :  { %8377 = vmatprep.subr.bf16.mxu1 %v12218_v58  ;;  %v12281_v29 = vld [vmem:[#allocation7 + $0x10c4] ss:$24 sps:$4 sm:$0xff]   ;;  %v12284_v58 = vld [vmem:[#allocation7 + $0x1454] ss:$24 sps:$4 sm:$0xff]  }
 0x44f   :  { %v8083_v35 = vpop.f32.mrf.mxu1  ;;  %8328 = vmatmul.mubr.bf16.vlgmr.msra.gmra.mxu1 %v13064_v19  ;;  %8343 = vmatpush1.bf16.msra.mxu0 %v12213_v6  ;;  %v12228_v19 = vld [vmem:[#allocation7 + $0x1300] ss:$24 sps:$4 sm:$0xff]  }
 0x450   :  { %v13200_v15 = vadd.f32 %v8083_v35, %v8043_v39  ;;  %8378 = vmatpush1.bf16.msra.mxu1 %v12216_v60  ;;  %8409 = vmatprep.mubr.bf16.mxu1 %v13085_v4  ;;  %v12231_v4 = vld [vmem:[#allocation7 + $0xf40] ss:$24 sps:$4 sm:$0xff]   ;;  %v12266_v39 = vld [vmem:[#allocation7 + $0x14e4] ss:$24 sps:$4 sm:$0xff]   ;;  %v12282_v60 = vld [vmem:[#allocation7 + $0x1450] ss:$24 sps:$4 sm:$0xff]  }
 0x451   :  { %v8085_v10 = vpop.f32.mrf.mxu1  ;;  %8344 = vmatprep.subr.bf16.mxu0 %v12221_v59  ;;  %8379 = vmatprep.subr.bf16.mxu1 %v12224_v30  ;;  %v12279_v6 = vld [vmem:[#allocation7 + $0x10c0] ss:$24 sps:$4 sm:$0xff]   ;;  %v12287_v59 = vld [vmem:[#allocation7 + $0x1094] ss:$24 sps:$4 sm:$0xff]   ;;  %v12290_v30 = vld [vmem:[#allocation7 + $0x1424] ss:$24 sps:$4 sm:$0xff]  }
 0x452   :  { %v13203_v56 = vadd.f32 %v8085_v10, %v8045_v44  ;;  %v12270_v44 = vld [vmem:[#allocation7 + $0x14b0] ss:$24 sps:$4 sm:$0xff]   ;;  %v12296_v10 = vld [vmem:[#allocation7 + $0x1664] ss:$24 sps:$4 sm:$0xff]  }
 0x453   :  { %v8087_v16 = vpop.f32.mrf.mxu1  ;;  %8345 = vmatpush1.bf16.msra.mxu0 %v12219_v7  ;;  %v12285_v35 = vld [vmem:[#allocation7 + $0x1090] ss:$24 sps:$4 sm:$0xff]   ;;  %v12288_v7 = vld [vmem:[#allocation7 + $0x1420] ss:$24 sps:$4 sm:$0xff]  }
 0x454   :  { %8380 = vmatpush1.bf16.msra.mxu1 %v12222_v9  ;;  %8346 = vmatprep.subr.bf16.mxu0 %v12227_v40  ;;  %v12293_v9 = vld [vmem:[#allocation7 + $0x13f4] ss:$24 sps:$4 sm:$0xff]   ;;  %v12291_v40 = vld [vmem:[#allocation7 + $0x13f0] ss:$24 sps:$4 sm:$0xff]   ;;  %v12299_v16 = vld [vmem:[#allocation7 + $0x13c4] ss:$24 sps:$4 sm:$0xff]  }
 0x455   :  { %v8088_v11 = vpop.f32.mrf.mxu1  ;;  %8381 = vmatprep.subr.bf16.mxu1 %v12230_v14  ;;  %v12294_v14 = vld [vmem:[#allocation7 + $0x1660] ss:$24 sps:$4 sm:$0xff]  }
 0x457   :  { %8347 = vmatpush1.bf16.msra.mxu0 %v12225_v21  ;;  %v12302_v21 = vld [vmem:[#allocation7 + $0x1634] ss:$24 sps:$4 sm:$0xff]  }
 0x458   :  { %8382 = vmatpush1.bf16.msra.mxu1 %v12228_v19  ;;  %8348 = vmatprep.subr.bf16.mxu0 %v12233_v24  ;;  %v12297_v24 = vld [vmem:[#allocation7 + $0x13c0] ss:$24 sps:$4 sm:$0xff]  }
 0x459   :  { %8383 = vmatprep.subr.bf16.mxu1 %v12236_v46  ;;  %v12300_v46 = vld [vmem:[#allocation7 + $0x1630] ss:$24 sps:$4 sm:$0xff]  }
 0x45b   :  { %8349 = vmatpush1.bf16.msra.mxu0 %v12231_v4 }
 0x45c   :  { %8384 = vmatpush1.bf16.msra.mxu1 %v12234_v25  ;;  %8350 = vmatprep.subr.bf16.mxu0 %v12239_v1  ;;  %v12305_v25 = vld [vmem:[#allocation7 + $0x1394] ss:$24 sps:$4 sm:$0xff]   ;;  %v12308_v1 = vld [vmem:[#allocation7 + $0x1604] ss:$24 sps:$4 sm:$0xff]  }
 0x45d   :  { %8385 = vmatprep.subr.bf16.mxu1 %v12242_v26 }
 0x45f   :  { %8351 = vmatpush1.bf16.msra.mxu0 %v12237_v51 }
 0x460   :  { %8386 = vmatpush1.bf16.msra.mxu1 %v12240_v3  ;;  %8352 = vmatprep.subr.bf16.mxu0 %v12245_v47  ;;  %v12311_v47 = vld [vmem:[#allocation7 + $0x15d4] ss:$24 sps:$4 sm:$0xff]  }
 0x461   :  { %8387 = vmatprep.subr.bf16.mxu1 %v12248_v31  ;;  %v12314_v31 = vld [vmem:[#allocation7 + $0x1964] ss:$24 sps:$4 sm:$0xff]  }
 0x463   :  { %8353 = vmatpush2.bf16.msra.mxu0 %v12243_v32  ;;  %v12312_v32 = vld [vmem:[#allocation7 + $0x1960] ss:$24 sps:$4 sm:$0xff]  }
 0x464   :  { %8388 = vmatpush1.bf16.msra.mxu1 %v12246_v38  ;;  %8354 = vmatprep.subr.bf16.mxu0 %v12251_v33  ;;  %v12317_v38 = vld [vmem:[#allocation7 + $0x15a4] ss:$24 sps:$4 sm:$0xff]  }
 0x465   :  { %8389 = vmatprep.subr.bf16.mxu1 %v12254_v8  ;;  %v12315_v8 = vld [vmem:[#allocation7 + $0x15a0] ss:$24 sps:$4 sm:$0xff]  }
 0x467   :  { %8355 = vmatpush2.bf16.msra.mxu0 %v12249_v36  ;;  %v12318_v36 = vld [vmem:[#allocation7 + $0x1930] ss:$24 sps:$4 sm:$0xff]  }
 0x468   :  { %8390 = vmatpush1.bf16.msra.mxu1 %v12252_v62  ;;  %8356 = vmatprep.subr.bf16.mxu0 %v12257_v18  ;;  %v12323_v18 = vld [vmem:[#allocation7 + $0x1574] ss:$24 sps:$4 sm:$0xff]  }
 0x469   :  { %8391 = vmatprep.subr.bf16.mxu1 %v12260_v63  ;;  %v12326_v63 = vld [vmem:[#allocation7 + $0x1904] ss:$24 sps:$4 sm:$0xff]  }
 0x46b   :  { %8357 = vmatpush2.bf16.msra.mxu0 %v12255_v12 }
 0x46c   :  { %8392 = vmatpush1.bf16.msra.mxu1 %v12258_v37  ;;  %8358 = vmatprep.subr.bf16.mxu0 %v12263_v5  ;;  %v12321_v37 = vld [vmem:[#allocation7 + $0x1570] ss:$24 sps:$4 sm:$0xff]   ;;  %v12324_v5 = vld [vmem:[#allocation7 + $0x1900] ss:$24 sps:$4 sm:$0xff]  }
 0x46d   :  { %8393 = vmatprep.subr.bf16.mxu1 %v12266_v39 }
 0x46f   :  { %8359 = vmatpush2.bf16.msra.mxu0 %v12261_v43  ;;  %v12332_v43 = vld [vmem:[#allocation7 + $0x18d4] ss:$24 sps:$4 sm:$0xff]  }
 0x470   :  { %8394 = vmatpush2.bf16.msra.mxu1 %v12264_v48  ;;  %8360 = vmatprep.subr.bf16.mxu0 %v12269_v42  ;;  %v12327_v48 = vld [vmem:[#allocation7 + $0x1540] ss:$24 sps:$4 sm:$0xff]   ;;  %v12335_v42 = vld [vmem:[#allocation7 + $0x1514] ss:$24 sps:$4 sm:$0xff]  }
 0x471   :  { %8395 = vmatprep.subr.bf16.mxu1 %v12272_v54  ;;  %v12338_v54 = vld [vmem:[#allocation7 + $0x18a4] ss:$24 sps:$4 sm:$0xff]  }
 0x473   :  { %8361 = vmatpush2.bf16.msra.mxu0 %v12267_v28  ;;  %v12333_v28 = vld [vmem:[#allocation7 + $0x1510] ss:$24 sps:$4 sm:$0xff]  }
 0x474   :  { %8396 = vmatpush2.bf16.msra.mxu1 %v12270_v44  ;;  %8362 = vmatprep.subr.bf16.mxu0 %v12275_v2  ;;  %v12336_v44 = vld [vmem:[#allocation7 + $0x18a0] ss:$24 sps:$4 sm:$0xff]   ;;  %v12341_v2 = vld [vmem:[#allocation7 + $0x17e4] ss:$24 sps:$4 sm:$0xff]  }
 0x475   :  { %8397 = vmatprep.subr.bf16.mxu1 %v12278_v53  ;;  %v12344_v53 = vld [vmem:[#allocation7 + $0x1874] ss:$24 sps:$4 sm:$0xff]  }
 0x477   :  { %8363 = vmatpush2.bf16.msra.mxu0 %v12273_v0  ;;  %v12339_v0 = vld [vmem:[#allocation7 + $0x17e0] ss:$24 sps:$4 sm:$0xff]  }
 0x478   :  { %8398 = vmatpush2.bf16.msra.mxu1 %v12276_v34  ;;  %8364 = vmatprep.subr.bf16.mxu0 %v12281_v29  ;;  %v12342_v34 = vld [vmem:[#allocation7 + $0x1870] ss:$24 sps:$4 sm:$0xff]   ;;  %v12347_v29 = vld [vmem:[#allocation7 + $0x17b4] ss:$24 sps:$4 sm:$0xff]  }
 0x479   :  { %8399 = vmatprep.subr.bf16.mxu1 %v12284_v58  ;;  %v12350_v58 = vld [vmem:[#allocation7 + $0x1844] ss:$24 sps:$4 sm:$0xff]  }
 0x47b   :  { %8365 = vmatpush2.bf16.msra.mxu0 %v12279_v6  ;;  %v12345_v6 = vld [vmem:[#allocation7 + $0x17b0] ss:$24 sps:$4 sm:$0xff]  }
 0x47c   :  { %8400 = vmatpush2.bf16.msra.mxu1 %v12282_v60  ;;  %8366 = vmatprep.subr.bf16.mxu0 %v12287_v59  ;;  %v12348_v60 = vld [vmem:[#allocation7 + $0x1840] ss:$24 sps:$4 sm:$0xff]   ;;  %v12353_v59 = vld [vmem:[#allocation7 + $0x1784] ss:$24 sps:$4 sm:$0xff]  }
 0x47d   :  { %8401 = vmatprep.subr.bf16.mxu1 %v12290_v30  ;;  %v12356_v30 = vld [vmem:[#allocation7 + $0x1814] ss:$24 sps:$4 sm:$0xff]  }
 0x47f   :  { %8367 = vmatpush2.bf16.msra.mxu0 %v12285_v35  ;;  %v12351_v35 = vld [vmem:[#allocation7 + $0x1780] ss:$24 sps:$4 sm:$0xff]  }
 0x480   :  { %8402 = vmatpush2.bf16.msra.mxu1 %v12288_v7  ;;  %8418 = vmatprep.subr.bf16.mxu0 %v12296_v10  ;;  %v12354_v7 = vld [vmem:[#allocation7 + $0x1810] ss:$24 sps:$4 sm:$0xff]   ;;  %v12362_v10 = vld [vmem:[#allocation7 + $0x1ae4] ss:$24 sps:$4 sm:$0xff]  }
 0x481   :  { %8403 = vmatprep.subr.bf16.mxu1 %v12293_v9  ;;  %v12359_v9 = vld [vmem:[#allocation7 + $0x1754] ss:$24 sps:$4 sm:$0xff]  }
 0x482   :  { %v8124_v19 = vpop.f32.mrf.mxu0  ;;  %8369 = vmatmul.mubr.bf16.vlgmr.msra.gmra.mxu0 %v13094_v13  ;;  %v12303_v13 = vld [vmem:[#allocation7 + $0x1390] ss:$24 sps:$4 sm:$0xff]  }
 0x483   :  { %v13207_v11 = vadd.f32 %v8124_v19, %v13200_v15  ;;  %8419 = vmatpush1.bf16.msra.mxu0 %v12294_v14  ;;  %8450 = vmatprep.mubr.bf16.mxu0 %v13098_v61  ;;  %v12306_v15 = vld [vmem:[#allocation7 + $0x1600] ss:$24 sps:$4 sm:$0xff]   ;;  %v12309_v61 = vld [vmem:[#allocation7 + $0x15d0] ss:$24 sps:$4 sm:$0xff]  }
 0x484   :  { %8404 = vmatpush2.bf16.msra.mxu1 %v12291_v40  ;;  %v8126_v4 = vpop.f32.mrf.mxu0  ;;  %8420 = vmatprep.subr.bf16.mxu0 %v12302_v21  ;;  %v12357_v40 = vld [vmem:[#allocation7 + $0x1750] ss:$24 sps:$4 sm:$0xff]   ;;  %v12360_v14 = vld [vmem:[#allocation7 + $0x1ae0] ss:$24 sps:$4 sm:$0xff]   ;;  %v12368_v21 = vld [vmem:[#allocation7 + $0x1ab4] ss:$24 sps:$4 sm:$0xff]  }
 0x485   :  { %8405 = vmatprep.subr.bf16.mxu1 %v12299_v16  ;;  %v13211_v26 = vadd.f32 %v8126_v4, %v13203_v56  ;;  %v12320_v56 = vld [vmem:[#allocation7 + $0x1934] ss:$24 sps:$4 sm:$0xff]   ;;  %v12365_v16 = vld [vmem:[#allocation7 + $0x1724] ss:$24 sps:$4 sm:$0xff]   ;;  %v12363_v19 = vld [vmem:[#allocation7 + $0x1720] ss:$24 sps:$4 sm:$0xff]  }
 0x486   :  { %v8128_v51 = vpop.f32.mrf.mxu0  ;;  %v12374_v4 = vld [vmem:[#allocation7 + $0x1a84] ss:$24 sps:$4 sm:$0xff]  }
 0x487   :  { %8421 = vmatpush1.bf16.msra.mxu0 %v12300_v46  ;;  %v12371_v46 = vld [vmem:[#allocation7 + $0x16f4] ss:$24 sps:$4 sm:$0xff]   ;;  %v12369_v51 = vld [vmem:[#allocation7 + $0x16f0] ss:$24 sps:$4 sm:$0xff]  }
 0x488   :  { %8406 = vmatpush2.bf16.msra.mxu1 %v12297_v24  ;;  %v8129_v3 = vpop.f32.mrf.mxu0  ;;  %8422 = vmatprep.subr.bf16.mxu0 %v12308_v1  ;;  %v12366_v24 = vld [vmem:[#allocation7 + $0x1ab0] ss:$24 sps:$4 sm:$0xff]  }
 0x489   :  { %8407 = vmatprep.subr.bf16.mxu1 %v12305_v25  ;;  %v13219_v25 = vld [vmem:[#allocation9] sm:$0x3f]  ;;  %v12380_v3 = vld [vmem:[#allocation7 + $0x1a54] ss:$24 sps:$4 sm:$0xff]  }
 0x48a   :  { %v8509_v1 = vrot.slane %v13219_v25, %v12940_v22 }
 0x48b   :  { %8423 = vmatpush1.bf16.msra.mxu0 %v12306_v15  ;;  %v12377_v15 = vld [vmem:[#allocation7 + $0x16c4] ss:$24 sps:$4 sm:$0xff]  }
 0x48c   :  { %8408 = vmatpush2.bf16.msra.mxu1 %v12303_v13  ;;  %8424 = vmatprep.subr.bf16.mxu0 %v12311_v47  ;;  %v12372_v13 = vld [vmem:[#allocation7 + $0x1a80] ss:$24 sps:$4 sm:$0xff]   ;;  %v13223_v47 = vld [vmem:[#allocation10] sm:$0x3f] }
 0x48d   :  { %8459 = vmatprep.subr.bf16.mxu1 %v12314_v31  ;;  %v8533_v31 = vmul.f32 %v8509_v1, %v13165_v45  ;;  %v12392_v45 = vld [vmem:[#allocation12 + $0x74] ss:$8 sps:$4 sm:$0xff]  }
 0x48f   :  { %v13213_v33 = vpop.f32.mrf.mxu1  ;;  %8410 = vmatmul.mubr.bf16.vlgmr.msra.gmra.mxu1 %v13107_v49  ;;  %8425 = vmatpush1.bf16.msra.mxu0 %v12309_v61  ;;  %v12329_v49 = vld [vmem:[#allocation7 + $0x1544] ss:$24 sps:$4 sm:$0xff]   ;;  %v8547_v61 = vrot.slane %v13223_v47, %v12940_v22 }
 0x490   :  { %8460 = vmatpush1.bf16.msra.mxu1 %v12312_v32  ;;  %8491 = vmatprep.mubr.bf16.mxu1 %v13109_v27  ;;  %v12330_v27 = vld [vmem:[#allocation7 + $0x18d0] ss:$24 sps:$4 sm:$0xff]   ;;  %v12375_v32 = vld [vmem:[#allocation7 + $0x16c0] ss:$24 sps:$4 sm:$0xff]  }
 0x491   :  { %v13217_v62 = vpop.f32.mrf.mxu1  ;;  %8426 = vmatprep.subr.bf16.mxu0 %v12317_v38  ;;  %8461 = vmatprep.subr.bf16.mxu1 %v12320_v56  ;;  %v12378_v38 = vld [vmem:[#allocation7 + $0x1a50] ss:$24 sps:$4 sm:$0xff]   ;;  %v12383_v56 = vld [vmem:[#allocation7 + $0x1694] ss:$24 sps:$4 sm:$0xff]  }
 0x493   :  { %v8169_v12 = vpop.f32.mrf.mxu1  ;;  %8427 = vmatpush1.bf16.msra.mxu0 %v12315_v8  ;;  %v12386_v8 = vld [vmem:[#allocation7 + $0x1a24] ss:$24 sps:$4 sm:$0xff]  }
 0x494   :  { %8462 = vmatpush1.bf16.msra.mxu1 %v12318_v36  ;;  %8428 = vmatprep.subr.bf16.mxu0 %v12323_v18  ;;  %v8571_v36 = vadd.f32 %v8547_v61, %v8533_v31  ;;  %v12381_v18 = vld [vmem:[#allocation7 + $0x1690] ss:$24 sps:$4 sm:$0xff]   ;;  %v12389_v12 = vld [vmem:[#allocation7 + $0x19f4] ss:$24 sps:$4 sm:$0xff]   ;;  %v12423_v31 = vld [vmem:[#allocation12 + $0x10] ss:$8 sps:$4 sm:$0xff]  }
 0x495   :  { %v8170_v39 = vpop.f32.mrf.mxu1  ;;  %8463 = vmatprep.subr.bf16.mxu1 %v12326_v63  ;;  %v12384_v63 = vld [vmem:[#allocation7 + $0x1a20] ss:$24 sps:$4 sm:$0xff]   ;;  %v12426_v61 = vld [vmem:[#allocation12 + $0x140] ss:$8 sps:$4 sm:$0xff]  }
 0x496   :  { %v12387_v39 = vld [vmem:[#allocation7 + $0x19f0] ss:$24 sps:$4 sm:$0xff]  }
 0x497   :  { %8429 = vmatpush1.bf16.msra.mxu0 %v12321_v37  ;;  %v8517_v37 = vrot.slane %v13219_v25, %v12943_v23 }
 0x498   :  { %8464 = vmatpush1.bf16.msra.mxu1 %v12324_v5  ;;  %8430 = vmatprep.subr.bf16.mxu0 %v12329_v49  ;;  %v8577_v5 = vmax.f32 %v8571_v36, 0.0  ;;  %v12390_v49 = vld [vmem:[#allocation12 + $0x70] ss:$8 sps:$4 sm:$0xff]   ;;  %v12437_v36 = vld [vmem:[#allocation12 + $0xf4] ss:$8 sps:$4 sm:$0xff]  }
 0x499   :  { %8465 = vmatprep.subr.bf16.mxu1 %v12332_v43  ;;  %v12395_v43 = vld [vmem:[#allocation7 + $0x19c4] ss:$24 sps:$4 sm:$0xff]  }
 0x49b   :  { %8431 = vmatpush1.bf16.msra.mxu0 %v12327_v48  ;;  %v12398_v48 = vld [vmem:[#allocation12 + $0x64] ss:$8 sps:$4 sm:$0xff]  }
 0x49c   :  { %8466 = vmatpush1.bf16.msra.mxu1 %v12330_v27  ;;  %8432 = vmatprep.subr.bf16.mxu0 %v12335_v42  ;;  %v8535_v27 = vmul.f32 %v8517_v37, %v13211_v26  ;;  %v8555_v42 = vrot.slane %v13223_v47, %v12943_v23  ;;  %v12446_v37 = vld [vmem:[#allocation12 + $0x114] ss:$8 sps:$4 sm:$0xff]  }
 0x49d   :  { %8467 = vmatprep.subr.bf16.mxu1 %v12338_v54 }
 0x49f   :  { %8433 = vmatpush1.bf16.msra.mxu0 %v12333_v28  ;;  %v8583_v28 = vpack.c.bf16 %v8577_v5, %v8577_v5  ;;  %v12441_v5 = vld [vmem:[#allocation12 + $0xe0] ss:$8 sps:$4 sm:$0xff]  }
 0x4a0   :  { %8468 = vmatpush1.bf16.msra.mxu1 %v12336_v44  ;;  %8434 = vmatprep.subr.bf16.mxu0 %v12341_v2  ;;  %v12393_v2 = vld [vmem:[#allocation7 + $0x19c0] ss:$24 sps:$4 sm:$0xff]  }
 0x4a1   :  { %8469 = vmatprep.subr.bf16.mxu1 %v12344_v53  ;;  %v12396_v53 = vld [vmem:[#allocation12 + $0x60] ss:$8 sps:$4 sm:$0xff]  }
 0x4a3   :  { %8435 = vmatpush2.bf16.msra.mxu0 %v12339_v0 }
 0x4a4   :  { %8470 = vmatpush1.bf16.msra.mxu1 %v12342_v34  ;;  %8436 = vmatprep.subr.bf16.mxu0 %v12347_v29  ;;  %v12401_v34 = vld [vmem:[#allocation7 + $0x1994] ss:$24 sps:$4 sm:$0xff]   ;;  %v12404_v29 = vld [vmem:[#allocation12 + $0x54] ss:$8 sps:$4 sm:$0xff]  }
 0x4a5   :  { %8471 = vmatprep.subr.bf16.mxu1 %v12350_v58  ;;  %v8573_v58 = vadd.f32 %v8555_v42, %v8535_v27  ;;  %v12450_v27 = vld [vmem:[#allocation12 + $0x100] ss:$8 sps:$4 sm:$0xff]   ;;  %v12455_v42 = vld [vmem:[#allocation12 + $0xc4] ss:$8 sps:$4 sm:$0xff]  }
 0x4a7   :  { %8437 = vmatpush2.bf16.msra.mxu0 %v12345_v6  ;;  %v12402_v6 = vld [vmem:[#allocation12 + $0x50] ss:$8 sps:$4 sm:$0xff]  }
 0x4a8   :  { %8472 = vmatpush1.bf16.msra.mxu1 %v12348_v60  ;;  %8438 = vmatprep.subr.bf16.mxu0 %v12353_v59  ;;  %v12410_v59 = vld [vmem:[#allocation12 + $0x174] ss:$8 sps:$4 sm:$0xff]  }
 0x4a9   :  { %8473 = vmatprep.subr.bf16.mxu1 %v12356_v30  ;;  %v8579_v30 = vmax.f32 %v8573_v58, 0.0  ;;  %v12470_v58 = vld [vmem:[#allocation12 + $0x1d4] ss:$8 sps:$4 sm:$0xff]  }
 0x4ab   :  { %8439 = vmatpush2.bf16.msra.mxu0 %v12351_v35  ;;  %v12405_v35 = vld [vmem:[#allocation12 + $0x40] ss:$8 sps:$4 sm:$0xff]  }
 0x4ac   :  { %8474 = vmatpush1.bf16.msra.mxu1 %v12354_v7  ;;  %8440 = vmatprep.subr.bf16.mxu0 %v12359_v9  ;;  %v12408_v7 = vld [vmem:[#allocation12 + $0x170] ss:$8 sps:$4 sm:$0xff]   ;;  %v12416_v9 = vld [vmem:[#allocation12 + $0x164] ss:$8 sps:$4 sm:$0xff]  }
 0x4ad   :  { %8475 = vmatprep.subr.bf16.mxu1 %v12362_v10 }
 0x4af   :  { %8441 = vmatpush2.bf16.msra.mxu0 %v12357_v40  ;;  %v8585_v40 = vpack.c.bf16 %v8579_v30, %v8579_v30  ;;  %v12471_v30 = vld [vmem:[#allocation12 + $0x90] ss:$8 sps:$4 sm:$0xff]  }
 0x4b0   :  { %8476 = vmatpush2.bf16.msra.mxu1 %v12360_v14  ;;  %8442 = vmatprep.subr.bf16.mxu0 %v12365_v16  ;;  %v12411_v16 = vld [vmem:[#allocation12 + $0x30] ss:$8 sps:$4 sm:$0xff]  }
 0x4b1   :  { %8477 = vmatprep.subr.bf16.mxu1 %v12368_v21  ;;  %v12414_v21 = vld [vmem:[#allocation12 + $0x160] ss:$8 sps:$4 sm:$0xff]  }
 0x4b3   :  { %8443 = vmatpush2.bf16.msra.mxu0 %v12363_v19 }
 0x4b4   :  { %8478 = vmatpush2.bf16.msra.mxu1 %v12366_v24  ;;  %8444 = vmatprep.subr.bf16.mxu0 %v12371_v46  ;;  %v12419_v24 = vld [vmem:[#allocation12 + $0x24] ss:$8 sps:$4 sm:$0xff]   ;;  %v12422_v46 = vld [vmem:[#allocation12 + $0x154] ss:$8 sps:$4 sm:$0xff]  }
 0x4b5   :  { %8479 = vmatprep.subr.bf16.mxu1 %v12374_v4 }
 0x4b7   :  { %8445 = vmatpush2.bf16.msra.mxu0 %v12369_v51  ;;  %v12417_v51 = vld [vmem:[#allocation12 + $0x20] ss:$8 sps:$4 sm:$0xff]  }
 0x4b8   :  { %8480 = vmatpush2.bf16.msra.mxu1 %v12372_v13  ;;  %8446 = vmatprep.subr.bf16.mxu0 %v12377_v15  ;;  %v12425_v15 = vld [vmem:[#allocation12 + $0x14] ss:$8 sps:$4 sm:$0xff]  }
 0x4b9   :  { %8481 = vmatprep.subr.bf16.mxu1 %v12380_v3  ;;  %v12428_v3 = vld [vmem:[#allocation12 + $0x144] ss:$8 sps:$4 sm:$0xff]  }
 0x4bb   :  { %8447 = vmatpush2.bf16.msra.mxu0 %v12375_v32  ;;  %v12431_v32 = vld [vmem:[#allocation12 + $0x4] ss:$8 sps:$4 sm:$0xff]  }
 0x4bc   :  { %8482 = vmatpush2.bf16.msra.mxu1 %v12378_v38  ;;  %8448 = vmatprep.subr.bf16.mxu0 %v12383_v56  ;;  %v12434_v38 = vld [vmem:[#allocation12 + $0x134] ss:$8 sps:$4 sm:$0xff]   ;;  %v12429_v56 = vld [vmem:[#allocation12] ss:$8 sps:$4 sm:$0xff]  }
 0x4bd   :  { %8483 = vmatprep.subr.bf16.mxu1 %v12386_v8  ;;  %v12432_v8 = vld [vmem:[#allocation12 + $0x130] ss:$8 sps:$4 sm:$0xff]  }
 0x4bf   :  { %8449 = vmatpush2.bf16.msra.mxu0 %v12381_v18  ;;  %v12440_v18 = vld [vmem:[#allocation12 + $0x124] ss:$8 sps:$4 sm:$0xff]  }
 0x4c0   :  { %8484 = vmatpush2.bf16.msra.mxu1 %v12384_v63  ;;  %9176 = vmatprep.subr.bf16.mxu0 %v12392_v45  ;;  %v12435_v63 = vld [vmem:[#allocation12 + $0xf0] ss:$8 sps:$4 sm:$0xff]   ;;  %v12443_v45 = vld [vmem:[#allocation12 + $0xe4] ss:$8 sps:$4 sm:$0xff]  }
 0x4c1   :  { %8485 = vmatprep.subr.bf16.mxu1 %v12389_v12  ;;  %v12438_v12 = vld [vmem:[#allocation12 + $0x120] ss:$8 sps:$4 sm:$0xff]  }
 0x4c2   :  { %v8206_v54 = vpop.f32.mrf.mxu0  ;;  %8451 = vmatmul.mubr.bf16.vlgmr.msra.gmra.mxu0 %v13120_v20  ;;  %v12399_v20 = vld [vmem:[#allocation7 + $0x1990] ss:$24 sps:$4 sm:$0xff]  }
 0x4c3   :  { %v8207_v44 = vadd.f32 %v8206_v54, %v13213_v33  ;;  %9177 = vmatpush1.bf16.msra.mxu0 %v12390_v49  ;;  %9208 = vmatprep.mubr.bf16.mxu0 %v8583_v28  ;;  %v12407_v33 = vld [vmem:[#allocation12 + $0x44] ss:$8 sps:$4 sm:$0xff]   ;;  %v12449_v49 = vld [vmem:[#allocation12 + $0xd4] ss:$8 sps:$4 sm:$0xff]   ;;  %v12453_v28 = vld [vmem:[#allocation12 + $0xc0] ss:$8 sps:$4 sm:$0xff]  }
 0x4c4   :  { %8486 = vmatpush2.bf16.msra.mxu1 %v12387_v39  ;;  %v8208_v0 = vpop.f32.mrf.mxu0  ;;  %9178 = vmatprep.subr.bf16.mxu0 %v12398_v48  ;;  %v12444_v39 = vld [vmem:[#allocation12 + $0x110] ss:$8 sps:$4 sm:$0xff]   ;;  %v12458_v54 = vld [vmem:[#allocation12 + $0x1f4] ss:$8 sps:$4 sm:$0xff]  }
 0x4c5   :  { %8487 = vmatprep.subr.bf16.mxu1 %v12395_v43  ;;  %v8209_v26 = vadd.f32 %v8208_v0, %v13217_v62  ;;  %v12413_v62 = vld [vmem:[#allocation12 + $0x34] ss:$8 sps:$4 sm:$0xff]   ;;  %v12452_v43 = vld [vmem:[#allocation12 + $0x104] ss:$8 sps:$4 sm:$0xff]   ;;  %v12447_v48 = vld [vmem:[#allocation12 + $0xd0] ss:$8 sps:$4 sm:$0xff]  }
 0x4c6   :  { %v8210_v23 = vpop.f32.mrf.mxu0  ;;  %v12459_v0 = vld [vmem:[#allocation12 + $0xb0] ss:$8 sps:$4 sm:$0xff]  }
 0x4c7   :  { %9179 = vmatpush1.bf16.msra.mxu0 %v12396_v53  ;;  %v12464_v53 = vld [vmem:[#allocation12 + $0x1e4] ss:$8 sps:$4 sm:$0xff]   ;;  %v12465_v23 = vld [vmem:[#allocation12 + $0xa0] ss:$8 sps:$4 sm:$0xff]  }
 0x4c8   :  { %8488 = vmatpush2.bf16.msra.mxu1 %v12393_v2  ;;  %v8211_v60 = vpop.f32.mrf.mxu0  ;;  %9180 = vmatprep.subr.bf16.mxu0 %v12404_v29  ;;  %v12461_v2 = vld [vmem:[#allocation12 + $0xb4] ss:$8 sps:$4 sm:$0xff]   ;;  %v8505_v29 = vrot.slane %v13219_v25, %v12960_v52 }
 0x4c9   :  { %8489 = vmatprep.subr.bf16.mxu1 %v12401_v34  ;;  %v12462_v34 = vld [vmem:[#allocation12 + $0x1e0] ss:$8 sps:$4 sm:$0xff]   ;;  %v8543_v60 = vrot.slane %v13223_v47, %v12960_v52 }
 0x4cb   :  { %9181 = vmatpush1.bf16.msra.mxu0 %v12402_v6  ;;  %v8532_v6 = vmul.f32 %v8505_v29, %v13162_v41  ;;  %v12480_v41 = vld [vmem:[#allocation12 + $0x1b0] ss:$8 sps:$4 sm:$0xff]   ;;  %v12518_v29 = vld [vmem:[#allocation12 + $0x2f4] ss:$8 sps:$4 sm:$0xff]  }
 0x4cc   :  { %8490 = vmatpush2.bf16.msra.mxu1 %v12399_v20  ;;  %9182 = vmatprep.subr.bf16.mxu0 %v12407_v33  ;;  %v12468_v20 = vld [vmem:[#allocation12 + $0x1d0] ss:$8 sps:$4 sm:$0xff]   ;;  %v12473_v33 = vld [vmem:[#allocation12 + $0x94] ss:$8 sps:$4 sm:$0xff]  }
 0x4cd   :  { %9217 = vmatprep.subr.bf16.mxu1 %v12410_v59  ;;  %v12476_v59 = vld [vmem:[#allocation12 + $0x1c4] ss:$8 sps:$4 sm:$0xff]  }
 0x4cf   :  { %v8247_v10 = vpop.f32.mrf.mxu1  ;;  %8492 = vmatmul.mubr.bf16.vlgmr.msra.gmra.mxu1 %v13129_v57  ;;  %9183 = vmatpush1.bf16.msra.mxu0 %v12405_v35  ;;  %v12420_v57 = vld [vmem:[#allocation12 + $0x150] ss:$8 sps:$4 sm:$0xff]   ;;  %v12474_v35 = vld [vmem:[#allocation12 + $0x1c0] ss:$8 sps:$4 sm:$0xff]  }
 0x4d0   :  { %v13237_v14 = vadd.f32 %v8247_v10, %v8207_v44  ;;  %9218 = vmatpush1.bf16.msra.mxu1 %v12408_v7  ;;  %9249 = vmatprep.mubr.bf16.mxu1 %v8585_v40  ;;  %v12456_v44 = vld [vmem:[#allocation12 + $0x1f0] ss:$8 sps:$4 sm:$0xff]   ;;  %v8570_v7 = vadd.f32 %v8543_v60, %v8532_v6  ;;  %v12477_v10 = vld [vmem:[#allocation12 + $0x80] ss:$8 sps:$4 sm:$0xff]   ;;  %v12527_v60 = vld [vmem:[#allocation12 + $0x2c4] ss:$8 sps:$4 sm:$0xff]  }
 0x4d1   :  { %v8249_v19 = vpop.f32.mrf.mxu1  ;;  %9184 = vmatprep.subr.bf16.mxu0 %v12413_v62  ;;  %9219 = vmatprep.subr.bf16.mxu1 %v12416_v9  ;;  %v12479_v62 = vld [vmem:[#allocation12 + $0x84] ss:$8 sps:$4 sm:$0xff]   ;;  %v12482_v9 = vld [vmem:[#allocation12 + $0x1b4] ss:$8 sps:$4 sm:$0xff]   ;;  %v12522_v6 = vld [vmem:[#allocation12 + $0x2d0] ss:$8 sps:$4 sm:$0xff]  }
 0x4d2   :  { %v13239_v4 = vadd.f32 %v8249_v19, %v8209_v26  ;;  %v12467_v26 = vld [vmem:[#allocation12 + $0xa4] ss:$8 sps:$4 sm:$0xff]   ;;  %v8576_v40 = vmax.f32 %v8570_v7, 0.0  ;;  %v12494_v19 = vld [vmem:[#allocation12 + $0x274] ss:$8 sps:$4 sm:$0xff]  }
 0x4d3   :  { %v8251_v1 = vpop.f32.mrf.mxu1  ;;  %9185 = vmatpush1.bf16.msra.mxu0 %v12411_v16  ;;  %v8513_v16 = vrot.slane %v13219_v25, %v12933_v17  ;;  %v12531_v7 = vld [vmem:[#allocation12 + $0x2a0] ss:$8 sps:$4 sm:$0xff]  }
 0x4d4   :  { %9220 = vmatpush1.bf16.msra.mxu1 %v12414_v21  ;;  %9186 = vmatprep.subr.bf16.mxu0 %v12419_v24  ;;  %v12485_v21 = vld [vmem:[#allocation12 + $0x1a4] ss:$8 sps:$4 sm:$0xff]   ;;  %v12483_v24 = vld [vmem:[#allocation12 + $0x1a0] ss:$8 sps:$4 sm:$0xff]   ;;  %v8582_v1 = vpack.c.bf16 %v8576_v40, %v8576_v40 }
 0x4d5   :  { %v8252_v13 = vpop.f32.mrf.mxu1  ;;  %9221 = vmatprep.subr.bf16.mxu1 %v12422_v46  ;;  %v12492_v46 = vld [vmem:[#allocation12 + $0x270] ss:$8 sps:$4 sm:$0xff]  }
 0x4d6   :  { %v12488_v13 = vld [vmem:[#allocation12 + $0x194] ss:$8 sps:$4 sm:$0xff]  }
 0x4d7   :  { %9187 = vmatpush1.bf16.msra.mxu0 %v12417_v51  ;;  %v8534_v51 = vmul.f32 %v8513_v16, %v13207_v11  ;;  %v12500_v11 = vld [vmem:[#allocation12 + $0x254] ss:$8 sps:$4 sm:$0xff]  }
 0x4d8   :  { %9222 = vmatpush1.bf16.msra.mxu1 %v12420_v57  ;;  %9188 = vmatprep.subr.bf16.mxu0 %v12425_v15  ;;  %v8551_v57 = vrot.slane %v13223_v47, %v12933_v17  ;;  %v12497_v15 = vld [vmem:[#allocation12 + $0x264] ss:$8 sps:$4 sm:$0xff]  }
 0x4d9   :  { %9223 = vmatprep.subr.bf16.mxu1 %v12428_v3 }
 0x4db   :  { %9189 = vmatpush1.bf16.msra.mxu0 %v12423_v31 }
 0x4dc   :  { %9224 = vmatpush1.bf16.msra.mxu1 %v12426_v61  ;;  %9190 = vmatprep.subr.bf16.mxu0 %v12431_v32  ;;  %v12486_v61 = vld [vmem:[#allocation12 + $0x190] ss:$8 sps:$4 sm:$0xff]   ;;  %v12495_v32 = vld [vmem:[#allocation12 + $0x260] ss:$8 sps:$4 sm:$0xff]  }
 0x4dd   :  { %9225 = vmatprep.subr.bf16.mxu1 %v12434_v38  ;;  %v8572_v38 = vadd.f32 %v8551_v57, %v8534_v51 }
 0x4df   :  { %9191 = vmatpush1.bf16.msra.mxu0 %v12429_v56 }
 0x4e0   :  { %9226 = vmatpush1.bf16.msra.mxu1 %v12432_v8  ;;  %9192 = vmatprep.subr.bf16.mxu0 %v12437_v36  ;;  %v12491_v8 = vld [vmem:[#allocation12 + $0x184] ss:$8 sps:$4 sm:$0xff]  }
 0x4e1   :  { %9227 = vmatprep.subr.bf16.mxu1 %v12440_v18  ;;  %v12489_v18 = vld [vmem:[#allocation12 + $0x180] ss:$8 sps:$4 sm:$0xff]  }
 0x4e3   :  { %9193 = vmatpush2.bf16.msra.mxu0 %v12435_v63  ;;  %v12498_v63 = vld [vmem:[#allocation12 + $0x250] ss:$8 sps:$4 sm:$0xff]  }
 0x4e4   :  { %9228 = vmatpush1.bf16.msra.mxu1 %v12438_v12  ;;  %9194 = vmatprep.subr.bf16.mxu0 %v12443_v45  ;;  %v8578_v12 = vmax.f32 %v8572_v38, 0.0  ;;  %v12545_v38 = vld [vmem:[#allocation15 + $0x28] sm:$0xff]  }
 0x4e5   :  { %9229 = vmatprep.subr.bf16.mxu1 %v12446_v37  ;;  %v12501_v37 = vld [vmem:[#allocation12 + $0x240] ss:$8 sps:$4 sm:$0xff]  }
 0x4e7   :  { %9195 = vmatpush2.bf16.msra.mxu0 %v12441_v5  ;;  %v8584_v5 = vpack.c.bf16 %v8578_v12, %v8578_v12 }
 0x4e8   :  { %9230 = vmatpush1.bf16.msra.mxu1 %v12444_v39  ;;  %9196 = vmatprep.subr.bf16.mxu0 %v12449_v49  ;;  %v12506_v39 = vld [vmem:[#allocation12 + $0x234] ss:$8 sps:$4 sm:$0xff]  }
 0x4e9   :  { %9231 = vmatprep.subr.bf16.mxu1 %v12452_v43 }
 0x4eb   :  { %9197 = vmatpush2.bf16.msra.mxu0 %v12447_v48 }
 0x4ec   :  { %9232 = vmatpush1.bf16.msra.mxu1 %v12450_v27  ;;  %9198 = vmatprep.subr.bf16.mxu0 %v12455_v42  ;;  %v12509_v27 = vld [vmem:[#allocation12 + $0x224] ss:$8 sps:$4 sm:$0xff]  }
 0x4ed   :  { %9233 = vmatprep.subr.bf16.mxu1 %v12458_v54 }
 0x4ef   :  { %9199 = vmatpush2.bf16.msra.mxu0 %v12453_v28  ;;  %v12507_v28 = vld [vmem:[#allocation12 + $0x220] ss:$8 sps:$4 sm:$0xff]  }
 0x4f0   :  { %9234 = vmatpush2.bf16.msra.mxu1 %v12456_v44  ;;  %9200 = vmatprep.subr.bf16.mxu0 %v12461_v2  ;;  %v12512_v2 = vld [vmem:[#allocation12 + $0x214] ss:$8 sps:$4 sm:$0xff]  }
 0x4f1   :  { %9235 = vmatprep.subr.bf16.mxu1 %v12464_v53  ;;  %v12510_v53 = vld [vmem:[#allocation12 + $0x210] ss:$8 sps:$4 sm:$0xff]  }
 0x4f3   :  { %9201 = vmatpush2.bf16.msra.mxu0 %v12459_v0  ;;  %v12515_v0 = vld [vmem:[#allocation12 + $0x204] ss:$8 sps:$4 sm:$0xff]  }
 0x4f4   :  { %9236 = vmatpush2.bf16.msra.mxu1 %v12462_v34  ;;  %9202 = vmatprep.subr.bf16.mxu0 %v12467_v26  ;;  %v12513_v34 = vld [vmem:[#allocation12 + $0x200] ss:$8 sps:$4 sm:$0xff]   ;;  %v12516_v26 = vld [vmem:[#allocation12 + $0x2f0] ss:$8 sps:$4 sm:$0xff]  }
 0x4f5   :  { %9237 = vmatprep.subr.bf16.mxu1 %v12470_v58  ;;  %v12521_v58 = vld [vmem:[#allocation12 + $0x2e4] ss:$8 sps:$4 sm:$0xff]  }
 0x4f7   :  { %9203 = vmatpush2.bf16.msra.mxu0 %v12465_v23  ;;  %v12519_v23 = vld [vmem:[#allocation12 + $0x2e0] ss:$8 sps:$4 sm:$0xff]  }
 0x4f8   :  { %9238 = vmatpush2.bf16.msra.mxu1 %v12468_v20  ;;  %9204 = vmatprep.subr.bf16.mxu0 %v12473_v33  ;;  %v12524_v20 = vld [vmem:[#allocation12 + $0x2d4] ss:$8 sps:$4 sm:$0xff]   ;;  %v12525_v33 = vld [vmem:[#allocation12 + $0x2c0] ss:$8 sps:$4 sm:$0xff]  }
 0x4f9   :  { %9239 = vmatprep.subr.bf16.mxu1 %v12476_v59  ;;  %v12530_v59 = vld [vmem:[#allocation12 + $0x2b4] ss:$8 sps:$4 sm:$0xff]  }
 0x4fb   :  { %9205 = vmatpush2.bf16.msra.mxu0 %v12471_v30  ;;  %v12528_v30 = vld [vmem:[#allocation12 + $0x2b0] ss:$8 sps:$4 sm:$0xff]  }
 0x4fc   :  { %9240 = vmatpush2.bf16.msra.mxu1 %v12474_v35  ;;  %9206 = vmatprep.subr.bf16.mxu0 %v12479_v62  ;;  %v12533_v35 = vld [vmem:[#allocation12 + $0x2a4] ss:$8 sps:$4 sm:$0xff]   ;;  %v12536_v62 = vld [vmem:[#allocation12 + $0x294] ss:$8 sps:$4 sm:$0xff]  }
 0x4fd   :  { %9241 = vmatprep.subr.bf16.mxu1 %v12482_v9  ;;  %v12534_v9 = vld [vmem:[#allocation12 + $0x290] ss:$8 sps:$4 sm:$0xff]  }
 0x4ff   :  { %9207 = vmatpush2.bf16.msra.mxu0 %v12477_v10  ;;  %v12539_v10 = vld [vmem:[#allocation12 + $0x284] ss:$8 sps:$4 sm:$0xff]  }
 0x500   :  { %9242 = vmatpush2.bf16.msra.mxu1 %v12480_v41  ;;  %9258 = vmatprep.subr.bf16.mxu0 %v12494_v19  ;;  %v12537_v41 = vld [vmem:[#allocation12 + $0x280] ss:$8 sps:$4 sm:$0xff]  }
 0x501   :  { %9243 = vmatprep.subr.bf16.mxu1 %v12485_v21 }
 0x502   :  { %v8288_v3 = vpop.f32.mrf.mxu0  ;;  %9209 = vmatmul.mubr.bf16.vlgmr.msra.gmra.mxu0 %v8582_v1 }
 0x503   :  { %v8289_v31 = vadd.f32 %v8288_v3, %v13237_v14  ;;  %9259 = vmatpush1.bf16.msra.mxu0 %v12492_v46  ;;  %v12503_v14 = vld [vmem:[#allocation12 + $0x244] ss:$8 sps:$4 sm:$0xff]   ;;  %v12541_v3 = vld [vmem:[#allocation15 + $0x38] sm:$0xff]  }
 0x504   :  { %9244 = vmatpush2.bf16.msra.mxu1 %v12483_v24  ;;  %v8290_v56 = vpop.f32.mrf.mxu0  ;;  %9260 = vmatprep.subr.bf16.mxu0 %v12497_v15  ;;  %v12540_v15 = vld [vmem:[#allocation15 + $0x78] sm:$0xff]  }
 0x505   :  { %9245 = vmatprep.subr.bf16.mxu1 %v12488_v13  ;;  %v8291_v17 = vadd.f32 %v8290_v56, %v13239_v4  ;;  %v12504_v4 = vld [vmem:[#allocation12 + $0x230] ss:$8 sps:$4 sm:$0xff]   ;;  %v12546_v56 = vld [vmem:[#allocation15 + $0x60] sm:$0xff]  }
 0x506   :  { %v8292_v36 = vpop.f32.mrf.mxu0 }
 0x507   :  { %9261 = vmatpush1.bf16.msra.mxu0 %v12495_v32  ;;  %v12544_v32 = vld [vmem:[#allocation15 + $0x68] sm:$0xff]   ;;  %v12550_v36 = vld [vmem:[#allocation15 + $0x50] sm:$0xff]  }
 0x508   :  { %9246 = vmatpush2.bf16.msra.mxu1 %v12486_v61  ;;  %v8293_v45 = vpop.f32.mrf.mxu0  ;;  %9262 = vmatprep.subr.bf16.mxu0 %v12500_v11  ;;  %v12543_v61 = vld [vmem:[#allocation15 + $0x30] sm:$0xff]   ;;  %v12548_v11 = vld [vmem:[#allocation15 + $0x58] sm:$0xff]  }
 0x509   :  { %9247 = vmatprep.subr.bf16.mxu1 %v12491_v8  ;;  %v12547_v8 = vld [vmem:[#allocation15 + $0x20] sm:$0xff]  }
 0x50b   :  { %9263 = vmatpush1.bf16.msra.mxu0 %v12498_v63 }
 0x50c   :  { %9248 = vmatpush2.bf16.msra.mxu1 %v12489_v18  ;;  %9264 = vmatprep.subr.bf16.mxu0 %v12503_v14  ;;  %v12551_v18 = vld [vmem:[#allocation15 + $0x10] sm:$0xff]  }
 0x50d   :  { %10718 = vmatprep.subr.bf16.mxu1 %v12540_v15 }
 0x50f   :  { %v8329_v49 = vpop.f32.mrf.mxu1  ;;  %9250 = vmatmul.mubr.bf16.vlgmr.msra.gmra.mxu1 %v8584_v5  ;;  %9265 = vmatpush1.bf16.msra.mxu0 %v12501_v37 }
 0x510   :  { %v8330_v43 = vadd.f32 %v8329_v49, %v8289_v31  ;;  %9266 = vmatprep.subr.bf16.mxu0 %v12506_v39  ;;  %v12542_v31 = vld [vmem:[#allocation15 + $0x70] sm:$0xff]   ;;  %10719 = vmatpush3.bf16.msra.mxu1 %v12541_v3  ;;  %v8521_v49 = vrot.slane %v13219_v25, %v12980_v50 }
 0x511   :  { %v8331_v48 = vpop.f32.mrf.mxu1  ;;  %10720 = vmatprep.subr.bf16.mxu1 %v12542_v31 }
 0x512   :  { %v8332_v42 = vadd.f32 %v8331_v48, %v8291_v17  ;;  %v12549_v17 = vld [vmem:[#allocation15 + $0x18] sm:$0xff]  }
 0x513   :  { %v8333_v54 = vpop.f32.mrf.mxu1  ;;  %9267 = vmatpush1.bf16.msra.mxu0 %v12504_v4 }
 0x514   :  { %9268 = vmatprep.subr.bf16.mxu0 %v12509_v27  ;;  %10721 = vmatpush3.bf16.msra.mxu1 %v12543_v61  ;;  %v8559_v27 = vrot.slane %v13223_v47, %v12980_v50 }
 0x515   :  { %v8334_v44 = vpop.f32.mrf.mxu1  ;;  %10722 = vmatprep.subr.bf16.mxu1 %v12544_v32  ;;  %v10701_v32 = vld [vmem:[#allocation16] ss:$0 sm:$0xff] }
 0x517   :  { %9269 = vmatpush1.bf16.msra.mxu0 %v12507_v28 }
 0x518   :  { %9270 = vmatprep.subr.bf16.mxu0 %v12512_v2  ;;  %10723 = vmatpush3.bf16.msra.mxu1 %v12545_v38  ;;  %v8563_v2 = vrot.slane %v13223_v47, %v12986_v55 }
 0x519   :  { %10724 = vmatprep.subr.bf16.mxu1 %v12546_v56 }
 0x51b   :  { %9271 = vmatpush1.bf16.msra.mxu0 %v12510_v53 }
 0x51c   :  { %9272 = vmatprep.subr.bf16.mxu0 %v12515_v0  ;;  %10725 = vmatpush3.bf16.msra.mxu1 %v12547_v8 }
 0x51d   :  { %10726 = vmatprep.subr.bf16.mxu1 %v12548_v11 }
 0x51f   :  { %9273 = vmatpush1.bf16.msra.mxu0 %v12513_v34 }
 0x520   :  { %9274 = vmatprep.subr.bf16.mxu0 %v12518_v29  ;;  %10727 = vmatpush3.bf16.msra.mxu1 %v12549_v17 }
 0x521   :  { %10728 = vmatprep.subr.bf16.mxu1 %v12550_v36 }
 0x523   :  { %9275 = vmatpush2.bf16.msra.mxu0 %v12516_v26 }
 0x524   :  { %9276 = vmatprep.subr.bf16.mxu0 %v12521_v58  ;;  %10729 = vmatpush3.bf16.msra.mxu1 %v12551_v18 }
 0x527   :  { %9277 = vmatpush2.bf16.msra.mxu0 %v12519_v23 }
 0x528   :  { %9278 = vmatprep.subr.bf16.mxu0 %v12524_v20 }
 0x52b   :  { %9279 = vmatpush2.bf16.msra.mxu0 %v12522_v6 }
 0x52c   :  { %9280 = vmatprep.subr.bf16.mxu0 %v12527_v60 }
 0x52f   :  { %9281 = vmatpush2.bf16.msra.mxu0 %v12525_v33 }
 0x530   :  { %9282 = vmatprep.subr.bf16.mxu0 %v12530_v59 }
 0x533   :  { %9283 = vmatpush2.bf16.msra.mxu0 %v12528_v30 }
 0x534   :  { %9284 = vmatprep.subr.bf16.mxu0 %v12533_v35 }
 0x537   :  { %9285 = vmatpush2.bf16.msra.mxu0 %v12531_v7 }
 0x538   :  { %9286 = vmatprep.subr.bf16.mxu0 %v12536_v62 }
 0x53b   :  { %9287 = vmatpush2.bf16.msra.mxu0 %v12534_v9 }
 0x53c   :  { %9288 = vmatprep.subr.bf16.mxu0 %v12539_v10 }
 0x53f   :  { %9289 = vmatpush2.bf16.msra.mxu0 %v12537_v41 }
 0x542   :  { %v8370_v40 = vpop.f32.mrf.mxu0 }
 0x543   :  { %v8371_v16 = vadd.f32 %v8370_v40, %v8330_v43 }
 0x544   :  { %v8372_v21 = vpop.f32.mrf.mxu0 }
 0x545   :  { %v8373_v19 = vadd.f32 %v8372_v21, %v8332_v42  ;;  %v8525_v42 = vrot.slane %v13219_v25, %v12986_v55  ;;  %v8684_v25 = vld [vmem:[#allocation13] sm:$0x3]  ;;  %v12553_v21 = vld [vmem:[#allocation15 + $0x8] sm:$0xff]  }
 0x546   :  { %v8374_v24 = vpop.f32.mrf.mxu0  ;;  %v8689_v30 = vrot.slane %v8684_v25, %v12960_v52  ;;  %v8693_v55 = vrot.slane %v8684_v25, %v12940_v22 }
 0x547   :  { %v12555_v24 = vld [vmem:[#allocation15] sm:$0xff]  }
 0x548   :  { %v8375_v46 = vpop.f32.mrf.mxu0 }
 0x54f   :  { %v8411_v1 = vpop.f32.mrf.mxu1 }
 0x550   :  { %v8412_v37 = vadd.f32 %v8411_v1, %v8371_v16  ;;  %v12552_v16 = vld [vmem:[#allocation15 + $0x48] sm:$0xff]  }
 0x551   :  { %v8413_v51 = vpop.f32.mrf.mxu1  ;;  %10730 = vmatprep.subr.bf16.mxu1 %v12552_v16 }
 0x552   :  { %v8414_v5 = vadd.f32 %v8413_v51, %v8373_v19  ;;  %10731 = vmatpush3.bf16.msra.mxu1 %v12553_v21  ;;  %v12554_v19 = vld [vmem:[#allocation15 + $0x40] sm:$0xff]  }
 0x553   :  { %v8415_v57 = vpop.f32.mrf.mxu1  ;;  %10732 = vmatprep.subr.bf16.mxu1 %v12554_v19 }
 0x555   :  { %v8416_v13 = vpop.f32.mrf.mxu1 }
 0x556   :  { %10733 = vmatpush3.bf16.msra.mxu1 %v12555_v24 }
 0x582   :  { %v8452_v63 = vpop.f32.mrf.mxu0 }
 0x583   :  { %v8453_v39 = vadd.f32 %v8452_v63, %v8412_v37 }
 0x584   :  { %v8454_v12 = vpop.f32.mrf.mxu0 }
 0x585   :  { %v8455_v4 = vadd.f32 %v8454_v12, %v8414_v5 }
 0x586   :  { %v8456_v45 = vpop.f32.mrf.mxu0 }
 0x588   :  { %v8457_v14 = vpop.f32.mrf.mxu0 }
 0x58f   :  { %v8493_v43 = vpop.f32.mrf.mxu1 }
 0x590   :  { %v8494_v48 = vadd.f32 %v8493_v43, %v8453_v39 }
 0x591   :  { %v8495_v54 = vpop.f32.mrf.mxu1 }
 0x592   :  { %v8536_v28 = vmul.f32 %v8521_v49, %v8494_v48  ;;  %v8496_v44 = vadd.f32 %v8495_v54, %v8455_v4 }
 0x593   :  { %v8497_v53 = vpop.f32.mrf.mxu1 }
 0x594   :  { %v8574_v0 = vadd.f32 %v8559_v27, %v8536_v28  ;;  %v8537_v34 = vmul.f32 %v8525_v42, %v8496_v44 }
 0x595   :  { %v8498_v29 = vpop.f32.mrf.mxu1 }
 0x596   :  { %v8575_v26 = vadd.f32 %v8563_v2, %v8537_v34  ;;  %v8580_v58 = vmax.f32 %v8574_v0, 0.0 }
 0x598   :  { %v8581_v23 = vmax.f32 %v8575_v26, 0.0  ;;  %v8586_v6 = vpack.c.bf16 %v8580_v58, %v8580_v58 }
 0x59a   :  { %v8587_v20 = vpack.c.bf16 %v8581_v23, %v8581_v23 }
 0x59c   :  { %9290 = vmatprep.mubr.bf16.mxu0 %v8587_v20 }
 0x59d   :  { %9291 = vmatmul.mubr.bf16.vlgmr.msra.gmra.mxu0 %v8586_v6 }
 0x5c2   :  { %v9210_v50 = vpop.f32.mrf.mxu0 }
 0x5c3   :  { %v9211_v47 = vadd.f32 %v9210_v50, %v8689_v30 }
 0x5c4   :  { %v9212_v60 = vpop.f32.mrf.mxu0 }
 0x5c5   :  { %v9213_v7 = vadd.f32 %v9212_v60, %v8693_v55 }
 0x5c6   :  { %v9214_v33 = vpop.f32.mrf.mxu0 }
 0x5c8   :  { %v9215_v59 = vpop.f32.mrf.mxu0 }
 0x5cf   :  { %v9251_v35 = vpop.f32.mrf.mxu1 }
 0x5d0   :  { %v9252_v62 = vadd.f32 %v9251_v35, %v9211_v47 }
 0x5d1   :  { %v9253_v9 = vpop.f32.mrf.mxu1 }
 0x5d2   :  { %v9254_v10 = vadd.f32 %v9253_v9, %v9213_v7 }
 0x5d3   :  { %v9255_v41 = vpop.f32.mrf.mxu1 }
 0x5d5   :  { %v9256_v40 = vpop.f32.mrf.mxu1 }
 0x65d   :  { %v9292_v46 = vpop.f32.mrf.mxu0 }
 0x65e   :  { %v9293_v52 = vadd.f32 %v9292_v46, %v9252_v62 }
 0x65f   :  { %v9294_v1 = vpop.f32.mrf.mxu0 }
 0x660   :  { %v9295_v22 = vadd.f32 %v9294_v1, %v9254_v10  ;;  %v9299_v51 = vmax.f32 %v9293_v52, 0.0 }
 0x661   :  { %v9296_v57 = vpop.f32.mrf.mxu0 }
 0x662   :  { %v9300_v13 = vmax.f32 %v9295_v22, 0.0  ;;  %v9301_v31 = vpack.c.bf16 %v9299_v51, %v9299_v51 }
 0x663   :  { %v9297_v15 = vpop.f32.mrf.mxu0 }
 0x664   :  { %v9302_v3 = vpack.c.bf16 %v9300_v13, %v9300_v13 }
 0x666   :  { %9470 = vmatprep.mubr.bf16.mxu1 %v9302_v3 }
 0x667   :  { %9471 = vmatmul.mubr.bf16.vlgmr.msra.gmra.mxu1 %v9301_v31 }
 0x727   :  { %v10734_v61 = vpop.f32.mrf.mxu1 }
 0x729   :  { %v10735_v38 = vpop.f32.mrf.mxu1 }
 0x72a   :  { %v10736_v56 = vadd.f32 %v10735_v38, %v10734_v61 }
 0x72b   :  { %v10737_v8 = vpop.f32.mrf.mxu1 }
 0x72c   :  { %v9473_v11 = vadd.f32 %v10736_v56, %v10701_v32 }
 0x72d   :  { %v10738_v17 = vpop.f32.mrf.mxu1 }
 0x72e   :  { %9478 = vst [vmem:[%s13277_s11] sm:$0xff] %v9473_v11 }
 0x72f   :  { %9483 = vsyncpa [#allocation3], 1 }
 0x730   :  { %9484 = vsyncpa [#allocation5], 1 }
 0x731   :  { %9485 = vsyncpa [#allocation8], 1 }
 0x732   :  { %9486 = vsyncpa [#allocation11], 1 }
 0x733   :  { %9487 = vsyncpa [#allocation14], 1 }
 0x734   :  { %9488 = vsyncpa [#allocation17], 1 }

</bundles_post_ra>
